<compile_context>
chip_gen: v7x
topology: tpu7x:2x2x1
jax: 0.10.0
libtpu: 0.0.40
codegen_flags: <defaults>
</compile_context>

<pallas_src>
import jax
import jax.numpy as jnp
from jax import lax
from jax.experimental import pallas as pl
from jax.experimental.pallas import tpu as pltpu

# ---- module hyper-parameters (small, consistent with the PyTorch module) ----
VOCAB_LEN = 20
EMBED = 16          # embedding_size
HIDDEN = 32         # hidden_size
MAX_LEN = 8         # max_len (sequence length)
BATCH = 2           # batch_size
LABEL_NUM = 4       # label_num
# bidirectional=True, num_layers=2, dropout=0  -> 2H features, 4 dir-layer cells


# --------------------------- Pallas kernel ----------------------------------
def classify_kernel(x_ref,                      # (T*B, E)  embedded, seq-major rows
                    wih0_ref, whh0_ref, b0_ref,  # layer-0 packed fwd|bwd, gates [i,f,o,g]
                    wih1_ref, whh1_ref, b1_ref,  # layer-1 packed fwd|bwd
                    initw_ref, wlin_ref, blin_ref,
                    out_ref,
                    f0_sc, b0_sc, f1_sc, b1_sc):
    T, B, H = f1_sc.shape
    H3, H4 = 3 * H, 4 * H

    def cell(pre, h, c, whh):
        # pre already contains x_t @ W_ih + b ; gate layout is [i | f | o | g]
        gates = pre + jnp.dot(h, whh, preferred_element_type=jnp.float32)
        sig = jax.nn.sigmoid(gates[:, :H3])         # one EUP launch: i, f, o
        g = jnp.tanh(gates[:, H3:])                 # one EUP launch: g
        c_new = sig[:, H:2 * H] * c + sig[:, :H] * g
        h_new = sig[:, 2 * H:H3] * jnp.tanh(c_new)
        return h_new, c_new

    zeros_bh = jnp.zeros((B, H), jnp.float32)

    # ---- layer 0: hoisted input projection (both directions, one matmul) ----
    xi0 = (jnp.dot(x_ref[...], wih0_ref[...],
                   preferred_element_type=jnp.float32) + b0_ref[...])   # (T*B, 8H)
    whh0 = whh0_ref[...]
    whh0f, whh0b = whh0[:, :H4], whh0[:, H4:]

    hf, cf = zeros_bh, zeros_bh
    hb, cb = zeros_bh, zeros_bh
    for t in range(T):                      # fully unrolled, fused directions
        tb = T - 1 - t
        hf, cf = cell(xi0[t * B:(t + 1) * B, :H4], hf, cf, whh0f)
        hb, cb = cell(xi0[tb * B:(tb + 1) * B, H4:], hb, cb, whh0b)
        f0_sc[t * B:(t + 1) * B, :] = hf            # time-major row blocks
        b0_sc[tb * B:(tb + 1) * B, :] = hb

    # ---- layer 1: hoisted input projection, no concat materialized ----------
    wih1 = wih1_ref[...]
    xi1 = (jnp.dot(f0_sc[...], wih1[:H, :], preferred_element_type=jnp.float32)
           + jnp.dot(b0_sc[...], wih1[H:, :], preferred_element_type=jnp.float32)
           + b1_ref[...])                                                # (T*B, 8H)
    whh1 = whh1_ref[...]
    whh1f, whh1b = whh1[:, :H4], whh1[:, H4:]

    hf, cf = zeros_bh, zeros_bh
    hb, cb = zeros_bh, zeros_bh
    for t in range(T):                      # fully unrolled, fused directions
        tb = T - 1 - t
        hf, cf = cell(xi1[t * B:(t + 1) * B, :H4], hf, cf, whh1f)
        hb, cb = cell(xi1[tb * B:(tb + 1) * B, H4:], hb, cb, whh1b)
        f1_sc[t] = hf
        b1_sc[tb] = hb

    # ---- lstm_out = tanh(bidirectional output) : (T, B, 2H) -----------------
    lstm_out = jnp.tanh(jnp.concatenate([f1_sc[...], b1_sc[...]], axis=-1))

    # ---- attention: M[t,b] = <init_w, lstm_out[t,b,:]> -----------------------
    init_w = initw_ref[...]                                              # (1, 2H)
    M_tb = jnp.sum(lstm_out * init_w.reshape(1, 1, 2 * H), axis=-1)      # (T, B)
    # F.softmax(M, dim=0) in the original == softmax over the batch axis here.
    alpha_tb = jax.nn.softmax(M_tb, axis=1)                              # (T, B)
    out_att = jnp.sum(alpha_tb[:, :, None] * lstm_out, axis=0)           # (B, 2H)

    # ---- linear + softmax(dim=1) ---------------------------------------------
    logits = (jnp.dot(out_att, wlin_ref[...],
                      preferred_element_type=jnp.float32) + blin_ref[...])
    out_ref[...] = jax.nn.softmax(logits, axis=1)


# ------------------------------ wrapper --------------------------------------
def _reorder_gates(w):
    """Columns [i, f, g, o] (canonical / PyTorch order) -> [i, f, o, g]."""
    H = HIDDEN
    return jnp.concatenate([w[..., :2 * H], w[..., 3 * H:], w[..., 2 * H:3 * H]],
                           axis=-1)


def _pack(wf, wb):
    """Pack fwd / bwd weights of one layer into a single lane-dense (…, 8H)."""
    return jnp.concatenate([_reorder_gates(wf), _reorder_gates(wb)], axis=-1)


@jax.jit
def classify_forward(tokens, params):
    emb = params["embedding"][tokens]              # (B, T, E) gather (glue)
    x = jnp.transpose(emb, (1, 0, 2))              # (T, B, E) seq-major
    T, B, E = x.shape
    x2d = x.reshape(T * B, E)                      # host-side, free
    H, L = HIDDEN, LABEL_NUM

    wih0 = _pack(params["wih0f"], params["wih0b"])     # (E, 8H)
    whh0 = _pack(params["whh0f"], params["whh0b"])     # (H, 8H)
    b0 = _pack(params["b0f"], params["b0b"])           # (1, 8H)
    wih1 = _pack(params["wih1f"], params["wih1b"])     # (2H, 8H)
    whh1 = _pack(params["whh1f"], params["whh1b"])     # (H, 8H)
    b1 = _pack(params["b1f"], params["b1b"])           # (1, 8H)

    ins = [x2d, wih0, whh0, b0, wih1, whh1, b1,
           params["init_w"], params["wlin"], params["blin"]]

    # TODO(synk): for real throughput runs (large B) add a batch grid axis with
    # dimension_semantics=("parallel",) so v7x's two TensorCores split the work.
    return pl.pallas_call(
        classify_kernel,
        out_shape=jax.ShapeDtypeStruct((B, L), jnp.float32),
        in_specs=[pl.BlockSpec(memory_space=pltpu.MemorySpace.VMEM)] * len(ins),
        out_specs=pl.BlockSpec(memory_space=pltpu.MemorySpace.VMEM),
        scratch_shapes=[pltpu.VMEM((T * B, H), jnp.float32),   # layer-0 fwd h
                        pltpu.VMEM((T * B, H), jnp.float32),   # layer-0 bwd h
                        pltpu.VMEM((T, B, H), jnp.float32),    # layer-1 fwd h
                        pltpu.VMEM((T, B, H), jnp.float32)],   # layer-1 bwd h
    )(*ins)


# ------------------------- pure-JAX reference --------------------------------
def ref_forward(tokens, params):
    emb = params["embedding"][tokens]
    x = jnp.transpose(emb, (1, 0, 2))              # (T, B, E)
    T, B, _ = x.shape
    H = HIDDEN

    def cell(x_t, h, c, wih, whh, b):
        g = x_t @ wih + h @ whh + b
        i = jax.nn.sigmoid(g[:, :H])
        f = jax.nn.sigmoid(g[:, H:2 * H])
        gg = jnp.tanh(g[:, 2 * H:3 * H])
        o = jax.nn.sigmoid(g[:, 3 * H:])
        c = f * c + i * gg
        return o * jnp.tanh(c), c

    def run_dir(xs, wih, whh, b, reverse):
        def step(carry, x_t):
            h, c = cell(x_t, carry[0], carry[1], wih, whh, b)
            return (h, c), h
        seq = xs[::-1] if reverse else xs
        _, hs = lax.scan(step, (jnp.zeros((B, H)), jnp.zeros((B, H))), seq)
        return hs[::-1] if reverse else hs

    f0 = run_dir(x, params["wih0f"], params["whh0f"], params["b0f"], False)
    b0 = run_dir(x, params["wih0b"], params["whh0b"], params["b0b"], True)
    x1 = jnp.concatenate([f0, b0], axis=-1)
    f1 = run_dir(x1, params["wih1f"], params["whh1f"], params["b1f"], False)
    b1 = run_dir(x1, params["wih1b"], params["whh1b"], params["b1b"], True)
    lstm_out = jnp.tanh(jnp.concatenate([f1, b1], axis=-1))          # (T,B,2H)

    M = jnp.einsum('h,tbh->bt', params["init_w"][0], lstm_out)       # (B, T)
    alpha = jax.nn.softmax(M, axis=0)                                # dim=0 !
    out = jnp.einsum('bt,tbh->bh', alpha, lstm_out)
    logits = out @ params["wlin"] + params["blin"]
    return jax.nn.softmax(logits, axis=1)


# -------------------------------- main ----------------------------------------
def init_params(key):
    H, E, L = HIDDEN, EMBED, LABEL_NUM
    ks = jax.random.split(key, 16)
    s = 0.1  # deterministic small-scale init (synthetic weights)
    p = {
        "embedding": jax.random.normal(ks[0], (VOCAB_LEN, E), jnp.float32),
        # layer 0 (input size E), forward / backward — gate order [i, f, g, o]
        "wih0f": s * jax.random.normal(ks[1], (E, 4 * H), jnp.float32),
        "whh0f": s * jax.random.normal(ks[2], (H, 4 * H), jnp.float32),
        "b0f":   s * jax.random.normal(ks[3], (1, 4 * H), jnp.float32),
        "wih0b": s * jax.random.normal(ks[4], (E, 4 * H), jnp.float32),
        "whh0b": s * jax.random.normal(ks[5], (H, 4 * H), jnp.float32),
        "b0b":   s * jax.random.normal(ks[6], (1, 4 * H), jnp.float32),
        # layer 1 (input size 2H), forward / backward
        "wih1f": s * jax.random.normal(ks[7], (2 * H, 4 * H), jnp.float32),
        "whh1f": s * jax.random.normal(ks[8], (H, 4 * H), jnp.float32),
        "b1f":   s * jax.random.normal(ks[9], (1, 4 * H), jnp.float32),
        "wih1b": s * jax.random.normal(ks[10], (2 * H, 4 * H), jnp.float32),
        "whh1b": s * jax.random.normal(ks[11], (H, 4 * H), jnp.float32),
        "b1b":   s * jax.random.normal(ks[12], (1, 4 * H), jnp.float32),
        # attention vector and classifier head
        "init_w": jax.random.normal(ks[13], (1, 2 * H), jnp.float32),
        "wlin":   s * jax.random.normal(ks[14], (2 * H, L), jnp.float32),
        "blin":   s * jax.random.normal(ks[15], (1, L), jnp.float32),
    }
    return p


if __name__ == "__main__":
    key = jax.random.PRNGKey(0)
    pkey, tkey = jax.random.split(key)
    params = init_params(pkey)
    tokens = jax.random.randint(tkey, (BATCH, MAX_LEN), 0, VOCAB_LEN, jnp.int32)

    predict = classify_forward(tokens, params)
    predict = jax.block_until_ready(predict)

    ref = jax.block_until_ready(ref_forward(tokens, params))

    assert predict.shape == (BATCH, LABEL_NUM)
    assert jnp.all(jnp.isfinite(predict))
    assert jnp.allclose(predict, ref, atol=2e-3, rtol=2e-3), (
        f"max abs diff {jnp.max(jnp.abs(predict - ref))}")

    print("KERNEL_OK")
</pallas_src>

<mosaic_0001>
module attributes {stable_mosaic.version = 11 : i64} {
  func.func @classify_kernel(%arg0: memref<16x16xf32, #tpu.memory_space<vmem>>, %arg1: memref<16x256xf32, #tpu.memory_space<vmem>>, %arg2: memref<32x256xf32, #tpu.memory_space<vmem>>, %arg3: memref<1x256xf32, #tpu.memory_space<vmem>>, %arg4: memref<64x256xf32, #tpu.memory_space<vmem>>, %arg5: memref<32x256xf32, #tpu.memory_space<vmem>>, %arg6: memref<1x256xf32, #tpu.memory_space<vmem>>, %arg7: memref<1x64xf32, #tpu.memory_space<vmem>>, %arg8: memref<64x4xf32, #tpu.memory_space<vmem>>, %arg9: memref<1x4xf32, #tpu.memory_space<vmem>>, %arg10: memref<2x4xf32, #tpu.memory_space<vmem>>, %arg11: memref<16x32xf32, #tpu.memory_space<vmem>>, %arg12: memref<16x32xf32, #tpu.memory_space<vmem>>, %arg13: memref<8x2x32xf32, #tpu.memory_space<vmem>>, %arg14: memref<8x2x32xf32, #tpu.memory_space<vmem>>) attributes {dimension_semantics = [], scalar_prefetch = 0 : i64, scratch_operands = 4 : i64, tpu.core_type = #tpu.core_type<tc>} {
    %cst = arith.constant 0.000000e+00 : f32
    %0 = vector.broadcast %cst : f32 to vector<2x32xf32>
    %c0 = arith.constant 0 : index
    %c0_0 = arith.constant 0 : index
    %1 = vector.load %arg0[%c0, %c0_0] : memref<16x16xf32, #tpu.memory_space<vmem>>, vector<16x16xf32>
    %c0_1 = arith.constant 0 : index
    %c0_2 = arith.constant 0 : index
    %2 = vector.load %arg1[%c0_1, %c0_2] : memref<16x256xf32, #tpu.memory_space<vmem>>, vector<16x256xf32>
    %cst_3 = arith.constant dense<0.000000e+00> : vector<16x256xf32>
    %3 = tpu.matmul %1, %2, %cst_3 {dimension_numbers = #tpu.dot_dimension_numbers<[1], [0], [0], [1], [0, 0, 1, 1], [], []>} : vector<16x16xf32>, vector<16x256xf32>, vector<16x256xf32> -> vector<16x256xf32>
    %c0_4 = arith.constant 0 : index
    %c0_5 = arith.constant 0 : index
    %4 = vector.load %arg3[%c0_4, %c0_5] : memref<1x256xf32, #tpu.memory_space<vmem>>, vector<1x256xf32>
    %5 = vector.broadcast %4 : vector<1x256xf32> to vector<16x256xf32>
    %6 = arith.addf %3, %5 : vector<16x256xf32>
    %c0_6 = arith.constant 0 : index
    %c0_7 = arith.constant 0 : index
    %7 = vector.load %arg2[%c0_6, %c0_7] : memref<32x256xf32, #tpu.memory_space<vmem>>, vector<32x256xf32>
    %8 = vector.extract_strided_slice %7 {offsets = [0, 0], sizes = [32, 128], strides = [1, 1]} : vector<32x256xf32> to vector<32x128xf32>
    %9 = vector.extract_strided_slice %7 {offsets = [0, 128], sizes = [32, 128], strides = [1, 1]} : vector<32x256xf32> to vector<32x128xf32>
    %10 = vector.extract_strided_slice %6 {offsets = [0, 0], sizes = [2, 128], strides = [1, 1]} : vector<16x256xf32> to vector<2x128xf32>
    %cst_8 = arith.constant dense<0.000000e+00> : vector<2x128xf32>
    %11 = tpu.matmul %0, %8, %cst_8 {dimension_numbers = #tpu.dot_dimension_numbers<[1], [0], [0], [1], [0, 0, 1, 1], [], []>} : vector<2x32xf32>, vector<32x128xf32>, vector<2x128xf32> -> vector<2x128xf32>
    %12 = arith.addf %10, %11 : vector<2x128xf32>
    %13 = vector.extract_strided_slice %12 {offsets = [0, 0], sizes = [2, 96], strides = [1, 1]} : vector<2x128xf32> to vector<2x96xf32>
    %14 = arith.negf %13 : vector<2x96xf32>
    %15 = math.exp %14 : vector<2x96xf32>
    %cst_9 = arith.constant 1.000000e+00 : f32
    %16 = vector.broadcast %cst_9 : f32 to vector<2x96xf32>
    %17 = arith.addf %16, %15 : vector<2x96xf32>
    %18 = arith.divf %16, %17 : vector<2x96xf32>
    %19 = vector.extract_strided_slice %12 {offsets = [0, 96], sizes = [2, 32], strides = [1, 1]} : vector<2x128xf32> to vector<2x32xf32>
    %20 = math.tanh %19 : vector<2x32xf32>
    %21 = vector.extract_strided_slice %18 {offsets = [0, 32], sizes = [2, 32], strides = [1, 1]} : vector<2x96xf32> to vector<2x32xf32>
    %22 = arith.mulf %21, %0 : vector<2x32xf32>
    %23 = vector.extract_strided_slice %18 {offsets = [0, 0], sizes = [2, 32], strides = [1, 1]} : vector<2x96xf32> to vector<2x32xf32>
    %24 = arith.mulf %23, %20 : vector<2x32xf32>
    %25 = arith.addf %22, %24 : vector<2x32xf32>
    %26 = vector.extract_strided_slice %18 {offsets = [0, 64], sizes = [2, 32], strides = [1, 1]} : vector<2x96xf32> to vector<2x32xf32>
    %27 = math.tanh %25 : vector<2x32xf32>
    %28 = arith.mulf %26, %27 : vector<2x32xf32>
    %29 = vector.extract_strided_slice %6 {offsets = [14, 128], sizes = [2, 128], strides = [1, 1]} : vector<16x256xf32> to vector<2x128xf32>
    %cst_10 = arith.constant dense<0.000000e+00> : vector<2x128xf32>
    %30 = tpu.matmul %0, %9, %cst_10 {dimension_numbers = #tpu.dot_dimension_numbers<[1], [0], [0], [1], [0, 0, 1, 1], [], []>} : vector<2x32xf32>, vector<32x128xf32>, vector<2x128xf32> -> vector<2x128xf32>
    %31 = arith.addf %29, %30 : vector<2x128xf32>
    %32 = vector.extract_strided_slice %31 {offsets = [0, 0], sizes = [2, 96], strides = [1, 1]} : vector<2x128xf32> to vector<2x96xf32>
    %33 = arith.negf %32 : vector<2x96xf32>
    %34 = math.exp %33 : vector<2x96xf32>
    %cst_11 = arith.constant 1.000000e+00 : f32
    %35 = vector.broadcast %cst_11 : f32 to vector<2x96xf32>
    %36 = arith.addf %35, %34 : vector<2x96xf32>
    %37 = arith.divf %35, %36 : vector<2x96xf32>
    %38 = vector.extract_strided_slice %31 {offsets = [0, 96], sizes = [2, 32], strides = [1, 1]} : vector<2x128xf32> to vector<2x32xf32>
    %39 = math.tanh %38 : vector<2x32xf32>
    %40 = vector.extract_strided_slice %37 {offsets = [0, 32], sizes = [2, 32], strides = [1, 1]} : vector<2x96xf32> to vector<2x32xf32>
    %41 = arith.mulf %40, %0 : vector<2x32xf32>
    %42 = vector.extract_strided_slice %37 {offsets = [0, 0], sizes = [2, 32], strides = [1, 1]} : vector<2x96xf32> to vector<2x32xf32>
    %43 = arith.mulf %42, %39 : vector<2x32xf32>
    %44 = arith.addf %41, %43 : vector<2x32xf32>
    %45 = vector.extract_strided_slice %37 {offsets = [0, 64], sizes = [2, 32], strides = [1, 1]} : vector<2x96xf32> to vector<2x32xf32>
    %46 = math.tanh %44 : vector<2x32xf32>
    %47 = arith.mulf %45, %46 : vector<2x32xf32>
    %c0_12 = arith.constant 0 : index
    %c0_13 = arith.constant 0 : index
    %48 = vector.load %arg11[%c0_12, %c0_13] : memref<16x32xf32, #tpu.memory_space<vmem>>, vector<2x32xf32>
    tpu.vector_store %arg11[%c0_12, %c0_13], %28 {strides = array<i32>} : memref<16x32xf32, #tpu.memory_space<vmem>>, vector<2x32xf32>,
    %c14 = arith.constant 14 : index
    %c0_14 = arith.constant 0 : index
    %49 = vector.load %arg12[%c14, %c0_14] : memref<16x32xf32, #tpu.memory_space<vmem>>, vector<2x32xf32>
    tpu.vector_store %arg12[%c14, %c0_14], %47 {strides = array<i32>} : memref<16x32xf32, #tpu.memory_space<vmem>>, vector<2x32xf32>,
    %50 = vector.extract_strided_slice %6 {offsets = [2, 0], sizes = [2, 128], strides = [1, 1]} : vector<16x256xf32> to vector<2x128xf32>
    %cst_15 = arith.constant dense<0.000000e+00> : vector<2x128xf32>
    %51 = tpu.matmul %28, %8, %cst_15 {dimension_numbers = #tpu.dot_dimension_numbers<[1], [0], [0], [1], [0, 0, 1, 1], [], []>} : vector<2x32xf32>, vector<32x128xf32>, vector<2x128xf32> -> vector<2x128xf32>
    %52 = arith.addf %50, %51 : vector<2x128xf32>
    %53 = vector.extract_strided_slice %52 {offsets = [0, 0], sizes = [2, 96], strides = [1, 1]} : vector<2x128xf32> to vector<2x96xf32>
    %54 = arith.negf %53 : vector<2x96xf32>
    %55 = math.exp %54 : vector<2x96xf32>
    %cst_16 = arith.constant 1.000000e+00 : f32
    %56 = vector.broadcast %cst_16 : f32 to vector<2x96xf32>
    %57 = arith.addf %56, %55 : vector<2x96xf32>
    %58 = arith.divf %56, %57 : vector<2x96xf32>
    %59 = vector.extract_strided_slice %52 {offsets = [0, 96], sizes = [2, 32], strides = [1, 1]} : vector<2x128xf32> to vector<2x32xf32>
    %60 = math.tanh %59 : vector<2x32xf32>
    %61 = vector.extract_strided_slice %58 {offsets = [0, 32], sizes = [2, 32], strides = [1, 1]} : vector<2x96xf32> to vector<2x32xf32>
    %62 = arith.mulf %61, %25 : vector<2x32xf32>
    %63 = vector.extract_strided_slice %58 {offsets = [0, 0], sizes = [2, 32], strides = [1, 1]} : vector<2x96xf32> to vector<2x32xf32>
    %64 = arith.mulf %63, %60 : vector<2x32xf32>
    %65 = arith.addf %62, %64 : vector<2x32xf32>
    %66 = vector.extract_strided_slice %58 {offsets = [0, 64], sizes = [2, 32], strides = [1, 1]} : vector<2x96xf32> to vector<2x32xf32>
    %67 = math.tanh %65 : vector<2x32xf32>
    %68 = arith.mulf %66, %67 : vector<2x32xf32>
    %69 = vector.extract_strided_slice %6 {offsets = [12, 128], sizes = [2, 128], strides = [1, 1]} : vector<16x256xf32> to vector<2x128xf32>
    %cst_17 = arith.constant dense<0.000000e+00> : vector<2x128xf32>
    %70 = tpu.matmul %47, %9, %cst_17 {dimension_numbers = #tpu.dot_dimension_numbers<[1], [0], [0], [1], [0, 0, 1, 1], [], []>} : vector<2x32xf32>, vector<32x128xf32>, vector<2x128xf32> -> vector<2x128xf32>
    %71 = arith.addf %69, %70 : vector<2x128xf32>
    %72 = vector.extract_strided_slice %71 {offsets = [0, 0], sizes = [2, 96], strides = [1, 1]} : vector<2x128xf32> to vector<2x96xf32>
    %73 = arith.negf %72 : vector<2x96xf32>
    %74 = math.exp %73 : vector<2x96xf32>
    %cst_18 = arith.constant 1.000000e+00 : f32
    %75 = vector.broadcast %cst_18 : f32 to vector<2x96xf32>
    %76 = arith.addf %75, %74 : vector<2x96xf32>
    %77 = arith.divf %75, %76 : vector<2x96xf32>
    %78 = vector.extract_strided_slice %71 {offsets = [0, 96], sizes = [2, 32], strides = [1, 1]} : vector<2x128xf32> to vector<2x32xf32>
    %79 = math.tanh %78 : vector<2x32xf32>
    %80 = vector.extract_strided_slice %77 {offsets = [0, 32], sizes = [2, 32], strides = [1, 1]} : vector<2x96xf32> to vector<2x32xf32>
    %81 = arith.mulf %80, %44 : vector<2x32xf32>
    %82 = vector.extract_strided_slice %77 {offsets = [0, 0], sizes = [2, 32], strides = [1, 1]} : vector<2x96xf32> to vector<2x32xf32>
    %83 = arith.mulf %82, %79 : vector<2x32xf32>
    %84 = arith.addf %81, %83 : vector<2x32xf32>
    %85 = vector.extract_strided_slice %77 {offsets = [0, 64], sizes = [2, 32], strides = [1, 1]} : vector<2x96xf32> to vector<2x32xf32>
    %86 = math.tanh %84 : vector<2x32xf32>
    %87 = arith.mulf %85, %86 : vector<2x32xf32>
    %c2 = arith.constant 2 : index
    %c0_19 = arith.constant 0 : index
    %88 = vector.load %arg11[%c2, %c0_19] : memref<16x32xf32, #tpu.memory_space<vmem>>, vector<2x32xf32>
    tpu.vector_store %arg11[%c2, %c0_19], %68 {strides = array<i32>} : memref<16x32xf32, #tpu.memory_space<vmem>>, vector<2x32xf32>,
    %c12 = arith.constant 12 : index
    %c0_20 = arith.constant 0 : index
    %89 = vector.load %arg12[%c12, %c0_20] : memref<16x32xf32, #tpu.memory_space<vmem>>, vector<2x32xf32>
    tpu.vector_store %arg12[%c12, %c0_20], %87 {strides = array<i32>} : memref<16x32xf32, #tpu.memory_space<vmem>>, vector<2x32xf32>,
    %90 = vector.extract_strided_slice %6 {offsets = [4, 0], sizes = [2, 128], strides = [1, 1]} : vector<16x256xf32> to vector<2x128xf32>
    %cst_21 = arith.constant dense<0.000000e+00> : vector<2x128xf32>
    %91 = tpu.matmul %68, %8, %cst_21 {dimension_numbers = #tpu.dot_dimension_numbers<[1], [0], [0], [1], [0, 0, 1, 1], [], []>} : vector<2x32xf32>, vector<32x128xf32>, vector<2x128xf32> -> vector<2x128xf32>
    %92 = arith.addf %90, %91 : vector<2x128xf32>
    %93 = vector.extract_strided_slice %92 {offsets = [0, 0], sizes = [2, 96], strides = [1, 1]} : vector<2x128xf32> to vector<2x96xf32>
    %94 = arith.negf %93 : vector<2x96xf32>
    %95 = math.exp %94 : vector<2x96xf32>
    %cst_22 = arith.constant 1.000000e+00 : f32
    %96 = vector.broadcast %cst_22 : f32 to vector<2x96xf32>
    %97 = arith.addf %96, %95 : vector<2x96xf32>
    %98 = arith.divf %96, %97 : vector<2x96xf32>
    %99 = vector.extract_strided_slice %92 {offsets = [0, 96], sizes = [2, 32], strides = [1, 1]} : vector<2x128xf32> to vector<2x32xf32>
    %100 = math.tanh %99 : vector<2x32xf32>
    %101 = vector.extract_strided_slice %98 {offsets = [0, 32], sizes = [2, 32], strides = [1, 1]} : vector<2x96xf32> to vector<2x32xf32>
    %102 = arith.mulf %101, %65 : vector<2x32xf32>
    %103 = vector.extract_strided_slice %98 {offsets = [0, 0], sizes = [2, 32], strides = [1, 1]} : vector<2x96xf32> to vector<2x32xf32>
    %104 = arith.mulf %103, %100 : vector<2x32xf32>
    %105 = arith.addf %102, %104 : vector<2x32xf32>
    %106 = vector.extract_strided_slice %98 {offsets = [0, 64], sizes = [2, 32], strides = [1, 1]} : vector<2x96xf32> to vector<2x32xf32>
    %107 = math.tanh %105 : vector<2x32xf32>
    %108 = arith.mulf %106, %107 : vector<2x32xf32>
    %109 = vector.extract_strided_slice %6 {offsets = [10, 128], sizes = [2, 128], strides = [1, 1]} : vector<16x256xf32> to vector<2x128xf32>
    %cst_23 = arith.constant dense<0.000000e+00> : vector<2x128xf32>
    %110 = tpu.matmul %87, %9, %cst_23 {dimension_numbers = #tpu.dot_dimension_numbers<[1], [0], [0], [1], [0, 0, 1, 1], [], []>} : vector<2x32xf32>, vector<32x128xf32>, vector<2x128xf32> -> vector<2x128xf32>
    %111 = arith.addf %109, %110 : vector<2x128xf32>
    %112 = vector.extract_strided_slice %111 {offsets = [0, 0], sizes = [2, 96], strides = [1, 1]} : vector<2x128xf32> to vector<2x96xf32>
    %113 = arith.negf %112 : vector<2x96xf32>
    %114 = math.exp %113 : vector<2x96xf32>
    %cst_24 = arith.constant 1.000000e+00 : f32
    %115 = vector.broadcast %cst_24 : f32 to vector<2x96xf32>
    %116 = arith.addf %115, %114 : vector<2x96xf32>
    %117 = arith.divf %115, %116 : vector<2x96xf32>
    %118 = vector.extract_strided_slice %111 {offsets = [0, 96], sizes = [2, 32], strides = [1, 1]} : vector<2x128xf32> to vector<2x32xf32>
    %119 = math.tanh %118 : vector<2x32xf32>
    %120 = vector.extract_strided_slice %117 {offsets = [0, 32], sizes = [2, 32], strides = [1, 1]} : vector<2x96xf32> to vector<2x32xf32>
    %121 = arith.mulf %120, %84 : vector<2x32xf32>
    %122 = vector.extract_strided_slice %117 {offsets = [0, 0], sizes = [2, 32], strides = [1, 1]} : vector<2x96xf32> to vector<2x32xf32>
    %123 = arith.mulf %122, %119 : vector<2x32xf32>
    %124 = arith.addf %121, %123 : vector<2x32xf32>
    %125 = vector.extract_strided_slice %117 {offsets = [0, 64], sizes = [2, 32], strides = [1, 1]} : vector<2x96xf32> to vector<2x32xf32>
    %126 = math.tanh %124 : vector<2x32xf32>
    %127 = arith.mulf %125, %126 : vector<2x32xf32>
    %c4 = arith.constant 4 : index
    %c0_25 = arith.constant 0 : index
    %128 = vector.load %arg11[%c4, %c0_25] : memref<16x32xf32, #tpu.memory_space<vmem>>, vector<2x32xf32>
    tpu.vector_store %arg11[%c4, %c0_25], %108 {strides = array<i32>} : memref<16x32xf32, #tpu.memory_space<vmem>>, vector<2x32xf32>,
    %c10 = arith.constant 10 : index
    %c0_26 = arith.constant 0 : index
    %129 = vector.load %arg12[%c10, %c0_26] : memref<16x32xf32, #tpu.memory_space<vmem>>, vector<2x32xf32>
    tpu.vector_store %arg12[%c10, %c0_26], %127 {strides = array<i32>} : memref<16x32xf32, #tpu.memory_space<vmem>>, vector<2x32xf32>,
    %130 = vector.extract_strided_slice %6 {offsets = [6, 0], sizes = [2, 128], strides = [1, 1]} : vector<16x256xf32> to vector<2x128xf32>
    %cst_27 = arith.constant dense<0.000000e+00> : vector<2x128xf32>
    %131 = tpu.matmul %108, %8, %cst_27 {dimension_numbers = #tpu.dot_dimension_numbers<[1], [0], [0], [1], [0, 0, 1, 1], [], []>} : vector<2x32xf32>, vector<32x128xf32>, vector<2x128xf32> -> vector<2x128xf32>
    %132 = arith.addf %130, %131 : vector<2x128xf32>
    %133 = vector.extract_strided_slice %132 {offsets = [0, 0], sizes = [2, 96], strides = [1, 1]} : vector<2x128xf32> to vector<2x96xf32>
    %134 = arith.negf %133 : vector<2x96xf32>
    %135 = math.exp %134 : vector<2x96xf32>
    %cst_28 = arith.constant 1.000000e+00 : f32
    %136 = vector.broadcast %cst_28 : f32 to vector<2x96xf32>
    %137 = arith.addf %136, %135 : vector<2x96xf32>
    %138 = arith.divf %136, %137 : vector<2x96xf32>
    %139 = vector.extract_strided_slice %132 {offsets = [0, 96], sizes = [2, 32], strides = [1, 1]} : vector<2x128xf32> to vector<2x32xf32>
    %140 = math.tanh %139 : vector<2x32xf32>
    %141 = vector.extract_strided_slice %138 {offsets = [0, 32], sizes = [2, 32], strides = [1, 1]} : vector<2x96xf32> to vector<2x32xf32>
    %142 = arith.mulf %141, %105 : vector<2x32xf32>
    %143 = vector.extract_strided_slice %138 {offsets = [0, 0], sizes = [2, 32], strides = [1, 1]} : vector<2x96xf32> to vector<2x32xf32>
    %144 = arith.mulf %143, %140 : vector<2x32xf32>
    %145 = arith.addf %142, %144 : vector<2x32xf32>
    %146 = vector.extract_strided_slice %138 {offsets = [0, 64], sizes = [2, 32], strides = [1, 1]} : vector<2x96xf32> to vector<2x32xf32>
    %147 = math.tanh %145 : vector<2x32xf32>
    %148 = arith.mulf %146, %147 : vector<2x32xf32>
    %149 = vector.extract_strided_slice %6 {offsets = [8, 128], sizes = [2, 128], strides = [1, 1]} : vector<16x256xf32> to vector<2x128xf32>
    %cst_29 = arith.constant dense<0.000000e+00> : vector<2x128xf32>
    %150 = tpu.matmul %127, %9, %cst_29 {dimension_numbers = #tpu.dot_dimension_numbers<[1], [0], [0], [1], [0, 0, 1, 1], [], []>} : vector<2x32xf32>, vector<32x128xf32>, vector<2x128xf32> -> vector<2x128xf32>
    %151 = arith.addf %149, %150 : vector<2x128xf32>
    %152 = vector.extract_strided_slice %151 {offsets = [0, 0], sizes = [2, 96], strides = [1, 1]} : vector<2x128xf32> to vector<2x96xf32>
    %153 = arith.negf %152 : vector<2x96xf32>
    %154 = math.exp %153 : vector<2x96xf32>
    %cst_30 = arith.constant 1.000000e+00 : f32
    %155 = vector.broadcast %cst_30 : f32 to vector<2x96xf32>
    %156 = arith.addf %155, %154 : vector<2x96xf32>
    %157 = arith.divf %155, %156 : vector<2x96xf32>
    %158 = vector.extract_strided_slice %151 {offsets = [0, 96], sizes = [2, 32], strides = [1, 1]} : vector<2x128xf32> to vector<2x32xf32>
    %159 = math.tanh %158 : vector<2x32xf32>
    %160 = vector.extract_strided_slice %157 {offsets = [0, 32], sizes = [2, 32], strides = [1, 1]} : vector<2x96xf32> to vector<2x32xf32>
    %161 = arith.mulf %160, %124 : vector<2x32xf32>
    %162 = vector.extract_strided_slice %157 {offsets = [0, 0], sizes = [2, 32], strides = [1, 1]} : vector<2x96xf32> to vector<2x32xf32>
    %163 = arith.mulf %162, %159 : vector<2x32xf32>
    %164 = arith.addf %161, %163 : vector<2x32xf32>
    %165 = vector.extract_strided_slice %157 {offsets = [0, 64], sizes = [2, 32], strides = [1, 1]} : vector<2x96xf32> to vector<2x32xf32>
    %166 = math.tanh %164 : vector<2x32xf32>
    %167 = arith.mulf %165, %166 : vector<2x32xf32>
    %c6 = arith.constant 6 : index
    %c0_31 = arith.constant 0 : index
    %168 = vector.load %arg11[%c6, %c0_31] : memref<16x32xf32, #tpu.memory_space<vmem>>, vector<2x32xf32>
    tpu.vector_store %arg11[%c6, %c0_31], %148 {strides = array<i32>} : memref<16x32xf32, #tpu.memory_space<vmem>>, vector<2x32xf32>,
    %c8 = arith.constant 8 : index
    %c0_32 = arith.constant 0 : index
    %169 = vector.load %arg12[%c8, %c0_32] : memref<16x32xf32, #tpu.memory_space<vmem>>, vector<2x32xf32>
    tpu.vector_store %arg12[%c8, %c0_32], %167 {strides = array<i32>} : memref<16x32xf32, #tpu.memory_space<vmem>>, vector<2x32xf32>,
    %170 = vector.extract_strided_slice %6 {offsets = [8, 0], sizes = [2, 128], strides = [1, 1]} : vector<16x256xf32> to vector<2x128xf32>
    %cst_33 = arith.constant dense<0.000000e+00> : vector<2x128xf32>
    %171 = tpu.matmul %148, %8, %cst_33 {dimension_numbers = #tpu.dot_dimension_numbers<[1], [0], [0], [1], [0, 0, 1, 1], [], []>} : vector<2x32xf32>, vector<32x128xf32>, vector<2x128xf32> -> vector<2x128xf32>
    %172 = arith.addf %170, %171 : vector<2x128xf32>
    %173 = vector.extract_strided_slice %172 {offsets = [0, 0], sizes = [2, 96], strides = [1, 1]} : vector<2x128xf32> to vector<2x96xf32>
    %174 = arith.negf %173 : vector<2x96xf32>
    %175 = math.exp %174 : vector<2x96xf32>
    %cst_34 = arith.constant 1.000000e+00 : f32
    %176 = vector.broadcast %cst_34 : f32 to vector<2x96xf32>
    %177 = arith.addf %176, %175 : vector<2x96xf32>
    %178 = arith.divf %176, %177 : vector<2x96xf32>
    %179 = vector.extract_strided_slice %172 {offsets = [0, 96], sizes = [2, 32], strides = [1, 1]} : vector<2x128xf32> to vector<2x32xf32>
    %180 = math.tanh %179 : vector<2x32xf32>
    %181 = vector.extract_strided_slice %178 {offsets = [0, 32], sizes = [2, 32], strides = [1, 1]} : vector<2x96xf32> to vector<2x32xf32>
    %182 = arith.mulf %181, %145 : vector<2x32xf32>
    %183 = vector.extract_strided_slice %178 {offsets = [0, 0], sizes = [2, 32], strides = [1, 1]} : vector<2x96xf32> to vector<2x32xf32>
    %184 = arith.mulf %183, %180 : vector<2x32xf32>
    %185 = arith.addf %182, %184 : vector<2x32xf32>
    %186 = vector.extract_strided_slice %178 {offsets = [0, 64], sizes = [2, 32], strides = [1, 1]} : vector<2x96xf32> to vector<2x32xf32>
    %187 = math.tanh %185 : vector<2x32xf32>
    %188 = arith.mulf %186, %187 : vector<2x32xf32>
    %189 = vector.extract_strided_slice %6 {offsets = [6, 128], sizes = [2, 128], strides = [1, 1]} : vector<16x256xf32> to vector<2x128xf32>
    %cst_35 = arith.constant dense<0.000000e+00> : vector<2x128xf32>
    %190 = tpu.matmul %167, %9, %cst_35 {dimension_numbers = #tpu.dot_dimension_numbers<[1], [0], [0], [1], [0, 0, 1, 1], [], []>} : vector<2x32xf32>, vector<32x128xf32>, vector<2x128xf32> -> vector<2x128xf32>
    %191 = arith.addf %189, %190 : vector<2x128xf32>
    %192 = vector.extract_strided_slice %191 {offsets = [0, 0], sizes = [2, 96], strides = [1, 1]} : vector<2x128xf32> to vector<2x96xf32>
    %193 = arith.negf %192 : vector<2x96xf32>
    %194 = math.exp %193 : vector<2x96xf32>
    %cst_36 = arith.constant 1.000000e+00 : f32
    %195 = vector.broadcast %cst_36 : f32 to vector<2x96xf32>
    %196 = arith.addf %195, %194 : vector<2x96xf32>
    %197 = arith.divf %195, %196 : vector<2x96xf32>
    %198 = vector.extract_strided_slice %191 {offsets = [0, 96], sizes = [2, 32], strides = [1, 1]} : vector<2x128xf32> to vector<2x32xf32>
    %199 = math.tanh %198 : vector<2x32xf32>
    %200 = vector.extract_strided_slice %197 {offsets = [0, 32], sizes = [2, 32], strides = [1, 1]} : vector<2x96xf32> to vector<2x32xf32>
    %201 = arith.mulf %200, %164 : vector<2x32xf32>
    %202 = vector.extract_strided_slice %197 {offsets = [0, 0], sizes = [2, 32], strides = [1, 1]} : vector<2x96xf32> to vector<2x32xf32>
    %203 = arith.mulf %202, %199 : vector<2x32xf32>
    %204 = arith.addf %201, %203 : vector<2x32xf32>
    %205 = vector.extract_strided_slice %197 {offsets = [0, 64], sizes = [2, 32], strides = [1, 1]} : vector<2x96xf32> to vector<2x32xf32>
    %206 = math.tanh %204 : vector<2x32xf32>
    %207 = arith.mulf %205, %206 : vector<2x32xf32>
    %c8_37 = arith.constant 8 : index
    %c0_38 = arith.constant 0 : index
    %208 = vector.load %arg11[%c8_37, %c0_38] : memref<16x32xf32, #tpu.memory_space<vmem>>, vector<2x32xf32>
    tpu.vector_store %arg11[%c8_37, %c0_38], %188 {strides = array<i32>} : memref<16x32xf32, #tpu.memory_space<vmem>>, vector<2x32xf32>,
    %c6_39 = arith.constant 6 : index
    %c0_40 = arith.constant 0 : index
    %209 = vector.load %arg12[%c6_39, %c0_40] : memref<16x32xf32, #tpu.memory_space<vmem>>, vector<2x32xf32>
    tpu.vector_store %arg12[%c6_39, %c0_40], %207 {strides = array<i32>} : memref<16x32xf32, #tpu.memory_space<vmem>>, vector<2x32xf32>,
    %210 = vector.extract_strided_slice %6 {offsets = [10, 0], sizes = [2, 128], strides = [1, 1]} : vector<16x256xf32> to vector<2x128xf32>
    %cst_41 = arith.constant dense<0.000000e+00> : vector<2x128xf32>
    %211 = tpu.matmul %188, %8, %cst_41 {dimension_numbers = #tpu.dot_dimension_numbers<[1], [0], [0], [1], [0, 0, 1, 1], [], []>} : vector<2x32xf32>, vector<32x128xf32>, vector<2x128xf32> -> vector<2x128xf32>
    %212 = arith.addf %210, %211 : vector<2x128xf32>
    %213 = vector.extract_strided_slice %212 {offsets = [0, 0], sizes = [2, 96], strides = [1, 1]} : vector<2x128xf32> to vector<2x96xf32>
    %214 = arith.negf %213 : vector<2x96xf32>
    %215 = math.exp %214 : vector<2x96xf32>
    %cst_42 = arith.constant 1.000000e+00 : f32
    %216 = vector.broadcast %cst_42 : f32 to vector<2x96xf32>
    %217 = arith.addf %216, %215 : vector<2x96xf32>
    %218 = arith.divf %216, %217 : vector<2x96xf32>
    %219 = vector.extract_strided_slice %212 {offsets = [0, 96], sizes = [2, 32], strides = [1, 1]} : vector<2x128xf32> to vector<2x32xf32>
    %220 = math.tanh %219 : vector<2x32xf32>
    %221 = vector.extract_strided_slice %218 {offsets = [0, 32], sizes = [2, 32], strides = [1, 1]} : vector<2x96xf32> to vector<2x32xf32>
    %222 = arith.mulf %221, %185 : vector<2x32xf32>
    %223 = vector.extract_strided_slice %218 {offsets = [0, 0], sizes = [2, 32], strides = [1, 1]} : vector<2x96xf32> to vector<2x32xf32>
    %224 = arith.mulf %223, %220 : vector<2x32xf32>
    %225 = arith.addf %222, %224 : vector<2x32xf32>
    %226 = vector.extract_strided_slice %218 {offsets = [0, 64], sizes = [2, 32], strides = [1, 1]} : vector<2x96xf32> to vector<2x32xf32>
    %227 = math.tanh %225 : vector<2x32xf32>
    %228 = arith.mulf %226, %227 : vector<2x32xf32>
    %229 = vector.extract_strided_slice %6 {offsets = [4, 128], sizes = [2, 128], strides = [1, 1]} : vector<16x256xf32> to vector<2x128xf32>
    %cst_43 = arith.constant dense<0.000000e+00> : vector<2x128xf32>
    %230 = tpu.matmul %207, %9, %cst_43 {dimension_numbers = #tpu.dot_dimension_numbers<[1], [0], [0], [1], [0, 0, 1, 1], [], []>} : vector<2x32xf32>, vector<32x128xf32>, vector<2x128xf32> -> vector<2x128xf32>
    %231 = arith.addf %229, %230 : vector<2x128xf32>
    %232 = vector.extract_strided_slice %231 {offsets = [0, 0], sizes = [2, 96], strides = [1, 1]} : vector<2x128xf32> to vector<2x96xf32>
    %233 = arith.negf %232 : vector<2x96xf32>
    %234 = math.exp %233 : vector<2x96xf32>
    %cst_44 = arith.constant 1.000000e+00 : f32
    %235 = vector.broadcast %cst_44 : f32 to vector<2x96xf32>
    %236 = arith.addf %235, %234 : vector<2x96xf32>
    %237 = arith.divf %235, %236 : vector<2x96xf32>
    %238 = vector.extract_strided_slice %231 {offsets = [0, 96], sizes = [2, 32], strides = [1, 1]} : vector<2x128xf32> to vector<2x32xf32>
    %239 = math.tanh %238 : vector<2x32xf32>
    %240 = vector.extract_strided_slice %237 {offsets = [0, 32], sizes = [2, 32], strides = [1, 1]} : vector<2x96xf32> to vector<2x32xf32>
    %241 = arith.mulf %240, %204 : vector<2x32xf32>
    %242 = vector.extract_strided_slice %237 {offsets = [0, 0], sizes = [2, 32], strides = [1, 1]} : vector<2x96xf32> to vector<2x32xf32>
    %243 = arith.mulf %242, %239 : vector<2x32xf32>
    %244 = arith.addf %241, %243 : vector<2x32xf32>
    %245 = vector.extract_strided_slice %237 {offsets = [0, 64], sizes = [2, 32], strides = [1, 1]} : vector<2x96xf32> to vector<2x32xf32>
    %246 = math.tanh %244 : vector<2x32xf32>
    %247 = arith.mulf %245, %246 : vector<2x32xf32>
    %c10_45 = arith.constant 10 : index
    %c0_46 = arith.constant 0 : index
    %248 = vector.load %arg11[%c10_45, %c0_46] : memref<16x32xf32, #tpu.memory_space<vmem>>, vector<2x32xf32>
    tpu.vector_store %arg11[%c10_45, %c0_46], %228 {strides = array<i32>} : memref<16x32xf32, #tpu.memory_space<vmem>>, vector<2x32xf32>,
    %c4_47 = arith.constant 4 : index
    %c0_48 = arith.constant 0 : index
    %249 = vector.load %arg12[%c4_47, %c0_48] : memref<16x32xf32, #tpu.memory_space<vmem>>, vector<2x32xf32>
    tpu.vector_store %arg12[%c4_47, %c0_48], %247 {strides = array<i32>} : memref<16x32xf32, #tpu.memory_space<vmem>>, vector<2x32xf32>,
    %250 = vector.extract_strided_slice %6 {offsets = [12, 0], sizes = [2, 128], strides = [1, 1]} : vector<16x256xf32> to vector<2x128xf32>
    %cst_49 = arith.constant dense<0.000000e+00> : vector<2x128xf32>
    %251 = tpu.matmul %228, %8, %cst_49 {dimension_numbers = #tpu.dot_dimension_numbers<[1], [0], [0], [1], [0, 0, 1, 1], [], []>} : vector<2x32xf32>, vector<32x128xf32>, vector<2x128xf32> -> vector<2x128xf32>
    %252 = arith.addf %250, %251 : vector<2x128xf32>
    %253 = vector.extract_strided_slice %252 {offsets = [0, 0], sizes = [2, 96], strides = [1, 1]} : vector<2x128xf32> to vector<2x96xf32>
    %254 = arith.negf %253 : vector<2x96xf32>
    %255 = math.exp %254 : vector<2x96xf32>
    %cst_50 = arith.constant 1.000000e+00 : f32
    %256 = vector.broadcast %cst_50 : f32 to vector<2x96xf32>
    %257 = arith.addf %256, %255 : vector<2x96xf32>
    %258 = arith.divf %256, %257 : vector<2x96xf32>
    %259 = vector.extract_strided_slice %252 {offsets = [0, 96], sizes = [2, 32], strides = [1, 1]} : vector<2x128xf32> to vector<2x32xf32>
    %260 = math.tanh %259 : vector<2x32xf32>
    %261 = vector.extract_strided_slice %258 {offsets = [0, 32], sizes = [2, 32], strides = [1, 1]} : vector<2x96xf32> to vector<2x32xf32>
    %262 = arith.mulf %261, %225 : vector<2x32xf32>
    %263 = vector.extract_strided_slice %258 {offsets = [0, 0], sizes = [2, 32], strides = [1, 1]} : vector<2x96xf32> to vector<2x32xf32>
    %264 = arith.mulf %263, %260 : vector<2x32xf32>
    %265 = arith.addf %262, %264 : vector<2x32xf32>
    %266 = vector.extract_strided_slice %258 {offsets = [0, 64], sizes = [2, 32], strides = [1, 1]} : vector<2x96xf32> to vector<2x32xf32>
    %267 = math.tanh %265 : vector<2x32xf32>
    %268 = arith.mulf %266, %267 : vector<2x32xf32>
    %269 = vector.extract_strided_slice %6 {offsets = [2, 128], sizes = [2, 128], strides = [1, 1]} : vector<16x256xf32> to vector<2x128xf32>
    %cst_51 = arith.constant dense<0.000000e+00> : vector<2x128xf32>
    %270 = tpu.matmul %247, %9, %cst_51 {dimension_numbers = #tpu.dot_dimension_numbers<[1], [0], [0], [1], [0, 0, 1, 1], [], []>} : vector<2x32xf32>, vector<32x128xf32>, vector<2x128xf32> -> vector<2x128xf32>
    %271 = arith.addf %269, %270 : vector<2x128xf32>
    %272 = vector.extract_strided_slice %271 {offsets = [0, 0], sizes = [2, 96], strides = [1, 1]} : vector<2x128xf32> to vector<2x96xf32>
    %273 = arith.negf %272 : vector<2x96xf32>
    %274 = math.exp %273 : vector<2x96xf32>
    %cst_52 = arith.constant 1.000000e+00 : f32
    %275 = vector.broadcast %cst_52 : f32 to vector<2x96xf32>
    %276 = arith.addf %275, %274 : vector<2x96xf32>
    %277 = arith.divf %275, %276 : vector<2x96xf32>
    %278 = vector.extract_strided_slice %271 {offsets = [0, 96], sizes = [2, 32], strides = [1, 1]} : vector<2x128xf32> to vector<2x32xf32>
    %279 = math.tanh %278 : vector<2x32xf32>
    %280 = vector.extract_strided_slice %277 {offsets = [0, 32], sizes = [2, 32], strides = [1, 1]} : vector<2x96xf32> to vector<2x32xf32>
    %281 = arith.mulf %280, %244 : vector<2x32xf32>
    %282 = vector.extract_strided_slice %277 {offsets = [0, 0], sizes = [2, 32], strides = [1, 1]} : vector<2x96xf32> to vector<2x32xf32>
    %283 = arith.mulf %282, %279 : vector<2x32xf32>
    %284 = arith.addf %281, %283 : vector<2x32xf32>
    %285 = vector.extract_strided_slice %277 {offsets = [0, 64], sizes = [2, 32], strides = [1, 1]} : vector<2x96xf32> to vector<2x32xf32>
    %286 = math.tanh %284 : vector<2x32xf32>
    %287 = arith.mulf %285, %286 : vector<2x32xf32>
    %c12_53 = arith.constant 12 : index
    %c0_54 = arith.constant 0 : index
    %288 = vector.load %arg11[%c12_53, %c0_54] : memref<16x32xf32, #tpu.memory_space<vmem>>, vector<2x32xf32>
    tpu.vector_store %arg11[%c12_53, %c0_54], %268 {strides = array<i32>} : memref<16x32xf32, #tpu.memory_space<vmem>>, vector<2x32xf32>,
    %c2_55 = arith.constant 2 : index
    %c0_56 = arith.constant 0 : index
    %289 = vector.load %arg12[%c2_55, %c0_56] : memref<16x32xf32, #tpu.memory_space<vmem>>, vector<2x32xf32>
    tpu.vector_store %arg12[%c2_55, %c0_56], %287 {strides = array<i32>} : memref<16x32xf32, #tpu.memory_space<vmem>>, vector<2x32xf32>,
    %290 = vector.extract_strided_slice %6 {offsets = [14, 0], sizes = [2, 128], strides = [1, 1]} : vector<16x256xf32> to vector<2x128xf32>
    %cst_57 = arith.constant dense<0.000000e+00> : vector<2x128xf32>
    %291 = tpu.matmul %268, %8, %cst_57 {dimension_numbers = #tpu.dot_dimension_numbers<[1], [0], [0], [1], [0, 0, 1, 1], [], []>} : vector<2x32xf32>, vector<32x128xf32>, vector<2x128xf32> -> vector<2x128xf32>
    %292 = arith.addf %290, %291 : vector<2x128xf32>
    %293 = vector.extract_strided_slice %292 {offsets = [0, 0], sizes = [2, 96], strides = [1, 1]} : vector<2x128xf32> to vector<2x96xf32>
    %294 = arith.negf %293 : vector<2x96xf32>
    %295 = math.exp %294 : vector<2x96xf32>
    %cst_58 = arith.constant 1.000000e+00 : f32
    %296 = vector.broadcast %cst_58 : f32 to vector<2x96xf32>
    %297 = arith.addf %296, %295 : vector<2x96xf32>
    %298 = arith.divf %296, %297 : vector<2x96xf32>
    %299 = vector.extract_strided_slice %292 {offsets = [0, 96], sizes = [2, 32], strides = [1, 1]} : vector<2x128xf32> to vector<2x32xf32>
    %300 = math.tanh %299 : vector<2x32xf32>
    %301 = vector.extract_strided_slice %298 {offsets = [0, 32], sizes = [2, 32], strides = [1, 1]} : vector<2x96xf32> to vector<2x32xf32>
    %302 = arith.mulf %301, %265 : vector<2x32xf32>
    %303 = vector.extract_strided_slice %298 {offsets = [0, 0], sizes = [2, 32], strides = [1, 1]} : vector<2x96xf32> to vector<2x32xf32>
    %304 = arith.mulf %303, %300 : vector<2x32xf32>
    %305 = arith.addf %302, %304 : vector<2x32xf32>
    %306 = vector.extract_strided_slice %298 {offsets = [0, 64], sizes = [2, 32], strides = [1, 1]} : vector<2x96xf32> to vector<2x32xf32>
    %307 = math.tanh %305 : vector<2x32xf32>
    %308 = arith.mulf %306, %307 : vector<2x32xf32>
    %309 = vector.extract_strided_slice %6 {offsets = [0, 128], sizes = [2, 128], strides = [1, 1]} : vector<16x256xf32> to vector<2x128xf32>
    %cst_59 = arith.constant dense<0.000000e+00> : vector<2x128xf32>
    %310 = tpu.matmul %287, %9, %cst_59 {dimension_numbers = #tpu.dot_dimension_numbers<[1], [0], [0], [1], [0, 0, 1, 1], [], []>} : vector<2x32xf32>, vector<32x128xf32>, vector<2x128xf32> -> vector<2x128xf32>
    %311 = arith.addf %309, %310 : vector<2x128xf32>
    %312 = vector.extract_strided_slice %311 {offsets = [0, 0], sizes = [2, 96], strides = [1, 1]} : vector<2x128xf32> to vector<2x96xf32>
    %313 = arith.negf %312 : vector<2x96xf32>
    %314 = math.exp %313 : vector<2x96xf32>
    %cst_60 = arith.constant 1.000000e+00 : f32
    %315 = vector.broadcast %cst_60 : f32 to vector<2x96xf32>
    %316 = arith.addf %315, %314 : vector<2x96xf32>
    %317 = arith.divf %315, %316 : vector<2x96xf32>
    %318 = vector.extract_strided_slice %311 {offsets = [0, 96], sizes = [2, 32], strides = [1, 1]} : vector<2x128xf32> to vector<2x32xf32>
    %319 = math.tanh %318 : vector<2x32xf32>
    %320 = vector.extract_strided_slice %317 {offsets = [0, 32], sizes = [2, 32], strides = [1, 1]} : vector<2x96xf32> to vector<2x32xf32>
    %321 = arith.mulf %320, %284 : vector<2x32xf32>
    %322 = vector.extract_strided_slice %317 {offsets = [0, 0], sizes = [2, 32], strides = [1, 1]} : vector<2x96xf32> to vector<2x32xf32>
    %323 = arith.mulf %322, %319 : vector<2x32xf32>
    %324 = arith.addf %321, %323 : vector<2x32xf32>
    %325 = vector.extract_strided_slice %317 {offsets = [0, 64], sizes = [2, 32], strides = [1, 1]} : vector<2x96xf32> to vector<2x32xf32>
    %326 = math.tanh %324 : vector<2x32xf32>
    %327 = arith.mulf %325, %326 : vector<2x32xf32>
    %c14_61 = arith.constant 14 : index
    %c0_62 = arith.constant 0 : index
    %328 = vector.load %arg11[%c14_61, %c0_62] : memref<16x32xf32, #tpu.memory_space<vmem>>, vector<2x32xf32>
    tpu.vector_store %arg11[%c14_61, %c0_62], %308 {strides = array<i32>} : memref<16x32xf32, #tpu.memory_space<vmem>>, vector<2x32xf32>,
    %c0_63 = arith.constant 0 : index
    %c0_64 = arith.constant 0 : index
    %329 = vector.load %arg12[%c0_63, %c0_64] : memref<16x32xf32, #tpu.memory_space<vmem>>, vector<2x32xf32>
    tpu.vector_store %arg12[%c0_63, %c0_64], %327 {strides = array<i32>} : memref<16x32xf32, #tpu.memory_space<vmem>>, vector<2x32xf32>,
    %c0_65 = arith.constant 0 : index
    %c0_66 = arith.constant 0 : index
    %330 = vector.load %arg4[%c0_65, %c0_66] : memref<64x256xf32, #tpu.memory_space<vmem>>, vector<64x256xf32>
    %c0_67 = arith.constant 0 : index
    %c0_68 = arith.constant 0 : index
    %331 = vector.load %arg11[%c0_67, %c0_68] : memref<16x32xf32, #tpu.memory_space<vmem>>, vector<16x32xf32>
    %332 = vector.extract_strided_slice %330 {offsets = [0, 0], sizes = [32, 256], strides = [1, 1]} : vector<64x256xf32> to vector<32x256xf32>
    %cst_69 = arith.constant dense<0.000000e+00> : vector<16x256xf32>
    %333 = tpu.matmul %331, %332, %cst_69 {dimension_numbers = #tpu.dot_dimension_numbers<[1], [0], [0], [1], [0, 0, 1, 1], [], []>} : vector<16x32xf32>, vector<32x256xf32>, vector<16x256xf32> -> vector<16x256xf32>
    %c0_70 = arith.constant 0 : index
    %c0_71 = arith.constant 0 : index
    %334 = vector.load %arg12[%c0_70, %c0_71] : memref<16x32xf32, #tpu.memory_space<vmem>>, vector<16x32xf32>
    %335 = vector.extract_strided_slice %330 {offsets = [32, 0], sizes = [32, 256], strides = [1, 1]} : vector<64x256xf32> to vector<32x256xf32>
    %cst_72 = arith.constant dense<0.000000e+00> : vector<16x256xf32>
    %336 = tpu.matmul %334, %335, %cst_72 {dimension_numbers = #tpu.dot_dimension_numbers<[1], [0], [0], [1], [0, 0, 1, 1], [], []>} : vector<16x32xf32>, vector<32x256xf32>, vector<16x256xf32> -> vector<16x256xf32>
    %337 = arith.addf %333, %336 : vector<16x256xf32>
    %c0_73 = arith.constant 0 : index
    %c0_74 = arith.constant 0 : index
    %338 = vector.load %arg6[%c0_73, %c0_74] : memref<1x256xf32, #tpu.memory_space<vmem>>, vector<1x256xf32>
    %339 = vector.broadcast %338 : vector<1x256xf32> to vector<16x256xf32>
    %340 = arith.addf %337, %339 : vector<16x256xf32>
    %c0_75 = arith.constant 0 : index
    %c0_76 = arith.constant 0 : index
    %341 = vector.load %arg5[%c0_75, %c0_76] : memref<32x256xf32, #tpu.memory_space<vmem>>, vector<32x256xf32>
    %342 = vector.extract_strided_slice %341 {offsets = [0, 0], sizes = [32, 128], strides = [1, 1]} : vector<32x256xf32> to vector<32x128xf32>
    %343 = vector.extract_strided_slice %341 {offsets = [0, 128], sizes = [32, 128], strides = [1, 1]} : vector<32x256xf32> to vector<32x128xf32>
    %344 = vector.extract_strided_slice %340 {offsets = [0, 0], sizes = [2, 128], strides = [1, 1]} : vector<16x256xf32> to vector<2x128xf32>
    %cst_77 = arith.constant dense<0.000000e+00> : vector<2x128xf32>
    %345 = tpu.matmul %0, %342, %cst_77 {dimension_numbers = #tpu.dot_dimension_numbers<[1], [0], [0], [1], [0, 0, 1, 1], [], []>} : vector<2x32xf32>, vector<32x128xf32>, vector<2x128xf32> -> vector<2x128xf32>
    %346 = arith.addf %344, %345 : vector<2x128xf32>
    %347 = vector.extract_strided_slice %346 {offsets = [0, 0], sizes = [2, 96], strides = [1, 1]} : vector<2x128xf32> to vector<2x96xf32>
    %348 = arith.negf %347 : vector<2x96xf32>
    %349 = math.exp %348 : vector<2x96xf32>
    %cst_78 = arith.constant 1.000000e+00 : f32
    %350 = vector.broadcast %cst_78 : f32 to vector<2x96xf32>
    %351 = arith.addf %350, %349 : vector<2x96xf32>
    %352 = arith.divf %350, %351 : vector<2x96xf32>
    %353 = vector.extract_strided_slice %346 {offsets = [0, 96], sizes = [2, 32], strides = [1, 1]} : vector<2x128xf32> to vector<2x32xf32>
    %354 = math.tanh %353 : vector<2x32xf32>
    %355 = vector.extract_strided_slice %352 {offsets = [0, 32], sizes = [2, 32], strides = [1, 1]} : vector<2x96xf32> to vector<2x32xf32>
    %356 = arith.mulf %355, %0 : vector<2x32xf32>
    %357 = vector.extract_strided_slice %352 {offsets = [0, 0], sizes = [2, 32], strides = [1, 1]} : vector<2x96xf32> to vector<2x32xf32>
    %358 = arith.mulf %357, %354 : vector<2x32xf32>
    %359 = arith.addf %356, %358 : vector<2x32xf32>
    %360 = vector.extract_strided_slice %352 {offsets = [0, 64], sizes = [2, 32], strides = [1, 1]} : vector<2x96xf32> to vector<2x32xf32>
    %361 = math.tanh %359 : vector<2x32xf32>
    %362 = arith.mulf %360, %361 : vector<2x32xf32>
    %363 = vector.extract_strided_slice %340 {offsets = [14, 128], sizes = [2, 128], strides = [1, 1]} : vector<16x256xf32> to vector<2x128xf32>
    %cst_79 = arith.constant dense<0.000000e+00> : vector<2x128xf32>
    %364 = tpu.matmul %0, %343, %cst_79 {dimension_numbers = #tpu.dot_dimension_numbers<[1], [0], [0], [1], [0, 0, 1, 1], [], []>} : vector<2x32xf32>, vector<32x128xf32>, vector<2x128xf32> -> vector<2x128xf32>
    %365 = arith.addf %363, %364 : vector<2x128xf32>
    %366 = vector.extract_strided_slice %365 {offsets = [0, 0], sizes = [2, 96], strides = [1, 1]} : vector<2x128xf32> to vector<2x96xf32>
    %367 = arith.negf %366 : vector<2x96xf32>
    %368 = math.exp %367 : vector<2x96xf32>
    %cst_80 = arith.constant 1.000000e+00 : f32
    %369 = vector.broadcast %cst_80 : f32 to vector<2x96xf32>
    %370 = arith.addf %369, %368 : vector<2x96xf32>
    %371 = arith.divf %369, %370 : vector<2x96xf32>
    %372 = vector.extract_strided_slice %365 {offsets = [0, 96], sizes = [2, 32], strides = [1, 1]} : vector<2x128xf32> to vector<2x32xf32>
    %373 = math.tanh %372 : vector<2x32xf32>
    %374 = vector.extract_strided_slice %371 {offsets = [0, 32], sizes = [2, 32], strides = [1, 1]} : vector<2x96xf32> to vector<2x32xf32>
    %375 = arith.mulf %374, %0 : vector<2x32xf32>
    %376 = vector.extract_strided_slice %371 {offsets = [0, 0], sizes = [2, 32], strides = [1, 1]} : vector<2x96xf32> to vector<2x32xf32>
    %377 = arith.mulf %376, %373 : vector<2x32xf32>
    %378 = arith.addf %375, %377 : vector<2x32xf32>
    %379 = vector.extract_strided_slice %371 {offsets = [0, 64], sizes = [2, 32], strides = [1, 1]} : vector<2x96xf32> to vector<2x32xf32>
    %380 = math.tanh %378 : vector<2x32xf32>
    %381 = arith.mulf %379, %380 : vector<2x32xf32>
    %c0_81 = arith.constant 0 : index
    %c0_82 = arith.constant 0 : index
    %c0_83 = arith.constant 0 : index
    %382 = vector.load %arg13[%c0_81, %c0_82, %c0_83] : memref<8x2x32xf32, #tpu.memory_space<vmem>>, vector<1x2x32xf32>
    %383 = vector.shape_cast %382 : vector<1x2x32xf32> to vector<2x32xf32>
    %384 = vector.shape_cast %362 : vector<2x32xf32> to vector<1x2x32xf32>
    tpu.vector_store %arg13[%c0_81, %c0_82, %c0_83], %384 {strides = array<i32>} : memref<8x2x32xf32, #tpu.memory_space<vmem>>, vector<1x2x32xf32>,
    %c7 = arith.constant 7 : index
    %c0_84 = arith.constant 0 : index
    %c0_85 = arith.constant 0 : index
    %385 = vector.load %arg14[%c7, %c0_84, %c0_85] : memref<8x2x32xf32, #tpu.memory_space<vmem>>, vector<1x2x32xf32>
    %386 = vector.shape_cast %385 : vector<1x2x32xf32> to vector<2x32xf32>
    %387 = vector.shape_cast %381 : vector<2x32xf32> to vector<1x2x32xf32>
    tpu.vector_store %arg14[%c7, %c0_84, %c0_85], %387 {strides = array<i32>} : memref<8x2x32xf32, #tpu.memory_space<vmem>>, vector<1x2x32xf32>,
    %388 = vector.extract_strided_slice %340 {offsets = [2, 0], sizes = [2, 128], strides = [1, 1]} : vector<16x256xf32> to vector<2x128xf32>
    %cst_86 = arith.constant dense<0.000000e+00> : vector<2x128xf32>
    %389 = tpu.matmul %362, %342, %cst_86 {dimension_numbers = #tpu.dot_dimension_numbers<[1], [0], [0], [1], [0, 0, 1, 1], [], []>} : vector<2x32xf32>, vector<32x128xf32>, vector<2x128xf32> -> vector<2x128xf32>
    %390 = arith.addf %388, %389 : vector<2x128xf32>
    %391 = vector.extract_strided_slice %390 {offsets = [0, 0], sizes = [2, 96], strides = [1, 1]} : vector<2x128xf32> to vector<2x96xf32>
    %392 = arith.negf %391 : vector<2x96xf32>
    %393 = math.exp %392 : vector<2x96xf32>
    %cst_87 = arith.constant 1.000000e+00 : f32
    %394 = vector.broadcast %cst_87 : f32 to vector<2x96xf32>
    %395 = arith.addf %394, %393 : vector<2x96xf32>
    %396 = arith.divf %394, %395 : vector<2x96xf32>
    %397 = vector.extract_strided_slice %390 {offsets = [0, 96], sizes = [2, 32], strides = [1, 1]} : vector<2x128xf32> to vector<2x32xf32>
    %398 = math.tanh %397 : vector<2x32xf32>
    %399 = vector.extract_strided_slice %396 {offsets = [0, 32], sizes = [2, 32], strides = [1, 1]} : vector<2x96xf32> to vector<2x32xf32>
    %400 = arith.mulf %399, %359 : vector<2x32xf32>
    %401 = vector.extract_strided_slice %396 {offsets = [0, 0], sizes = [2, 32], strides = [1, 1]} : vector<2x96xf32> to vector<2x32xf32>
    %402 = arith.mulf %401, %398 : vector<2x32xf32>
    %403 = arith.addf %400, %402 : vector<2x32xf32>
    %404 = vector.extract_strided_slice %396 {offsets = [0, 64], sizes = [2, 32], strides = [1, 1]} : vector<2x96xf32> to vector<2x32xf32>
    %405 = math.tanh %403 : vector<2x32xf32>
    %406 = arith.mulf %404, %405 : vector<2x32xf32>
    %407 = vector.extract_strided_slice %340 {offsets = [12, 128], sizes = [2, 128], strides = [1, 1]} : vector<16x256xf32> to vector<2x128xf32>
    %cst_88 = arith.constant dense<0.000000e+00> : vector<2x128xf32>
    %408 = tpu.matmul %381, %343, %cst_88 {dimension_numbers = #tpu.dot_dimension_numbers<[1], [0], [0], [1], [0, 0, 1, 1], [], []>} : vector<2x32xf32>, vector<32x128xf32>, vector<2x128xf32> -> vector<2x128xf32>
    %409 = arith.addf %407, %408 : vector<2x128xf32>
    %410 = vector.extract_strided_slice %409 {offsets = [0, 0], sizes = [2, 96], strides = [1, 1]} : vector<2x128xf32> to vector<2x96xf32>
    %411 = arith.negf %410 : vector<2x96xf32>
    %412 = math.exp %411 : vector<2x96xf32>
    %cst_89 = arith.constant 1.000000e+00 : f32
    %413 = vector.broadcast %cst_89 : f32 to vector<2x96xf32>
    %414 = arith.addf %413, %412 : vector<2x96xf32>
    %415 = arith.divf %413, %414 : vector<2x96xf32>
    %416 = vector.extract_strided_slice %409 {offsets = [0, 96], sizes = [2, 32], strides = [1, 1]} : vector<2x128xf32> to vector<2x32xf32>
    %417 = math.tanh %416 : vector<2x32xf32>
    %418 = vector.extract_strided_slice %415 {offsets = [0, 32], sizes = [2, 32], strides = [1, 1]} : vector<2x96xf32> to vector<2x32xf32>
    %419 = arith.mulf %418, %378 : vector<2x32xf32>
    %420 = vector.extract_strided_slice %415 {offsets = [0, 0], sizes = [2, 32], strides = [1, 1]} : vector<2x96xf32> to vector<2x32xf32>
    %421 = arith.mulf %420, %417 : vector<2x32xf32>
    %422 = arith.addf %419, %421 : vector<2x32xf32>
    %423 = vector.extract_strided_slice %415 {offsets = [0, 64], sizes = [2, 32], strides = [1, 1]} : vector<2x96xf32> to vector<2x32xf32>
    %424 = math.tanh %422 : vector<2x32xf32>
    %425 = arith.mulf %423, %424 : vector<2x32xf32>
    %c1 = arith.constant 1 : index
    %c0_90 = arith.constant 0 : index
    %c0_91 = arith.constant 0 : index
    %426 = vector.load %arg13[%c1, %c0_90, %c0_91] : memref<8x2x32xf32, #tpu.memory_space<vmem>>, vector<1x2x32xf32>
    %427 = vector.shape_cast %426 : vector<1x2x32xf32> to vector<2x32xf32>
    %428 = vector.shape_cast %406 : vector<2x32xf32> to vector<1x2x32xf32>
    tpu.vector_store %arg13[%c1, %c0_90, %c0_91], %428 {strides = array<i32>} : memref<8x2x32xf32, #tpu.memory_space<vmem>>, vector<1x2x32xf32>,
    %c6_92 = arith.constant 6 : index
    %c0_93 = arith.constant 0 : index
    %c0_94 = arith.constant 0 : index
    %429 = vector.load %arg14[%c6_92, %c0_93, %c0_94] : memref<8x2x32xf32, #tpu.memory_space<vmem>>, vector<1x2x32xf32>
    %430 = vector.shape_cast %429 : vector<1x2x32xf32> to vector<2x32xf32>
    %431 = vector.shape_cast %425 : vector<2x32xf32> to vector<1x2x32xf32>
    tpu.vector_store %arg14[%c6_92, %c0_93, %c0_94], %431 {strides = array<i32>} : memref<8x2x32xf32, #tpu.memory_space<vmem>>, vector<1x2x32xf32>,
    %432 = vector.extract_strided_slice %340 {offsets = [4, 0], sizes = [2, 128], strides = [1, 1]} : vector<16x256xf32> to vector<2x128xf32>
    %cst_95 = arith.constant dense<0.000000e+00> : vector<2x128xf32>
    %433 = tpu.matmul %406, %342, %cst_95 {dimension_numbers = #tpu.dot_dimension_numbers<[1], [0], [0], [1], [0, 0, 1, 1], [], []>} : vector<2x32xf32>, vector<32x128xf32>, vector<2x128xf32> -> vector<2x128xf32>
    %434 = arith.addf %432, %433 : vector<2x128xf32>
    %435 = vector.extract_strided_slice %434 {offsets = [0, 0], sizes = [2, 96], strides = [1, 1]} : vector<2x128xf32> to vector<2x96xf32>
    %436 = arith.negf %435 : vector<2x96xf32>
    %437 = math.exp %436 : vector<2x96xf32>
    %cst_96 = arith.constant 1.000000e+00 : f32
    %438 = vector.broadcast %cst_96 : f32 to vector<2x96xf32>
    %439 = arith.addf %438, %437 : vector<2x96xf32>
    %440 = arith.divf %438, %439 : vector<2x96xf32>
    %441 = vector.extract_strided_slice %434 {offsets = [0, 96], sizes = [2, 32], strides = [1, 1]} : vector<2x128xf32> to vector<2x32xf32>
    %442 = math.tanh %441 : vector<2x32xf32>
    %443 = vector.extract_strided_slice %440 {offsets = [0, 32], sizes = [2, 32], strides = [1, 1]} : vector<2x96xf32> to vector<2x32xf32>
    %444 = arith.mulf %443, %403 : vector<2x32xf32>
    %445 = vector.extract_strided_slice %440 {offsets = [0, 0], sizes = [2, 32], strides = [1, 1]} : vector<2x96xf32> to vector<2x32xf32>
    %446 = arith.mulf %445, %442 : vector<2x32xf32>
    %447 = arith.addf %444, %446 : vector<2x32xf32>
    %448 = vector.extract_strided_slice %440 {offsets = [0, 64], sizes = [2, 32], strides = [1, 1]} : vector<2x96xf32> to vector<2x32xf32>
    %449 = math.tanh %447 : vector<2x32xf32>
    %450 = arith.mulf %448, %449 : vector<2x32xf32>
    %451 = vector.extract_strided_slice %340 {offsets = [10, 128], sizes = [2, 128], strides = [1, 1]} : vector<16x256xf32> to vector<2x128xf32>
    %cst_97 = arith.constant dense<0.000000e+00> : vector<2x128xf32>
    %452 = tpu.matmul %425, %343, %cst_97 {dimension_numbers = #tpu.dot_dimension_numbers<[1], [0], [0], [1], [0, 0, 1, 1], [], []>} : vector<2x32xf32>, vector<32x128xf32>, vector<2x128xf32> -> vector<2x128xf32>
    %453 = arith.addf %451, %452 : vector<2x128xf32>
    %454 = vector.extract_strided_slice %453 {offsets = [0, 0], sizes = [2, 96], strides = [1, 1]} : vector<2x128xf32> to vector<2x96xf32>
    %455 = arith.negf %454 : vector<2x96xf32>
    %456 = math.exp %455 : vector<2x96xf32>
    %cst_98 = arith.constant 1.000000e+00 : f32
    %457 = vector.broadcast %cst_98 : f32 to vector<2x96xf32>
    %458 = arith.addf %457, %456 : vector<2x96xf32>
    %459 = arith.divf %457, %458 : vector<2x96xf32>
    %460 = vector.extract_strided_slice %453 {offsets = [0, 96], sizes = [2, 32], strides = [1, 1]} : vector<2x128xf32> to vector<2x32xf32>
    %461 = math.tanh %460 : vector<2x32xf32>
    %462 = vector.extract_strided_slice %459 {offsets = [0, 32], sizes = [2, 32], strides = [1, 1]} : vector<2x96xf32> to vector<2x32xf32>
    %463 = arith.mulf %462, %422 : vector<2x32xf32>
    %464 = vector.extract_strided_slice %459 {offsets = [0, 0], sizes = [2, 32], strides = [1, 1]} : vector<2x96xf32> to vector<2x32xf32>
    %465 = arith.mulf %464, %461 : vector<2x32xf32>
    %466 = arith.addf %463, %465 : vector<2x32xf32>
    %467 = vector.extract_strided_slice %459 {offsets = [0, 64], sizes = [2, 32], strides = [1, 1]} : vector<2x96xf32> to vector<2x32xf32>
    %468 = math.tanh %466 : vector<2x32xf32>
    %469 = arith.mulf %467, %468 : vector<2x32xf32>
    %c2_99 = arith.constant 2 : index
    %c0_100 = arith.constant 0 : index
    %c0_101 = arith.constant 0 : index
    %470 = vector.load %arg13[%c2_99, %c0_100, %c0_101] : memref<8x2x32xf32, #tpu.memory_space<vmem>>, vector<1x2x32xf32>
    %471 = vector.shape_cast %470 : vector<1x2x32xf32> to vector<2x32xf32>
    %472 = vector.shape_cast %450 : vector<2x32xf32> to vector<1x2x32xf32>
    tpu.vector_store %arg13[%c2_99, %c0_100, %c0_101], %472 {strides = array<i32>} : memref<8x2x32xf32, #tpu.memory_space<vmem>>, vector<1x2x32xf32>,
    %c5 = arith.constant 5 : index
    %c0_102 = arith.constant 0 : index
    %c0_103 = arith.constant 0 : index
    %473 = vector.load %arg14[%c5, %c0_102, %c0_103] : memref<8x2x32xf32, #tpu.memory_space<vmem>>, vector<1x2x32xf32>
    %474 = vector.shape_cast %473 : vector<1x2x32xf32> to vector<2x32xf32>
    %475 = vector.shape_cast %469 : vector<2x32xf32> to vector<1x2x32xf32>
    tpu.vector_store %arg14[%c5, %c0_102, %c0_103], %475 {strides = array<i32>} : memref<8x2x32xf32, #tpu.memory_space<vmem>>, vector<1x2x32xf32>,
    %476 = vector.extract_strided_slice %340 {offsets = [6, 0], sizes = [2, 128], strides = [1, 1]} : vector<16x256xf32> to vector<2x128xf32>
    %cst_104 = arith.constant dense<0.000000e+00> : vector<2x128xf32>
    %477 = tpu.matmul %450, %342, %cst_104 {dimension_numbers = #tpu.dot_dimension_numbers<[1], [0], [0], [1], [0, 0, 1, 1], [], []>} : vector<2x32xf32>, vector<32x128xf32>, vector<2x128xf32> -> vector<2x128xf32>
    %478 = arith.addf %476, %477 : vector<2x128xf32>
    %479 = vector.extract_strided_slice %478 {offsets = [0, 0], sizes = [2, 96], strides = [1, 1]} : vector<2x128xf32> to vector<2x96xf32>
    %480 = arith.negf %479 : vector<2x96xf32>
    %481 = math.exp %480 : vector<2x96xf32>
    %cst_105 = arith.constant 1.000000e+00 : f32
    %482 = vector.broadcast %cst_105 : f32 to vector<2x96xf32>
    %483 = arith.addf %482, %481 : vector<2x96xf32>
    %484 = arith.divf %482, %483 : vector<2x96xf32>
    %485 = vector.extract_strided_slice %478 {offsets = [0, 96], sizes = [2, 32], strides = [1, 1]} : vector<2x128xf32> to vector<2x32xf32>
    %486 = math.tanh %485 : vector<2x32xf32>
    %487 = vector.extract_strided_slice %484 {offsets = [0, 32], sizes = [2, 32], strides = [1, 1]} : vector<2x96xf32> to vector<2x32xf32>
    %488 = arith.mulf %487, %447 : vector<2x32xf32>
    %489 = vector.extract_strided_slice %484 {offsets = [0, 0], sizes = [2, 32], strides = [1, 1]} : vector<2x96xf32> to vector<2x32xf32>
    %490 = arith.mulf %489, %486 : vector<2x32xf32>
    %491 = arith.addf %488, %490 : vector<2x32xf32>
    %492 = vector.extract_strided_slice %484 {offsets = [0, 64], sizes = [2, 32], strides = [1, 1]} : vector<2x96xf32> to vector<2x32xf32>
    %493 = math.tanh %491 : vector<2x32xf32>
    %494 = arith.mulf %492, %493 : vector<2x32xf32>
    %495 = vector.extract_strided_slice %340 {offsets = [8, 128], sizes = [2, 128], strides = [1, 1]} : vector<16x256xf32> to vector<2x128xf32>
    %cst_106 = arith.constant dense<0.000000e+00> : vector<2x128xf32>
    %496 = tpu.matmul %469, %343, %cst_106 {dimension_numbers = #tpu.dot_dimension_numbers<[1], [0], [0], [1], [0, 0, 1, 1], [], []>} : vector<2x32xf32>, vector<32x128xf32>, vector<2x128xf32> -> vector<2x128xf32>
    %497 = arith.addf %495, %496 : vector<2x128xf32>
    %498 = vector.extract_strided_slice %497 {offsets = [0, 0], sizes = [2, 96], strides = [1, 1]} : vector<2x128xf32> to vector<2x96xf32>
    %499 = arith.negf %498 : vector<2x96xf32>
    %500 = math.exp %499 : vector<2x96xf32>
    %cst_107 = arith.constant 1.000000e+00 : f32
    %501 = vector.broadcast %cst_107 : f32 to vector<2x96xf32>
    %502 = arith.addf %501, %500 : vector<2x96xf32>
    %503 = arith.divf %501, %502 : vector<2x96xf32>
    %504 = vector.extract_strided_slice %497 {offsets = [0, 96], sizes = [2, 32], strides = [1, 1]} : vector<2x128xf32> to vector<2x32xf32>
    %505 = math.tanh %504 : vector<2x32xf32>
    %506 = vector.extract_strided_slice %503 {offsets = [0, 32], sizes = [2, 32], strides = [1, 1]} : vector<2x96xf32> to vector<2x32xf32>
    %507 = arith.mulf %506, %466 : vector<2x32xf32>
    %508 = vector.extract_strided_slice %503 {offsets = [0, 0], sizes = [2, 32], strides = [1, 1]} : vector<2x96xf32> to vector<2x32xf32>
    %509 = arith.mulf %508, %505 : vector<2x32xf32>
    %510 = arith.addf %507, %509 : vector<2x32xf32>
    %511 = vector.extract_strided_slice %503 {offsets = [0, 64], sizes = [2, 32], strides = [1, 1]} : vector<2x96xf32> to vector<2x32xf32>
    %512 = math.tanh %510 : vector<2x32xf32>
    %513 = arith.mulf %511, %512 : vector<2x32xf32>
    %c3 = arith.constant 3 : index
    %c0_108 = arith.constant 0 : index
    %c0_109 = arith.constant 0 : index
    %514 = vector.load %arg13[%c3, %c0_108, %c0_109] : memref<8x2x32xf32, #tpu.memory_space<vmem>>, vector<1x2x32xf32>
    %515 = vector.shape_cast %514 : vector<1x2x32xf32> to vector<2x32xf32>
    %516 = vector.shape_cast %494 : vector<2x32xf32> to vector<1x2x32xf32>
    tpu.vector_store %arg13[%c3, %c0_108, %c0_109], %516 {strides = array<i32>} : memref<8x2x32xf32, #tpu.memory_space<vmem>>, vector<1x2x32xf32>,
    %c4_110 = arith.constant 4 : index
    %c0_111 = arith.constant 0 : index
    %c0_112 = arith.constant 0 : index
    %517 = vector.load %arg14[%c4_110, %c0_111, %c0_112] : memref<8x2x32xf32, #tpu.memory_space<vmem>>, vector<1x2x32xf32>
    %518 = vector.shape_cast %517 : vector<1x2x32xf32> to vector<2x32xf32>
    %519 = vector.shape_cast %513 : vector<2x32xf32> to vector<1x2x32xf32>
    tpu.vector_store %arg14[%c4_110, %c0_111, %c0_112], %519 {strides = array<i32>} : memref<8x2x32xf32, #tpu.memory_space<vmem>>, vector<1x2x32xf32>,
    %520 = vector.extract_strided_slice %340 {offsets = [8, 0], sizes = [2, 128], strides = [1, 1]} : vector<16x256xf32> to vector<2x128xf32>
    %cst_113 = arith.constant dense<0.000000e+00> : vector<2x128xf32>
    %521 = tpu.matmul %494, %342, %cst_113 {dimension_numbers = #tpu.dot_dimension_numbers<[1], [0], [0], [1], [0, 0, 1, 1], [], []>} : vector<2x32xf32>, vector<32x128xf32>, vector<2x128xf32> -> vector<2x128xf32>
    %522 = arith.addf %520, %521 : vector<2x128xf32>
    %523 = vector.extract_strided_slice %522 {offsets = [0, 0], sizes = [2, 96], strides = [1, 1]} : vector<2x128xf32> to vector<2x96xf32>
    %524 = arith.negf %523 : vector<2x96xf32>
    %525 = math.exp %524 : vector<2x96xf32>
    %cst_114 = arith.constant 1.000000e+00 : f32
    %526 = vector.broadcast %cst_114 : f32 to vector<2x96xf32>
    %527 = arith.addf %526, %525 : vector<2x96xf32>
    %528 = arith.divf %526, %527 : vector<2x96xf32>
    %529 = vector.extract_strided_slice %522 {offsets = [0, 96], sizes = [2, 32], strides = [1, 1]} : vector<2x128xf32> to vector<2x32xf32>
    %530 = math.tanh %529 : vector<2x32xf32>
    %531 = vector.extract_strided_slice %528 {offsets = [0, 32], sizes = [2, 32], strides = [1, 1]} : vector<2x96xf32> to vector<2x32xf32>
    %532 = arith.mulf %531, %491 : vector<2x32xf32>
    %533 = vector.extract_strided_slice %528 {offsets = [0, 0], sizes = [2, 32], strides = [1, 1]} : vector<2x96xf32> to vector<2x32xf32>
    %534 = arith.mulf %533, %530 : vector<2x32xf32>
    %535 = arith.addf %532, %534 : vector<2x32xf32>
    %536 = vector.extract_strided_slice %528 {offsets = [0, 64], sizes = [2, 32], strides = [1, 1]} : vector<2x96xf32> to vector<2x32xf32>
    %537 = math.tanh %535 : vector<2x32xf32>
    %538 = arith.mulf %536, %537 : vector<2x32xf32>
    %539 = vector.extract_strided_slice %340 {offsets = [6, 128], sizes = [2, 128], strides = [1, 1]} : vector<16x256xf32> to vector<2x128xf32>
    %cst_115 = arith.constant dense<0.000000e+00> : vector<2x128xf32>
    %540 = tpu.matmul %513, %343, %cst_115 {dimension_numbers = #tpu.dot_dimension_numbers<[1], [0], [0], [1], [0, 0, 1, 1], [], []>} : vector<2x32xf32>, vector<32x128xf32>, vector<2x128xf32> -> vector<2x128xf32>
    %541 = arith.addf %539, %540 : vector<2x128xf32>
    %542 = vector.extract_strided_slice %541 {offsets = [0, 0], sizes = [2, 96], strides = [1, 1]} : vector<2x128xf32> to vector<2x96xf32>
    %543 = arith.negf %542 : vector<2x96xf32>
    %544 = math.exp %543 : vector<2x96xf32>
    %cst_116 = arith.constant 1.000000e+00 : f32
    %545 = vector.broadcast %cst_116 : f32 to vector<2x96xf32>
    %546 = arith.addf %545, %544 : vector<2x96xf32>
    %547 = arith.divf %545, %546 : vector<2x96xf32>
    %548 = vector.extract_strided_slice %541 {offsets = [0, 96], sizes = [2, 32], strides = [1, 1]} : vector<2x128xf32> to vector<2x32xf32>
    %549 = math.tanh %548 : vector<2x32xf32>
    %550 = vector.extract_strided_slice %547 {offsets = [0, 32], sizes = [2, 32], strides = [1, 1]} : vector<2x96xf32> to vector<2x32xf32>
    %551 = arith.mulf %550, %510 : vector<2x32xf32>
    %552 = vector.extract_strided_slice %547 {offsets = [0, 0], sizes = [2, 32], strides = [1, 1]} : vector<2x96xf32> to vector<2x32xf32>
    %553 = arith.mulf %552, %549 : vector<2x32xf32>
    %554 = arith.addf %551, %553 : vector<2x32xf32>
    %555 = vector.extract_strided_slice %547 {offsets = [0, 64], sizes = [2, 32], strides = [1, 1]} : vector<2x96xf32> to vector<2x32xf32>
    %556 = math.tanh %554 : vector<2x32xf32>
    %557 = arith.mulf %555, %556 : vector<2x32xf32>
    %c4_117 = arith.constant 4 : index
    %c0_118 = arith.constant 0 : index
    %c0_119 = arith.constant 0 : index
    %558 = vector.load %arg13[%c4_117, %c0_118, %c0_119] : memref<8x2x32xf32, #tpu.memory_space<vmem>>, vector<1x2x32xf32>
    %559 = vector.shape_cast %558 : vector<1x2x32xf32> to vector<2x32xf32>
    %560 = vector.shape_cast %538 : vector<2x32xf32> to vector<1x2x32xf32>
    tpu.vector_store %arg13[%c4_117, %c0_118, %c0_119], %560 {strides = array<i32>} : memref<8x2x32xf32, #tpu.memory_space<vmem>>, vector<1x2x32xf32>,
    %c3_120 = arith.constant 3 : index
    %c0_121 = arith.constant 0 : index
    %c0_122 = arith.constant 0 : index
    %561 = vector.load %arg14[%c3_120, %c0_121, %c0_122] : memref<8x2x32xf32, #tpu.memory_space<vmem>>, vector<1x2x32xf32>
    %562 = vector.shape_cast %561 : vector<1x2x32xf32> to vector<2x32xf32>
    %563 = vector.shape_cast %557 : vector<2x32xf32> to vector<1x2x32xf32>
    tpu.vector_store %arg14[%c3_120, %c0_121, %c0_122], %563 {strides = array<i32>} : memref<8x2x32xf32, #tpu.memory_space<vmem>>, vector<1x2x32xf32>,
    %564 = vector.extract_strided_slice %340 {offsets = [10, 0], sizes = [2, 128], strides = [1, 1]} : vector<16x256xf32> to vector<2x128xf32>
    %cst_123 = arith.constant dense<0.000000e+00> : vector<2x128xf32>
    %565 = tpu.matmul %538, %342, %cst_123 {dimension_numbers = #tpu.dot_dimension_numbers<[1], [0], [0], [1], [0, 0, 1, 1], [], []>} : vector<2x32xf32>, vector<32x128xf32>, vector<2x128xf32> -> vector<2x128xf32>
    %566 = arith.addf %564, %565 : vector<2x128xf32>
    %567 = vector.extract_strided_slice %566 {offsets = [0, 0], sizes = [2, 96], strides = [1, 1]} : vector<2x128xf32> to vector<2x96xf32>
    %568 = arith.negf %567 : vector<2x96xf32>
    %569 = math.exp %568 : vector<2x96xf32>
    %cst_124 = arith.constant 1.000000e+00 : f32
    %570 = vector.broadcast %cst_124 : f32 to vector<2x96xf32>
    %571 = arith.addf %570, %569 : vector<2x96xf32>
    %572 = arith.divf %570, %571 : vector<2x96xf32>
    %573 = vector.extract_strided_slice %566 {offsets = [0, 96], sizes = [2, 32], strides = [1, 1]} : vector<2x128xf32> to vector<2x32xf32>
    %574 = math.tanh %573 : vector<2x32xf32>
    %575 = vector.extract_strided_slice %572 {offsets = [0, 32], sizes = [2, 32], strides = [1, 1]} : vector<2x96xf32> to vector<2x32xf32>
    %576 = arith.mulf %575, %535 : vector<2x32xf32>
    %577 = vector.extract_strided_slice %572 {offsets = [0, 0], sizes = [2, 32], strides = [1, 1]} : vector<2x96xf32> to vector<2x32xf32>
    %578 = arith.mulf %577, %574 : vector<2x32xf32>
    %579 = arith.addf %576, %578 : vector<2x32xf32>
    %580 = vector.extract_strided_slice %572 {offsets = [0, 64], sizes = [2, 32], strides = [1, 1]} : vector<2x96xf32> to vector<2x32xf32>
    %581 = math.tanh %579 : vector<2x32xf32>
    %582 = arith.mulf %580, %581 : vector<2x32xf32>
    %583 = vector.extract_strided_slice %340 {offsets = [4, 128], sizes = [2, 128], strides = [1, 1]} : vector<16x256xf32> to vector<2x128xf32>
    %cst_125 = arith.constant dense<0.000000e+00> : vector<2x128xf32>
    %584 = tpu.matmul %557, %343, %cst_125 {dimension_numbers = #tpu.dot_dimension_numbers<[1], [0], [0], [1], [0, 0, 1, 1], [], []>} : vector<2x32xf32>, vector<32x128xf32>, vector<2x128xf32> -> vector<2x128xf32>
    %585 = arith.addf %583, %584 : vector<2x128xf32>
    %586 = vector.extract_strided_slice %585 {offsets = [0, 0], sizes = [2, 96], strides = [1, 1]} : vector<2x128xf32> to vector<2x96xf32>
    %587 = arith.negf %586 : vector<2x96xf32>
    %588 = math.exp %587 : vector<2x96xf32>
    %cst_126 = arith.constant 1.000000e+00 : f32
    %589 = vector.broadcast %cst_126 : f32 to vector<2x96xf32>
    %590 = arith.addf %589, %588 : vector<2x96xf32>
    %591 = arith.divf %589, %590 : vector<2x96xf32>
    %592 = vector.extract_strided_slice %585 {offsets = [0, 96], sizes = [2, 32], strides = [1, 1]} : vector<2x128xf32> to vector<2x32xf32>
    %593 = math.tanh %592 : vector<2x32xf32>
    %594 = vector.extract_strided_slice %591 {offsets = [0, 32], sizes = [2, 32], strides = [1, 1]} : vector<2x96xf32> to vector<2x32xf32>
    %595 = arith.mulf %594, %554 : vector<2x32xf32>
    %596 = vector.extract_strided_slice %591 {offsets = [0, 0], sizes = [2, 32], strides = [1, 1]} : vector<2x96xf32> to vector<2x32xf32>
    %597 = arith.mulf %596, %593 : vector<2x32xf32>
    %598 = arith.addf %595, %597 : vector<2x32xf32>
    %599 = vector.extract_strided_slice %591 {offsets = [0, 64], sizes = [2, 32], strides = [1, 1]} : vector<2x96xf32> to vector<2x32xf32>
    %600 = math.tanh %598 : vector<2x32xf32>
    %601 = arith.mulf %599, %600 : vector<2x32xf32>
    %c5_127 = arith.constant 5 : index
    %c0_128 = arith.constant 0 : index
    %c0_129 = arith.constant 0 : index
    %602 = vector.load %arg13[%c5_127, %c0_128, %c0_129] : memref<8x2x32xf32, #tpu.memory_space<vmem>>, vector<1x2x32xf32>
    %603 = vector.shape_cast %602 : vector<1x2x32xf32> to vector<2x32xf32>
    %604 = vector.shape_cast %582 : vector<2x32xf32> to vector<1x2x32xf32>
    tpu.vector_store %arg13[%c5_127, %c0_128, %c0_129], %604 {strides = array<i32>} : memref<8x2x32xf32, #tpu.memory_space<vmem>>, vector<1x2x32xf32>,
    %c2_130 = arith.constant 2 : index
    %c0_131 = arith.constant 0 : index
    %c0_132 = arith.constant 0 : index
    %605 = vector.load %arg14[%c2_130, %c0_131, %c0_132] : memref<8x2x32xf32, #tpu.memory_space<vmem>>, vector<1x2x32xf32>
    %606 = vector.shape_cast %605 : vector<1x2x32xf32> to vector<2x32xf32>
    %607 = vector.shape_cast %601 : vector<2x32xf32> to vector<1x2x32xf32>
    tpu.vector_store %arg14[%c2_130, %c0_131, %c0_132], %607 {strides = array<i32>} : memref<8x2x32xf32, #tpu.memory_space<vmem>>, vector<1x2x32xf32>,
    %608 = vector.extract_strided_slice %340 {offsets = [12, 0], sizes = [2, 128], strides = [1, 1]} : vector<16x256xf32> to vector<2x128xf32>
    %cst_133 = arith.constant dense<0.000000e+00> : vector<2x128xf32>
    %609 = tpu.matmul %582, %342, %cst_133 {dimension_numbers = #tpu.dot_dimension_numbers<[1], [0], [0], [1], [0, 0, 1, 1], [], []>} : vector<2x32xf32>, vector<32x128xf32>, vector<2x128xf32> -> vector<2x128xf32>
    %610 = arith.addf %608, %609 : vector<2x128xf32>
    %611 = vector.extract_strided_slice %610 {offsets = [0, 0], sizes = [2, 96], strides = [1, 1]} : vector<2x128xf32> to vector<2x96xf32>
    %612 = arith.negf %611 : vector<2x96xf32>
    %613 = math.exp %612 : vector<2x96xf32>
    %cst_134 = arith.constant 1.000000e+00 : f32
    %614 = vector.broadcast %cst_134 : f32 to vector<2x96xf32>
    %615 = arith.addf %614, %613 : vector<2x96xf32>
    %616 = arith.divf %614, %615 : vector<2x96xf32>
    %617 = vector.extract_strided_slice %610 {offsets = [0, 96], sizes = [2, 32], strides = [1, 1]} : vector<2x128xf32> to vector<2x32xf32>
    %618 = math.tanh %617 : vector<2x32xf32>
    %619 = vector.extract_strided_slice %616 {offsets = [0, 32], sizes = [2, 32], strides = [1, 1]} : vector<2x96xf32> to vector<2x32xf32>
    %620 = arith.mulf %619, %579 : vector<2x32xf32>
    %621 = vector.extract_strided_slice %616 {offsets = [0, 0], sizes = [2, 32], strides = [1, 1]} : vector<2x96xf32> to vector<2x32xf32>
    %622 = arith.mulf %621, %618 : vector<2x32xf32>
    %623 = arith.addf %620, %622 : vector<2x32xf32>
    %624 = vector.extract_strided_slice %616 {offsets = [0, 64], sizes = [2, 32], strides = [1, 1]} : vector<2x96xf32> to vector<2x32xf32>
    %625 = math.tanh %623 : vector<2x32xf32>
    %626 = arith.mulf %624, %625 : vector<2x32xf32>
    %627 = vector.extract_strided_slice %340 {offsets = [2, 128], sizes = [2, 128], strides = [1, 1]} : vector<16x256xf32> to vector<2x128xf32>
    %cst_135 = arith.constant dense<0.000000e+00> : vector<2x128xf32>
    %628 = tpu.matmul %601, %343, %cst_135 {dimension_numbers = #tpu.dot_dimension_numbers<[1], [0], [0], [1], [0, 0, 1, 1], [], []>} : vector<2x32xf32>, vector<32x128xf32>, vector<2x128xf32> -> vector<2x128xf32>
    %629 = arith.addf %627, %628 : vector<2x128xf32>
    %630 = vector.extract_strided_slice %629 {offsets = [0, 0], sizes = [2, 96], strides = [1, 1]} : vector<2x128xf32> to vector<2x96xf32>
    %631 = arith.negf %630 : vector<2x96xf32>
    %632 = math.exp %631 : vector<2x96xf32>
    %cst_136 = arith.constant 1.000000e+00 : f32
    %633 = vector.broadcast %cst_136 : f32 to vector<2x96xf32>
    %634 = arith.addf %633, %632 : vector<2x96xf32>
    %635 = arith.divf %633, %634 : vector<2x96xf32>
    %636 = vector.extract_strided_slice %629 {offsets = [0, 96], sizes = [2, 32], strides = [1, 1]} : vector<2x128xf32> to vector<2x32xf32>
    %637 = math.tanh %636 : vector<2x32xf32>
    %638 = vector.extract_strided_slice %635 {offsets = [0, 32], sizes = [2, 32], strides = [1, 1]} : vector<2x96xf32> to vector<2x32xf32>
    %639 = arith.mulf %638, %598 : vector<2x32xf32>
    %640 = vector.extract_strided_slice %635 {offsets = [0, 0], sizes = [2, 32], strides = [1, 1]} : vector<2x96xf32> to vector<2x32xf32>
    %641 = arith.mulf %640, %637 : vector<2x32xf32>
    %642 = arith.addf %639, %641 : vector<2x32xf32>
    %643 = vector.extract_strided_slice %635 {offsets = [0, 64], sizes = [2, 32], strides = [1, 1]} : vector<2x96xf32> to vector<2x32xf32>
    %644 = math.tanh %642 : vector<2x32xf32>
    %645 = arith.mulf %643, %644 : vector<2x32xf32>
    %c6_137 = arith.constant 6 : index
    %c0_138 = arith.constant 0 : index
    %c0_139 = arith.constant 0 : index
    %646 = vector.load %arg13[%c6_137, %c0_138, %c0_139] : memref<8x2x32xf32, #tpu.memory_space<vmem>>, vector<1x2x32xf32>
    %647 = vector.shape_cast %646 : vector<1x2x32xf32> to vector<2x32xf32>
    %648 = vector.shape_cast %626 : vector<2x32xf32> to vector<1x2x32xf32>
    tpu.vector_store %arg13[%c6_137, %c0_138, %c0_139], %648 {strides = array<i32>} : memref<8x2x32xf32, #tpu.memory_space<vmem>>, vector<1x2x32xf32>,
    %c1_140 = arith.constant 1 : index
    %c0_141 = arith.constant 0 : index
    %c0_142 = arith.constant 0 : index
    %649 = vector.load %arg14[%c1_140, %c0_141, %c0_142] : memref<8x2x32xf32, #tpu.memory_space<vmem>>, vector<1x2x32xf32>
    %650 = vector.shape_cast %649 : vector<1x2x32xf32> to vector<2x32xf32>
    %651 = vector.shape_cast %645 : vector<2x32xf32> to vector<1x2x32xf32>
    tpu.vector_store %arg14[%c1_140, %c0_141, %c0_142], %651 {strides = array<i32>} : memref<8x2x32xf32, #tpu.memory_space<vmem>>, vector<1x2x32xf32>,
    %652 = vector.extract_strided_slice %340 {offsets = [14, 0], sizes = [2, 128], strides = [1, 1]} : vector<16x256xf32> to vector<2x128xf32>
    %cst_143 = arith.constant dense<0.000000e+00> : vector<2x128xf32>
    %653 = tpu.matmul %626, %342, %cst_143 {dimension_numbers = #tpu.dot_dimension_numbers<[1], [0], [0], [1], [0, 0, 1, 1], [], []>} : vector<2x32xf32>, vector<32x128xf32>, vector<2x128xf32> -> vector<2x128xf32>
    %654 = arith.addf %652, %653 : vector<2x128xf32>
    %655 = vector.extract_strided_slice %654 {offsets = [0, 0], sizes = [2, 96], strides = [1, 1]} : vector<2x128xf32> to vector<2x96xf32>
    %656 = arith.negf %655 : vector<2x96xf32>
    %657 = math.exp %656 : vector<2x96xf32>
    %cst_144 = arith.constant 1.000000e+00 : f32
    %658 = vector.broadcast %cst_144 : f32 to vector<2x96xf32>
    %659 = arith.addf %658, %657 : vector<2x96xf32>
    %660 = arith.divf %658, %659 : vector<2x96xf32>
    %661 = vector.extract_strided_slice %654 {offsets = [0, 96], sizes = [2, 32], strides = [1, 1]} : vector<2x128xf32> to vector<2x32xf32>
    %662 = math.tanh %661 : vector<2x32xf32>
    %663 = vector.extract_strided_slice %660 {offsets = [0, 32], sizes = [2, 32], strides = [1, 1]} : vector<2x96xf32> to vector<2x32xf32>
    %664 = arith.mulf %663, %623 : vector<2x32xf32>
    %665 = vector.extract_strided_slice %660 {offsets = [0, 0], sizes = [2, 32], strides = [1, 1]} : vector<2x96xf32> to vector<2x32xf32>
    %666 = arith.mulf %665, %662 : vector<2x32xf32>
    %667 = arith.addf %664, %666 : vector<2x32xf32>
    %668 = vector.extract_strided_slice %660 {offsets = [0, 64], sizes = [2, 32], strides = [1, 1]} : vector<2x96xf32> to vector<2x32xf32>
    %669 = math.tanh %667 : vector<2x32xf32>
    %670 = arith.mulf %668, %669 : vector<2x32xf32>
    %671 = vector.extract_strided_slice %340 {offsets = [0, 128], sizes = [2, 128], strides = [1, 1]} : vector<16x256xf32> to vector<2x128xf32>
    %cst_145 = arith.constant dense<0.000000e+00> : vector<2x128xf32>
    %672 = tpu.matmul %645, %343, %cst_145 {dimension_numbers = #tpu.dot_dimension_numbers<[1], [0], [0], [1], [0, 0, 1, 1], [], []>} : vector<2x32xf32>, vector<32x128xf32>, vector<2x128xf32> -> vector<2x128xf32>
    %673 = arith.addf %671, %672 : vector<2x128xf32>
    %674 = vector.extract_strided_slice %673 {offsets = [0, 0], sizes = [2, 96], strides = [1, 1]} : vector<2x128xf32> to vector<2x96xf32>
    %675 = arith.negf %674 : vector<2x96xf32>
    %676 = math.exp %675 : vector<2x96xf32>
    %cst_146 = arith.constant 1.000000e+00 : f32
    %677 = vector.broadcast %cst_146 : f32 to vector<2x96xf32>
    %678 = arith.addf %677, %676 : vector<2x96xf32>
    %679 = arith.divf %677, %678 : vector<2x96xf32>
    %680 = vector.extract_strided_slice %673 {offsets = [0, 96], sizes = [2, 32], strides = [1, 1]} : vector<2x128xf32> to vector<2x32xf32>
    %681 = math.tanh %680 : vector<2x32xf32>
    %682 = vector.extract_strided_slice %679 {offsets = [0, 32], sizes = [2, 32], strides = [1, 1]} : vector<2x96xf32> to vector<2x32xf32>
    %683 = arith.mulf %682, %642 : vector<2x32xf32>
    %684 = vector.extract_strided_slice %679 {offsets = [0, 0], sizes = [2, 32], strides = [1, 1]} : vector<2x96xf32> to vector<2x32xf32>
    %685 = arith.mulf %684, %681 : vector<2x32xf32>
    %686 = arith.addf %683, %685 : vector<2x32xf32>
    %687 = vector.extract_strided_slice %679 {offsets = [0, 64], sizes = [2, 32], strides = [1, 1]} : vector<2x96xf32> to vector<2x32xf32>
    %688 = math.tanh %686 : vector<2x32xf32>
    %689 = arith.mulf %687, %688 : vector<2x32xf32>
    %c7_147 = arith.constant 7 : index
    %c0_148 = arith.constant 0 : index
    %c0_149 = arith.constant 0 : index
    %690 = vector.load %arg13[%c7_147, %c0_148, %c0_149] : memref<8x2x32xf32, #tpu.memory_space<vmem>>, vector<1x2x32xf32>
    %691 = vector.shape_cast %690 : vector<1x2x32xf32> to vector<2x32xf32>
    %692 = vector.shape_cast %670 : vector<2x32xf32> to vector<1x2x32xf32>
    tpu.vector_store %arg13[%c7_147, %c0_148, %c0_149], %692 {strides = array<i32>} : memref<8x2x32xf32, #tpu.memory_space<vmem>>, vector<1x2x32xf32>,
    %c0_150 = arith.constant 0 : index
    %c0_151 = arith.constant 0 : index
    %c0_152 = arith.constant 0 : index
    %693 = vector.load %arg14[%c0_150, %c0_151, %c0_152] : memref<8x2x32xf32, #tpu.memory_space<vmem>>, vector<1x2x32xf32>
    %694 = vector.shape_cast %693 : vector<1x2x32xf32> to vector<2x32xf32>
    %695 = vector.shape_cast %689 : vector<2x32xf32> to vector<1x2x32xf32>
    tpu.vector_store %arg14[%c0_150, %c0_151, %c0_152], %695 {strides = array<i32>} : memref<8x2x32xf32, #tpu.memory_space<vmem>>, vector<1x2x32xf32>,
    %c0_153 = arith.constant 0 : index
    %c0_154 = arith.constant 0 : index
    %c0_155 = arith.constant 0 : index
    %696 = vector.load %arg13[%c0_153, %c0_154, %c0_155] : memref<8x2x32xf32, #tpu.memory_space<vmem>>, vector<8x2x32xf32>
    %c0_156 = arith.constant 0 : index
    %c0_157 = arith.constant 0 : index
    %c0_158 = arith.constant 0 : index
    %697 = vector.load %arg14[%c0_156, %c0_157, %c0_158] : memref<8x2x32xf32, #tpu.memory_space<vmem>>, vector<8x2x32xf32>
    %698 = tpu.concatenate %696, %697 in 2 : vector<8x2x32xf32>, vector<8x2x32xf32> -> vector<8x2x64xf32>
    %699 = math.tanh %698 : vector<8x2x64xf32>
    %c0_159 = arith.constant 0 : index
    %c0_160 = arith.constant 0 : index
    %700 = vector.load %arg7[%c0_159, %c0_160] : memref<1x64xf32, #tpu.memory_space<vmem>>, vector<1x64xf32>
    %701 = vector.shape_cast %700 : vector<1x64xf32> to vector<1x1x64xf32>
    %702 = vector.broadcast %701 : vector<1x1x64xf32> to vector<8x2x64xf32>
    %703 = arith.mulf %699, %702 : vector<8x2x64xf32>
    %cst_161 = arith.constant dense<0.000000e+00> : vector<8x2xf32>
    %704 = vector.multi_reduction <add>, %703, %cst_161 [2] : vector<8x2x64xf32> to vector<8x2xf32>
    %cst_162 = arith.constant dense<0xFF800000> : vector<8xf32>
    %705 = vector.multi_reduction <maximumf>, %704, %cst_162 [1] : vector<8x2xf32> to vector<8xf32>
    %cst_163 = arith.constant 0xFF800000 : f32
    %706 = vector.broadcast %cst_163 : f32 to vector<8xf32>
    %707 = arith.maximumf %706, %705 : vector<8xf32>
    %708 = vector.shape_cast %707 : vector<8xf32> to vector<8x1xf32>
    %709 = vector.broadcast %708 : vector<8x1xf32> to vector<8x2xf32>
    %710 = arith.subf %704, %709 : vector<8x2xf32>
    %711 = math.exp %710 : vector<8x2xf32>
    %cst_164 = arith.constant dense<0.000000e+00> : vector<8xf32>
    %712 = vector.multi_reduction <add>, %711, %cst_164 [1] : vector<8x2xf32> to vector<8xf32>
    %713 = vector.shape_cast %712 : vector<8xf32> to vector<8x1xf32>
    %714 = vector.broadcast %713 : vector<8x1xf32> to vector<8x2xf32>
    %715 = arith.divf %711, %714 : vector<8x2xf32>
    %716 = vector.shape_cast %715 : vector<8x2xf32> to vector<8x2x1xf32>
    %717 = vector.broadcast %716 : vector<8x2x1xf32> to vector<8x2x64xf32>
    %718 = arith.mulf %717, %699 : vector<8x2x64xf32>
    %cst_165 = arith.constant dense<0.000000e+00> : vector<2x64xf32>
    %719 = vector.multi_reduction <add>, %718, %cst_165 [0] : vector<8x2x64xf32> to vector<2x64xf32>
    %c0_166 = arith.constant 0 : index
    %c0_167 = arith.constant 0 : index
    %720 = vector.load %arg8[%c0_166, %c0_167] : memref<64x4xf32, #tpu.memory_space<vmem>>, vector<64x4xf32>
    %cst_168 = arith.constant dense<0.000000e+00> : vector<2x4xf32>
    %721 = tpu.matmul %719, %720, %cst_168 {dimension_numbers = #tpu.dot_dimension_numbers<[1], [0], [0], [1], [0, 0, 1, 1], [], []>} : vector<2x64xf32>, vector<64x4xf32>, vector<2x4xf32> -> vector<2x4xf32>
    %c0_169 = arith.constant 0 : index
    %c0_170 = arith.constant 0 : index
    %722 = vector.load %arg9[%c0_169, %c0_170] : memref<1x4xf32, #tpu.memory_space<vmem>>, vector<1x4xf32>
    %723 = vector.broadcast %722 : vector<1x4xf32> to vector<2x4xf32>
    %724 = arith.addf %721, %723 : vector<2x4xf32>
    %cst_171 = arith.constant dense<0xFF800000> : vector<2xf32>
    %725 = vector.multi_reduction <maximumf>, %724, %cst_171 [1] : vector<2x4xf32> to vector<2xf32>
    %cst_172 = arith.constant 0xFF800000 : f32
    %726 = vector.broadcast %cst_172 : f32 to vector<2xf32>
    %727 = arith.maximumf %726, %725 : vector<2xf32>
    %728 = vector.shape_cast %727 : vector<2xf32> to vector<2x1xf32>
    %729 = vector.broadcast %728 : vector<2x1xf32> to vector<2x4xf32>
    %730 = arith.subf %724, %729 : vector<2x4xf32>
    %731 = math.exp %730 : vector<2x4xf32>
    %cst_173 = arith.constant dense<0.000000e+00> : vector<2xf32>
    %732 = vector.multi_reduction <add>, %731, %cst_173 [1] : vector<2x4xf32> to vector<2xf32>
    %733 = vector.shape_cast %732 : vector<2xf32> to vector<2x1xf32>
    %734 = vector.broadcast %733 : vector<2x1xf32> to vector<2x4xf32>
    %735 = arith.divf %731, %734 : vector<2x4xf32>
    %c0_174 = arith.constant 0 : index
    %c0_175 = arith.constant 0 : index
    %736 = vector.load %arg10[%c0_174, %c0_175] : memref<2x4xf32, #tpu.memory_space<vmem>>, vector<2x4xf32>
    tpu.vector_store %arg10[%c0_174, %c0_175], %735 {strides = array<i32>} : memref<2x4xf32, #tpu.memory_space<vmem>>, vector<2x4xf32>,
    return
  }
}

</mosaic_0001>

<bundles_post_ra>
// kernel: classify_forward.1
= control target key start
LH: loop header
LB: loop body
LE: loop exit
PB: predicated region body
PF: predicated region fallthrough
CT: control target
= control target key end

     0   :  { %v5575_v5 = vmov 0.0   ;;  %v5576_v7 = vmov 0.0|0.0   ;;  %vm5577_vm0 = vmmov 0   ;;  %vm54_vm1 = vcmask 130048   ;;  %s6650_s0 = inlined_call_operand.vmem [shape: f32[16,16], index: 0, kind: input, shape index: {}]   ;;  %s6651_s1 = inlined_call_operand.vmem [shape: f32[16,256], index: 1, kind: input, shape index: {}]   ;;  %s6652_s2 = inlined_call_operand.vmem [shape: f32[32,256], index: 2, kind: input, shape index: {}]   ;;  %s6653_s3 = inlined_call_operand.vmem [shape: f32[1,256], index: 3, kind: input, shape index: {}]   ;;  %s6654_s4 = inlined_call_operand.vmem [shape: f32[64,256], index: 4, kind: input, shape index: {}]   ;;  %s6655_s5 = inlined_call_operand.vmem [shape: f32[32,256], index: 5, kind: input, shape index: {}]   ;;  %s6656_s6 = inlined_call_operand.vmem [shape: f32[1,256], index: 6, kind: input, shape index: {}]   ;;  %s6657_s7 = inlined_call_operand.vmem [shape: f32[1,64], index: 7, kind: input, shape index: {}]   ;;  %s6658_s8 = inlined_call_operand.vmem [shape: f32[64,4], index: 8, kind: input, shape index: {}]   ;;  %s6659_s9 = inlined_call_operand.vmem [shape: f32[1,4], index: 9, kind: input, shape index: {}]   ;;  %s6660_s10 = inlined_call_operand.hbm [shape: f32[2,4], index: 10, kind: output, shape index: {}]  }
   0x1   :  { %v39_v0 = vld [vmem:[%s6651_s1 + $0x8] sm:$0xff]  ;;  %v41_v1 = vld [vmem:[%s6651_s1 + $0x18] sm:$0xff]  ;;  %v38_v2 = vld [vmem:[%s6651_s1] sm:$0xff]  ;;  %125 = vmatprep.mubr.f32.mxu0 %v5575_v5  ;;  %5022 = vmatprep.subr.bf16.mxu1 %v5576_v7 }
   0x2   :  { %v5006_v3 = vpack.c.bf16 %v41_v1, %v39_v0  ;;  %v40_v4 = vld [vmem:[%s6651_s1 + $0x10] sm:$0xff]  ;;  %v138_v6 = vld [vmem:[%s6652_s2] sm:$0xff]  ;;  %4665 = vmatprep.mubr.msk.f32.mxu1 %vm5577_vm0, %v5575_v5 }
   0x3   :  { %v5008_v8 = vpack.c.bf16 %v40_v4, %v38_v2  ;;  %v140_v9 = vld [vmem:[%s6652_s2 + $0x10] sm:$0xff]  ;;  %v36_v11 = vld [vmem:[%s6650_s0] sm:$0xff] }
   0x4   :  { %5007 = vmatprep.subr.bf16.mxu0 %v5006_v3  ;;  %v5659_v10 = vpack.c.bf16 %v140_v9, %v138_v6  ;;  %v142_v12 = vld [vmem:[%s6652_s2 + $0x20] sm:$0xff]  ;;  %v144_v13 = vld [vmem:[%s6652_s2 + $0x30] sm:$0xff] }
   0x5   :  { %5009 = vmatpush1.bf16.msra.mxu0 %v5008_v8 }
   0x6   :  { %5010 = vmatprep.subr.bf16.mxu0 %v5576_v7  ;;  %5024 = vmatpush3.bf16.msra.mxu1 %v5659_v10 }
   0x7   :  { %15 = vsyncpa [#allocation7], 0  ;;  %5025 = vmatprep.subr.bf16.mxu1 %v5576_v7  ;;  %v5674_v14 = vpack.c.bf16 %v144_v13, %v142_v12  ;;  %v37_v15 = vld [vmem:[%s6650_s0 + $0x8] sm:$0xff]  ;;  %v141_v17 = vld [vmem:[%s6652_s2 + $0x18] sm:$0xff]  ;;  %v44_v22 = vlaneseq  ;;  %s5579_s20 = smov 64   ;;  %vm146_vm2 = vcmask 261120  }
   0x8   :  { %4397 = vmatmul.mubr.msk.f32.vlgmr.msra.gmra.mrb[0].mxu0 %vm54_vm1, %v36_v11  ;;  %v139_v16 = vld [vmem:[%s6652_s2 + $0x8] sm:$0xff]  ;;  %v145_v20 = vld [vmem:[%s6652_s2 + $0x38] sm:$0xff]  ;;  %v42_v25 = vld [vmem:[%s6653_s3] sm:$0x3]  ;;  %s5578_s3 = smov 32   ;;  %vm347_vm3 = vcmask 254976  }
   0x9   :  { %5012 = vmatpush3.bf16.msra.mxu0 %v5659_v10  ;;  %131 = vmatprep.mubr.f32.mxu0 %v5575_v5  ;;  %v5694_v18 = vpack.c.bf16 %v141_v17, %v139_v16  ;;  %v143_v19 = vld [vmem:[%s6652_s2 + $0x28] sm:$0xff]  ;;  %v5720_v23 = vshrl.u32 %v44_v22, 7  ;;  %vm353_vm4 = vcmask 261126   ;;  %vm568_vm5 = vcmask 257026   ;;  %s5581_s17 = smov [#allocation6]  }
   0xa   :  { %5013 = vmatprep.subr.bf16.mxu0 %v5576_v7  ;;  %5027 = vmatpush3.bf16.msra.mxu1 %v5674_v14  ;;  %v5705_v21 = vpack.c.bf16 %v145_v20, %v143_v19  ;;  %vm574_vm6 = vcmask 259076   ;;  %vm3935_vm7 = vcmask 517120   ;;  %vm4002_vm8 = vcmask 1041409   ;;  %s4389_s18 = sshll.u32 %s5581_s17, 4  ;;  %s4390_s18 = int_to_ptr.vmem [resolvable:$true] %s4389_s18 }
   0xb   :  { %5034 = vmatprep.subr.bf16.mxu1 %v5576_v7  ;;  %v5723_v24 = vsub.s32 1, %v5720_v23  ;;  %v5730_v27 = vsub.s32 0, %v5720_v23  ;;  %vm4004_vm9 = vcmask 1042434   ;;  %vm4006_vm10 = vcmask 1043459   ;;  %p5556_p1 = scmp.lt.s32.totalorder %s4390_s18, %s4390_s18 }
   0xc   :  { %4398 = vmatmul.mubr.msk.f32.gmra.mrb[2].mxu0 %vm54_vm1, %v37_v15  ;;  %vm4008_vm11 = vcmask 1044484   ;;  %vm4010_vm12 = vcmask 1045509   ;;  %vm4012_vm13 = vcmask 1046534   ;;  %vm4014_vm14 = vcmask 1047559  }
   0xd   :  { %5015 = vmatpush3.bf16.msra.mxu0 %v5674_v14  ;;  %4643 = vmatprep.mubr.msk.f32.mxu0 %vm5577_vm0, %v5575_v5  ;;  %v51_v26 = vrot.slane %v42_v25, %v5723_v24  ;;  %v47_v31 = vrot.slane %v42_v25, %v5730_v27  ;;  %vm4017_vm15 = vcmask 15360   ;;  %vm4370_vm1 = vcmask 25600  }
   0xe   :  { %5016 = vmatprep.subr.bf16.mxu0 %v5576_v7 }
  0x10   :  { %4644 = vmatmul.mubr.f32.vlgmr.msra.gmra.mrb[4].mxu0 %v5575_v5 }
  0x11   :  { %5018 = vmatpush3.bf16.msra.mxu0 %v5694_v18  ;;  %4654 = vmatprep.mubr.msk.f32.mxu0 %vm5577_vm0, %v5575_v5 }
  0x12   :  { %5019 = vmatprep.subr.bf16.mxu0 %v5576_v7 }
  0x15   :  { %5021 = vmatpush3.bf16.msra.mxu0 %v5705_v21 }
  0x16   :  { %5028 = vmatprep.subr.bf16.mxu0 %v5576_v7 }
  0x18   :  { %4655 = vmatmul.mubr.f32.vlgmr.msra.gmra.mrb[6].mxu0 %v5575_v5 }
  0x19   :  { %5030 = vmatpush3.bf16.msra.mxu0 %v5694_v18  ;;  %4676 = vmatprep.mubr.msk.f32.mxu0 %vm5577_vm0, %v5575_v5 }
  0x1a   :  { %5031 = vmatprep.subr.bf16.mxu0 %v5576_v7 }
  0x1d   :  { %5033 = vmatpush3.bf16.msra.mxu0 %v5705_v21 }
  0x1e   :  { %5040 = vmatprep.subr.bf16.mxu0 %v5576_v7 }
  0xdb   :  { %v127_v28 = vpop.f32.mrb[0].mxu0 }
  0xdc   :  { %v129_v29 = vpop.f32.mrb[1].mxu0  ;;  %v5739_v41 = vadd.f32 %v127_v28, %v47_v31 }
  0xdd   :  { %v5732_v30 = vadd.f32 %v129_v29, %v51_v26 }
  0xdf   :  { %v133_v32 = vpop.f32.mrb[2].mxu0 }
  0xe0   :  { %v5735_v33 = vadd.f32 %v133_v32, %v47_v31  ;;  %v135_v34 = vpop.f32.mrb[3].mxu0 }
  0xe1   :  { %v5737_v38 = vadd.f32 %v135_v34, %v51_v26 }
  0xe3   :  { %v216_v35 = vpop.f32.mrb[4].mxu0 }
  0xe4   :  { %v4645_v36 = vpop.f32.mrb[5].mxu0  ;;  %v220_v43 = vadd.f32 %v216_v35, %v5739_v41 }
  0xe6   :  { %v4399_v47 = vmul.f32 -1.442695, %v220_v43 }
  0xeb   :  { %v311_v37 = vpop.f32.mrb[6].mxu0 }
  0xec   :  { %v316_v39 = vrot.slane %v311_v37, 2  ;;  %v4656_v40 = vpop.f32.mrb[7].mxu0 }
  0xee   :  { %v318_v42 = vadd.f32 %v316_v39, %v5737_v38 }
  0xf0   :  { %5243 = vtanh.f32 %v318_v42  ;;  %v4400_v46 = vmul.f32 -1.442695, %v318_v42 }
  0xf1   :  { %5245 = vtanh.f32 %v220_v43 }
  0xf2   :  { %5247 = vpow2.f32 %v4400_v46 }
  0xf3   :  { %5249 = vpow2.f32 %v4399_v47 }
  0xfa   :  { %v5244_v44 = vpop.eup %5243 }
  0xfb   :  { %328 = vrot.lane.b32.xlu0 %v5244_v44, %s5578_s3  ;;  %v5246_v45 = vpop.eup %5245 }
  0xfc   :  { %v5248_v48 = vpop.eup %5247 }
  0xfd   :  { %v322_v49 = vadd.f32 1.0, %v5248_v48  ;;  %v5250_v50 = vpop.eup %5249 }
  0xfe   :  { %v224_v51 = vadd.f32 1.0, %v5250_v50 }
  0xff   :  { %230 = vrot.lane.b32.xlu0 %v5246_v45, %s5578_s3  ;;  %5251 = vrcp.f32 %v322_v49 }
 0x100   :  { %5253 = vrcp.f32 %v224_v51 }
 0x109   :  { %v5252_v52 = vpop.eup %5251 }
 0x10a   :  { %v5254_v55 = vpop.eup %5253  ;;  %v326_v58 = vmul.f32 0.0, %v5252_v52 }
 0x10b   :  { %v228_v61 = vmul.f32 0.0, %v5254_v55 }
 0x16d   :  { %v329_v53 = vpop.permute.xlu0 %328 }
 0x16e   :  { %v331_v54 = vmul.f32 %v5252_v52, %v329_v53 }
 0x170   :  { %333 = vrot.lane.b32.xlu1 %v331_v54, %s5578_s3 }
 0x171   :  { %v231_v56 = vpop.permute.xlu0 %230 }
 0x172   :  { %v233_v57 = vmul.f32 %v5254_v55, %v231_v56 }
 0x174   :  { %235 = vrot.lane.b32.xlu1 %v233_v57, %s5578_s3 }
 0x1e2   :  { %v334_v59 = vpop.permute.xlu1 %333 }
 0x1e3   :  { %v5747_v60 = vadd.f32 %v334_v59, %v326_v58 }
 0x1e5   :  { %5255 = vtanh.f32 %v5747_v60  ;;  %v545_v45 = vrot.slane %v5747_v60, 2 }
 0x1e6   :  { %v236_v62 = vpop.permute.xlu1 %235 }
 0x1e7   :  { %v5750_v63 = vadd.f32 %v236_v62, %v228_v61 }
 0x1e9   :  { %5257 = vtanh.f32 %v5750_v63  ;;  %v439_v47 = vrot.slane %v5750_v63, 6 }
 0x1ef   :  { %v5256_v0 = vpop.eup %5255 }
 0x1f0   :  { %339 = vrot.lane.b32.xlu0 %v5256_v0, %s5578_s3 }
 0x1f3   :  { %v5258_v1 = vpop.eup %5257 }
 0x1f4   :  { %241 = vrot.lane.b32.xlu1 %v5258_v1, %s5578_s3 }
 0x262   :  { %v340_v2 = vpop.permute.xlu0 %339 }
 0x263   :  { %v5755_v3 = vmul.f32 %v5252_v52, %v340_v2 }
 0x265   :  { %v458_v4 = vrot.slane %v5755_v3, 6 }
 0x266   :  { %v242_v6 = vpop.permute.xlu1 %241 }
 0x267   :  { %v244_v8 = vmul.f32 %v5254_v55, %v242_v6  ;;  %459 = vrot.lane.b32.xlu0 %v458_v4, %s5579_s20 }
 0x269   :  { %344 = vrot.lane.b32.xlu1 %v244_v8, %s5579_s20 }
 0x2d9   :  { %v460_v9 = vpop.permute.xlu0 %459 }
 0x2da   :  { %4677 = vmatmul.mubr.msk.f32.vlgmr.msra.gmra.mrb[8].mxu0 %vm146_vm2, %v460_v9 }
 0x2db   :  { %v345_v11 = vpop.permute.xlu1 %344  ;;  %5042 = vmatpush3.bf16.msra.mxu0 %v5694_v18  ;;  %4698 = vmatprep.mubr.msk.f32.mxu0 %vm5577_vm0, %v5575_v5 }
 0x2dc   :  { %348 = vst.msk [vmem:[#allocation2] sm:$0x3] %vm347_vm3, %v345_v11  ;;  %4666 = vmatmul.mubr.msk.f32.vlgmr.msra.gmra.mrb[0].mxu1 %vm146_vm2, %v345_v11  ;;  %5043 = vmatprep.subr.bf16.mxu0 %v5576_v7 }
 0x2dd   :  { %5036 = vmatpush3.bf16.msra.mxu1 %v5659_v10  ;;  %4687 = vmatprep.mubr.msk.f32.mxu1 %vm5577_vm0, %v5575_v5 }
 0x2de   :  { %5037 = vmatprep.subr.bf16.mxu1 %v5576_v7 }
 0x2df   :  { %5045 = vmatpush3.bf16.msra.mxu0 %v5705_v21 }
 0x2e0   :  { %5052 = vmatprep.subr.bf16.mxu0 %v5576_v7 }
 0x2e1   :  { %5039 = vmatpush3.bf16.msra.mxu1 %v5674_v14 }
 0x2e2   :  { %5046 = vmatprep.subr.bf16.mxu1 %v5576_v7 }
 0x3ad   :  { %v529_v12 = vpop.f32.mrb[8].mxu0 }
 0x3ae   :  { %v534_v13 = vrot.slane %v529_v12, 4  ;;  %v4678_v15 = vpop.f32.mrb[9].mxu0 }
 0x3af   :  { %v423_v16 = vpop.f32.mrb[0].mxu1 }
 0x3b0   :  { %v536_v17 = vadd.f32 %v534_v13, %v5737_v38  ;;  %v428_v19 = vrot.slane %v423_v16, 6  ;;  %v4667_v20 = vpop.f32.mrb[1].mxu1 }
 0x3b2   :  { %5259 = vtanh.f32 %v536_v17  ;;  %v430_v25 = vadd.f32 %v428_v19, %v5739_v41  ;;  %v4404_v29 = vmul.f32 -1.442695, %v536_v17 }
 0x3b4   :  { %5261 = vtanh.f32 %v430_v25  ;;  %v4402_v31 = vmul.f32 -1.442695, %v430_v25 }
 0x3b5   :  { %5263 = vpow2.f32 %v4404_v29 }
 0x3b6   :  { %5265 = vpow2.f32 %v4402_v31 }
 0x3bc   :  { %v5260_v26 = vpop.eup %5259 }
 0x3bd   :  { %549 = vrot.lane.b32.xlu0 %v5260_v26, %s5578_s3 }
 0x3be   :  { %v5262_v28 = vpop.eup %5261 }
 0x3bf   :  { %443 = vrot.lane.b32.xlu1 %v5262_v28, %s5578_s3  ;;  %v5264_v32 = vpop.eup %5263 }
 0x3c0   :  { %v5266_v34 = vpop.eup %5265  ;;  %v540_v35 = vadd.f32 1.0, %v5264_v32 }
 0x3c1   :  { %v434_v36 = vadd.f32 1.0, %v5266_v34 }
 0x3c2   :  { %5267 = vrcp.f32 %v540_v35 }
 0x3c3   :  { %5269 = vrcp.f32 %v434_v36 }
 0x3cc   :  { %v5268_v37 = vpop.eup %5267 }
 0x3cd   :  { %v5270_v42 = vpop.eup %5269  ;;  %v547_v46 = vmul.f32 %v5268_v37, %v545_v45 }
 0x3ce   :  { %v441_v50 = vmul.f32 %v5270_v42, %v439_v47 }
 0x42f   :  { %v550_v39 = vpop.permute.xlu0 %549 }
 0x430   :  { %v552_v40 = vmul.f32 %v5268_v37, %v550_v39 }
 0x431   :  { %v444_v43 = vpop.permute.xlu1 %443 }
 0x432   :  { %554 = vrot.lane.b32.xlu0 %v552_v40, %s5578_s3  ;;  %v446_v44 = vmul.f32 %v5270_v42, %v444_v43 }
 0x434   :  { %448 = vrot.lane.b32.xlu1 %v446_v44, %s5578_s3 }
 0x4a4   :  { %v555_v48 = vpop.permute.xlu0 %554 }
 0x4a5   :  { %v5783_v49 = vadd.f32 %v555_v48, %v547_v46 }
 0x4a6   :  { %v449_v51 = vpop.permute.xlu1 %448 }
 0x4a7   :  { %5271 = vtanh.f32 %v5783_v49  ;;  %v5786_v52 = vadd.f32 %v449_v51, %v441_v50  ;;  %v769_v34 = vrot.slane %v5783_v49, 2 }
 0x4a9   :  { %5273 = vtanh.f32 %v5786_v52  ;;  %v663_v36 = vrot.slane %v5786_v52, 6 }
 0x4b1   :  { %v5272_v53 = vpop.eup %5271 }
 0x4b2   :  { %560 = vrot.lane.b32.xlu0 %v5272_v53, %s5578_s3 }
 0x4b3   :  { %v5274_v54 = vpop.eup %5273 }
 0x4b4   :  { %454 = vrot.lane.b32.xlu1 %v5274_v54, %s5578_s3 }
 0x524   :  { %v561_v55 = vpop.permute.xlu0 %560 }
 0x525   :  { %v5791_v56 = vmul.f32 %v5268_v37, %v561_v55 }
 0x526   :  { %v455_v58 = vpop.permute.xlu1 %454 }
 0x527   :  { %v682_v57 = vrot.slane %v5791_v56, 4  ;;  %v5794_v59 = vmul.f32 %v5270_v42, %v455_v58 }
 0x529   :  { %683 = vrot.lane.b32.xlu0 %v682_v57, %s5579_s20  ;;  %v576_v60 = vrot.slane %v5794_v59, 2 }
 0x52b   :  { %577 = vrot.lane.b32.xlu1 %v576_v60, %s5579_s20 }
 0x59b   :  { %v684_v61 = vpop.permute.xlu0 %683 }
 0x59c   :  { %4699 = vmatmul.mubr.msk.f32.vlgmr.msra.gmra.mrb[10].mxu0 %vm146_vm2, %v684_v61 }
 0x59d   :  { %5054 = vmatpush3.bf16.msra.mxu0 %v5694_v18  ;;  %4720 = vmatprep.mubr.msk.f32.mxu0 %vm5577_vm0, %v5575_v5  ;;  %v578_v62 = vpop.permute.xlu1 %577 }
 0x59e   :  { %5055 = vmatprep.subr.bf16.mxu0 %v5576_v7  ;;  %4688 = vmatmul.mubr.msk.f32.vlgmr.msra.gmra.mrb[2].mxu1 %vm146_vm2, %v578_v62 }
 0x59f   :  { %5048 = vmatpush3.bf16.msra.mxu1 %v5659_v10  ;;  %4709 = vmatprep.mubr.msk.f32.mxu1 %vm5577_vm0, %v5575_v5 }
 0x5a0   :  { %5049 = vmatprep.subr.bf16.mxu1 %v5576_v7 }
 0x5a1   :  { %5057 = vmatpush3.bf16.msra.mxu0 %v5705_v21 }
 0x5a2   :  { %5064 = vmatprep.subr.bf16.mxu0 %v5576_v7 }
 0x5a3   :  { %5051 = vmatpush3.bf16.msra.mxu1 %v5674_v14 }
 0x5a4   :  { %5058 = vmatprep.subr.bf16.mxu1 %v5576_v7 }
 0x66f   :  { %v753_v63 = vpop.f32.mrb[10].mxu0 }
 0x670   :  { %v758_v0 = vrot.slane %v753_v63, 6  ;;  %v4700_v1 = vpop.f32.mrb[11].mxu0 }
 0x671   :  { %v647_v4 = vpop.f32.mrb[2].mxu1 }
 0x672   :  { %v760_v2 = vadd.f32 %v758_v0, %v5737_v38  ;;  %v652_v6 = vrot.slane %v647_v4, 4  ;;  %v4689_v8 = vpop.f32.mrb[3].mxu1 }
 0x674   :  { %5275 = vtanh.f32 %v760_v2  ;;  %v654_v9 = vadd.f32 %v652_v6, %v5739_v41  ;;  %v4408_v13 = vmul.f32 -1.442695, %v760_v2 }
 0x676   :  { %5277 = vtanh.f32 %v654_v9  ;;  %v4406_v15 = vmul.f32 -1.442695, %v654_v9 }
 0x677   :  { %5279 = vpow2.f32 %v4408_v13 }
 0x678   :  { %5281 = vpow2.f32 %v4406_v15 }
 0x67e   :  { %v5276_v11 = vpop.eup %5275 }
 0x67f   :  { %773 = vrot.lane.b32.xlu0 %v5276_v11, %s5578_s3 }
 0x680   :  { %v5278_v12 = vpop.eup %5277 }
 0x681   :  { %667 = vrot.lane.b32.xlu1 %v5278_v12, %s5578_s3  ;;  %v5280_v16 = vpop.eup %5279 }
 0x682   :  { %v5282_v17 = vpop.eup %5281  ;;  %v764_v19 = vadd.f32 1.0, %v5280_v16 }
 0x683   :  { %v658_v20 = vadd.f32 1.0, %v5282_v17 }
 0x684   :  { %5283 = vrcp.f32 %v764_v19 }
 0x685   :  { %5285 = vrcp.f32 %v658_v20 }
 0x68e   :  { %v5284_v25 = vpop.eup %5283 }
 0x68f   :  { %v5286_v29 = vpop.eup %5285  ;;  %v771_v35 = vmul.f32 %v5284_v25, %v769_v34 }
 0x690   :  { %v665_v40 = vmul.f32 %v5286_v29, %v663_v36 }
 0x6f1   :  { %v774_v26 = vpop.permute.xlu0 %773 }
 0x6f2   :  { %v776_v28 = vmul.f32 %v5284_v25, %v774_v26 }
 0x6f3   :  { %v668_v31 = vpop.permute.xlu1 %667 }
 0x6f4   :  { %778 = vrot.lane.b32.xlu0 %v776_v28, %s5578_s3  ;;  %v670_v32 = vmul.f32 %v5286_v29, %v668_v31 }
 0x6f6   :  { %672 = vrot.lane.b32.xlu1 %v670_v32, %s5578_s3 }
 0x766   :  { %v779_v37 = vpop.permute.xlu0 %778 }
 0x767   :  { %v5821_v39 = vadd.f32 %v779_v37, %v771_v35 }
 0x768   :  { %v673_v42 = vpop.permute.xlu1 %672 }
 0x769   :  { %5287 = vtanh.f32 %v5821_v39  ;;  %v5824_v43 = vadd.f32 %v673_v42, %v665_v40  ;;  %v988_v16 = vrot.slane %v5821_v39, 2 }
 0x76b   :  { %5289 = vtanh.f32 %v5824_v43 }
 0x773   :  { %v5288_v44 = vpop.eup %5287 }
 0x774   :  { %784 = vrot.lane.b32.xlu0 %v5288_v44, %s5578_s3 }
 0x775   :  { %v5290_v45 = vpop.eup %5289 }
 0x776   :  { %678 = vrot.lane.b32.xlu1 %v5290_v45, %s5578_s3 }
 0x7e6   :  { %v785_v46 = vpop.permute.xlu0 %784 }
 0x7e7   :  { %v5829_v47 = vmul.f32 %v5284_v25, %v785_v46  ;;  %v885_v25 = vrot.slane %v5824_v43, 6 }
 0x7e8   :  { %v679_v49 = vpop.permute.xlu1 %678 }
 0x7e9   :  { %v904_v48 = vrot.slane %v5829_v47, 2  ;;  %v5832_v50 = vmul.f32 %v5286_v29, %v679_v49 }
 0x7eb   :  { %905 = vrot.lane.b32.xlu0 %v904_v48, %s5579_s20  ;;  %v798_v51 = vrot.slane %v5832_v50, 4 }
 0x7ed   :  { %799 = vrot.lane.b32.xlu1 %v798_v51, %s5579_s20 }
 0x85d   :  { %v906_v52 = vpop.permute.xlu0 %905 }
 0x85e   :  { %4721 = vmatmul.mubr.msk.f32.vlgmr.msra.gmra.mrb[12].mxu0 %vm146_vm2, %v906_v52 }
 0x85f   :  { %5066 = vmatpush3.bf16.msra.mxu0 %v5694_v18  ;;  %4742 = vmatprep.mubr.msk.f32.mxu0 %vm5577_vm0, %v5575_v5  ;;  %v800_v53 = vpop.permute.xlu1 %799 }
 0x860   :  { %5067 = vmatprep.subr.bf16.mxu0 %v5576_v7  ;;  %4710 = vmatmul.mubr.msk.f32.vlgmr.msra.gmra.mrb[4].mxu1 %vm146_vm2, %v800_v53 }
 0x861   :  { %5060 = vmatpush3.bf16.msra.mxu1 %v5659_v10  ;;  %4731 = vmatprep.mubr.msk.f32.mxu1 %vm5577_vm0, %v5575_v5 }
 0x862   :  { %5061 = vmatprep.subr.bf16.mxu1 %v5576_v7 }
 0x863   :  { %5069 = vmatpush3.bf16.msra.mxu0 %v5705_v21 }
 0x864   :  { %5076 = vmatprep.subr.bf16.mxu0 %v5576_v7 }
 0x865   :  { %5063 = vmatpush3.bf16.msra.mxu1 %v5674_v14 }
 0x866   :  { %5070 = vmatprep.subr.bf16.mxu1 %v5576_v7 }
 0x931   :  { %v975_v54 = vpop.f32.mrb[12].mxu0 }
 0x932   :  { %v979_v55 = vadd.f32 %v975_v54, %v5737_v38  ;;  %v4722_v57 = vpop.f32.mrb[13].mxu0 }
 0x933   :  { %v869_v58 = vpop.f32.mrb[4].mxu1 }
 0x934   :  { %5291 = vtanh.f32 %v979_v55  ;;  %v874_v60 = vrot.slane %v869_v58, 2  ;;  %v4711_v61 = vpop.f32.mrb[5].mxu1  ;;  %v4412_v1 = vmul.f32 -1.442695, %v979_v55 }
 0x936   :  { %v876_v62 = vadd.f32 %v874_v60, %v5739_v41 }
 0x938   :  { %5293 = vtanh.f32 %v876_v62  ;;  %v4410_v2 = vmul.f32 -1.442695, %v876_v62 }
 0x939   :  { %5295 = vpow2.f32 %v4412_v1 }
 0x93a   :  { %5297 = vpow2.f32 %v4410_v2 }
 0x93e   :  { %v5292_v63 = vpop.eup %5291 }
 0x93f   :  { %992 = vrot.lane.b32.xlu0 %v5292_v63, %s5578_s3 }
 0x942   :  { %v5294_v0 = vpop.eup %5293 }
 0x943   :  { %889 = vrot.lane.b32.xlu1 %v5294_v0, %s5578_s3  ;;  %v5296_v4 = vpop.eup %5295 }
 0x944   :  { %v983_v38 = vadd.f32 1.0, %v5296_v4  ;;  %v5298_v6 = vpop.eup %5297 }
 0x945   :  { %v880_v8 = vadd.f32 1.0, %v5298_v6 }
 0x946   :  { %5299 = vrcp.f32 %v983_v38 }
 0x947   :  { %5301 = vrcp.f32 %v880_v8 }
 0x950   :  { %v5300_v9 = vpop.eup %5299 }
 0x951   :  { %v5302_v12 = vpop.eup %5301  ;;  %v990_v17 = vmul.f32 %v5300_v9, %v988_v16 }
 0x952   :  { %v887_v26 = vmul.f32 %v5302_v12, %v885_v25 }
 0x9b1   :  { %v993_v11 = vpop.permute.xlu0 %992 }
 0x9b2   :  { %v995_v41 = vmul.f32 %v5300_v9, %v993_v11 }
 0x9b4   :  { %997 = vrot.lane.b32.xlu0 %v995_v41, %s5578_s3 }
 0x9b5   :  { %v890_v13 = vpop.permute.xlu1 %889 }
 0x9b6   :  { %v892_v15 = vmul.f32 %v5302_v12, %v890_v13 }
 0x9b8   :  { %894 = vrot.lane.b32.xlu1 %v892_v15, %s5578_s3 }
 0xa26   :  { %v998_v19 = vpop.permute.xlu0 %997 }
 0xa27   :  { %v5858_v20 = vadd.f32 %v998_v19, %v990_v17 }
 0xa29   :  { %5303 = vtanh.f32 %v5858_v20  ;;  %v1204_v38 = vrot.slane %v5858_v20, 2 }
 0xa2a   :  { %v895_v28 = vpop.permute.xlu1 %894 }
 0xa2b   :  { %v5862_v29 = vadd.f32 %v895_v28, %v887_v26 }
 0xa2d   :  { %5305 = vtanh.f32 %v5862_v29  ;;  %v1101_v11 = vrot.slane %v5862_v29, 6 }
 0xa33   :  { %v5304_v31 = vpop.eup %5303 }
 0xa34   :  { %1003 = vrot.lane.b32.xlu0 %v5304_v31, %s5578_s3 }
 0xa37   :  { %v5306_v32 = vpop.eup %5305 }
 0xa38   :  { %900 = vrot.lane.b32.xlu1 %v5306_v32, %s5578_s3 }
 0xaa6   :  { %v1004_v34 = vpop.permute.xlu0 %1003 }
 0xaa7   :  { %v1006_v35 = vmul.f32 %v5300_v9, %v1004_v34 }
 0xaa9   :  { %1013 = vrot.lane.b32.xlu0 %v1006_v35, %s5579_s20 }
 0xaaa   :  { %v901_v36 = vpop.permute.xlu1 %900 }
 0xaab   :  { %v5868_v37 = vmul.f32 %v5302_v12, %v901_v36 }
 0xaad   :  { %v1017_v39 = vrot.slane %v5868_v37, 6 }
 0xaaf   :  { %1018 = vrot.lane.b32.xlu1 %v1017_v39, %s5579_s20 }
 0xb1b   :  { %v1014_v40 = vpop.permute.xlu0 %1013 }
 0xb1c   :  { %1016 = vst.msk [vmem:[#allocation3 + $0x8] sm:$0x3] %vm347_vm3, %v1014_v40  ;;  %4743 = vmatmul.mubr.msk.f32.vlgmr.msra.gmra.mrb[14].mxu0 %vm146_vm2, %v1014_v40 }
 0xb1d   :  { %5078 = vmatpush3.bf16.msra.mxu0 %v5694_v18  ;;  %4764 = vmatprep.mubr.msk.f32.mxu0 %vm5577_vm0, %v5575_v5 }
 0xb1e   :  { %5079 = vmatprep.subr.bf16.mxu0 %v5576_v7 }
 0xb21   :  { %5081 = vmatpush3.bf16.msra.mxu0 %v5705_v21  ;;  %v1019_v42 = vpop.permute.xlu1 %1018 }
 0xb22   :  { %5088 = vmatprep.subr.bf16.mxu0 %v5576_v7  ;;  %4732 = vmatmul.mubr.msk.f32.vlgmr.msra.gmra.mrb[6].mxu1 %vm146_vm2, %v1019_v42 }
 0xb23   :  { %5072 = vmatpush3.bf16.msra.mxu1 %v5659_v10  ;;  %4753 = vmatprep.mubr.msk.f32.mxu1 %vm5577_vm0, %v5575_v5 }
 0xb24   :  { %5073 = vmatprep.subr.bf16.mxu1 %v5576_v7 }
 0xb27   :  { %5075 = vmatpush3.bf16.msra.mxu1 %v5674_v14 }
 0xb28   :  { %5082 = vmatprep.subr.bf16.mxu1 %v5576_v7 }
 0xbef   :  { %v1188_v43 = vpop.f32.mrb[14].mxu0 }
 0xbf0   :  { %v1193_v44 = vrot.slane %v1188_v43, 2  ;;  %v4744_v45 = vpop.f32.mrb[15].mxu0 }
 0xbf2   :  { %v1195_v46 = vadd.f32 %v1193_v44, %v5732_v30 }
 0xbf4   :  { %5307 = vtanh.f32 %v1195_v46  ;;  %v4416_v54 = vmul.f32 -1.442695, %v1195_v46 }
 0xbf5   :  { %v1088_v48 = vpop.f32.mrb[6].mxu1 }
 0xbf6   :  { %v1092_v49 = vadd.f32 %v1088_v48, %v5735_v33  ;;  %v4733_v51 = vpop.f32.mrb[7].mxu1 }
 0xbf8   :  { %5309 = vtanh.f32 %v1092_v49  ;;  %v4414_v55 = vmul.f32 -1.442695, %v1092_v49 }
 0xbf9   :  { %5311 = vpow2.f32 %v4416_v54 }
 0xbfa   :  { %5313 = vpow2.f32 %v4414_v55 }
 0xbfe   :  { %v5308_v52 = vpop.eup %5307 }
 0xbff   :  { %1208 = vrot.lane.b32.xlu0 %v5308_v52, %s5578_s3 }
 0xc02   :  { %v5310_v53 = vpop.eup %5309 }
 0xc03   :  { %1105 = vrot.lane.b32.xlu1 %v5310_v53, %s5578_s3  ;;  %v5312_v57 = vpop.eup %5311 }
 0xc04   :  { %v1199_v58 = vadd.f32 1.0, %v5312_v57  ;;  %v5314_v60 = vpop.eup %5313 }
 0xc05   :  { %v1096_v61 = vadd.f32 1.0, %v5314_v60 }
 0xc06   :  { %5315 = vrcp.f32 %v1199_v58 }
 0xc07   :  { %5317 = vrcp.f32 %v1096_v61 }
 0xc10   :  { %v5316_v62 = vpop.eup %5315 }
 0xc11   :  { %v5318_v1 = vpop.eup %5317  ;;  %v1206_v6 = vmul.f32 %v5316_v62, %v1204_v38 }
 0xc12   :  { %v1103_v41 = vmul.f32 %v5318_v1, %v1101_v11 }
 0xc71   :  { %v1209_v63 = vpop.permute.xlu0 %1208 }
 0xc72   :  { %v1211_v0 = vmul.f32 %v5316_v62, %v1209_v63 }
 0xc74   :  { %1213 = vrot.lane.b32.xlu0 %v1211_v0, %s5578_s3 }
 0xc75   :  { %v1106_v2 = vpop.permute.xlu1 %1105 }
 0xc76   :  { %v1108_v4 = vmul.f32 %v5318_v1, %v1106_v2 }
 0xc78   :  { %1110 = vrot.lane.b32.xlu1 %v1108_v4, %s5578_s3 }
 0xce6   :  { %v1214_v8 = vpop.permute.xlu0 %1213 }
 0xce7   :  { %v5894_v9 = vadd.f32 %v1214_v8, %v1206_v6 }
 0xce9   :  { %5319 = vtanh.f32 %v5894_v9  ;;  %v1423_v61 = vrot.slane %v5894_v9, 2 }
 0xcea   :  { %v1111_v12 = vpop.permute.xlu1 %1110 }
 0xceb   :  { %v5898_v13 = vadd.f32 %v1111_v12, %v1103_v41 }
 0xced   :  { %5321 = vtanh.f32 %v5898_v13  ;;  %v1317_v63 = vrot.slane %v5898_v13, 6 }
 0xcf3   :  { %v5320_v15 = vpop.eup %5319 }
 0xcf4   :  { %1219 = vrot.lane.b32.xlu0 %v5320_v15, %s5578_s3 }
 0xcf7   :  { %v5322_v16 = vpop.eup %5321 }
 0xcf8   :  { %1116 = vrot.lane.b32.xlu1 %v5322_v16, %s5578_s3 }
 0xd66   :  { %v1220_v17 = vpop.permute.xlu0 %1219 }
 0xd67   :  { %v5903_v19 = vmul.f32 %v5316_v62, %v1220_v17 }
 0xd69   :  { %v1336_v20 = vrot.slane %v5903_v19, 6 }
 0xd6a   :  { %v1117_v25 = vpop.permute.xlu1 %1116 }
 0xd6b   :  { %1337 = vrot.lane.b32.xlu0 %v1336_v20, %s5579_s20  ;;  %v1119_v26 = vmul.f32 %v5318_v1, %v1117_v25 }
 0xd6d   :  { %1224 = vrot.lane.b32.xlu1 %v1119_v26, %s5579_s20 }
 0xddd   :  { %v1338_v28 = vpop.permute.xlu0 %1337 }
 0xdde   :  { %4765 = vmatmul.mubr.msk.f32.vlgmr.msra.gmra.mrb[16].mxu0 %vm146_vm2, %v1338_v28 }
 0xddf   :  { %5090 = vmatpush3.bf16.msra.mxu0 %v5694_v18  ;;  %4786 = vmatprep.mubr.msk.f32.mxu0 %vm5577_vm0, %v5575_v5  ;;  %v1225_v29 = vpop.permute.xlu1 %1224 }
 0xde0   :  { %5091 = vmatprep.subr.bf16.mxu0 %v5576_v7  ;;  %1227 = vst.msk [vmem:[#allocation2 + $0x8] sm:$0x3] %vm347_vm3, %v1225_v29  ;;  %4754 = vmatmul.mubr.msk.f32.vlgmr.msra.gmra.mrb[8].mxu1 %vm146_vm2, %v1225_v29 }
 0xde1   :  { %5084 = vmatpush3.bf16.msra.mxu1 %v5659_v10  ;;  %4775 = vmatprep.mubr.msk.f32.mxu1 %vm5577_vm0, %v5575_v5 }
 0xde2   :  { %5085 = vmatprep.subr.bf16.mxu1 %v5576_v7 }
 0xde3   :  { %5093 = vmatpush3.bf16.msra.mxu0 %v5705_v21 }
 0xde4   :  { %5100 = vmatprep.subr.bf16.mxu0 %v5576_v7 }
 0xde5   :  { %5087 = vmatpush3.bf16.msra.mxu1 %v5674_v14 }
 0xde6   :  { %5094 = vmatprep.subr.bf16.mxu1 %v5576_v7 }
 0xeb1   :  { %v1407_v31 = vpop.f32.mrb[16].mxu0 }
 0xeb2   :  { %v1412_v32 = vrot.slane %v1407_v31, 4  ;;  %v4766_v34 = vpop.f32.mrb[17].mxu0 }
 0xeb3   :  { %v1301_v36 = vpop.f32.mrb[8].mxu1 }
 0xeb4   :  { %v1414_v35 = vadd.f32 %v1412_v32, %v5732_v30  ;;  %v1306_v39 = vrot.slane %v1301_v36, 6  ;;  %v4755_v40 = vpop.f32.mrb[9].mxu1 }
 0xeb6   :  { %5323 = vtanh.f32 %v1414_v35  ;;  %v1308_v42 = vadd.f32 %v1306_v39, %v5735_v33  ;;  %v4420_v45 = vmul.f32 -1.442695, %v1414_v35 }
 0xeb8   :  { %5325 = vtanh.f32 %v1308_v42  ;;  %v4418_v46 = vmul.f32 -1.442695, %v1308_v42 }
 0xeb9   :  { %5327 = vpow2.f32 %v4420_v45 }
 0xeba   :  { %5329 = vpow2.f32 %v4418_v46 }
 0xec0   :  { %v5324_v43 = vpop.eup %5323 }
 0xec1   :  { %1427 = vrot.lane.b32.xlu0 %v5324_v43, %s5578_s3 }
 0xec2   :  { %v5326_v44 = vpop.eup %5325 }
 0xec3   :  { %1321 = vrot.lane.b32.xlu1 %v5326_v44, %s5578_s3  ;;  %v5328_v48 = vpop.eup %5327 }
 0xec4   :  { %v5330_v49 = vpop.eup %5329  ;;  %v1418_v51 = vadd.f32 1.0, %v5328_v48 }
 0xec5   :  { %v1312_v52 = vadd.f32 1.0, %v5330_v49 }
 0xec6   :  { %5331 = vrcp.f32 %v1418_v51 }
 0xec7   :  { %5333 = vrcp.f32 %v1312_v52 }
 0xed0   :  { %v5332_v53 = vpop.eup %5331 }
 0xed1   :  { %v5334_v57 = vpop.eup %5333  ;;  %v1425_v62 = vmul.f32 %v5332_v53, %v1423_v61 }
 0xed2   :  { %v1319_v2 = vmul.f32 %v5334_v57, %v1317_v63 }
 0xf33   :  { %v1428_v54 = vpop.permute.xlu0 %1427 }
 0xf34   :  { %v1430_v55 = vmul.f32 %v5332_v53, %v1428_v54 }
 0xf35   :  { %v1322_v58 = vpop.permute.xlu1 %1321 }
 0xf36   :  { %1432 = vrot.lane.b32.xlu0 %v1430_v55, %s5578_s3  ;;  %v1324_v60 = vmul.f32 %v5334_v57, %v1322_v58 }
 0xf38   :  { %1326 = vrot.lane.b32.xlu1 %v1324_v60, %s5578_s3 }
 0xfa8   :  { %v1433_v0 = vpop.permute.xlu0 %1432 }
 0xfa9   :  { %v5931_v1 = vadd.f32 %v1433_v0, %v1425_v62 }
 0xfaa   :  { %v1327_v4 = vpop.permute.xlu1 %1326 }
 0xfab   :  { %5335 = vtanh.f32 %v5931_v1  ;;  %v5934_v38 = vadd.f32 %v1327_v4, %v1319_v2  ;;  %v1645_v49 = vrot.slane %v5931_v1, 2 }
 0xfad   :  { %5337 = vtanh.f32 %v5934_v38  ;;  %v1539_v52 = vrot.slane %v5934_v38, 6 }
 0xfb5   :  { %v5336_v6 = vpop.eup %5335 }
 0xfb6   :  { %1438 = vrot.lane.b32.xlu0 %v5336_v6, %s5578_s3 }
 0xfb7   :  { %v5338_v8 = vpop.eup %5337 }
 0xfb8   :  { %1332 = vrot.lane.b32.xlu1 %v5338_v8, %s5578_s3 }
0x1028   :  { %v1439_v9 = vpop.permute.xlu0 %1438 }
0x1029   :  { %v5939_v11 = vmul.f32 %v5332_v53, %v1439_v9 }
0x102a   :  { %v1333_v12 = vpop.permute.xlu1 %1332 }
0x102b   :  { %v1558_v41 = vrot.slane %v5939_v11, 4  ;;  %v5942_v13 = vmul.f32 %v5334_v57, %v1333_v12 }
0x102d   :  { %1559 = vrot.lane.b32.xlu0 %v1558_v41, %s5579_s20  ;;  %v1452_v15 = vrot.slane %v5942_v13, 2 }
0x102f   :  { %1453 = vrot.lane.b32.xlu1 %v1452_v15, %s5579_s20 }
0x109f   :  { %v1560_v16 = vpop.permute.xlu0 %1559 }
0x10a0   :  { %4787 = vmatmul.mubr.msk.f32.vlgmr.msra.gmra.mrb[18].mxu0 %vm146_vm2, %v1560_v16 }
0x10a1   :  { %5102 = vmatpush3.bf16.msra.mxu0 %v5694_v18  ;;  %4808 = vmatprep.mubr.msk.f32.mxu0 %vm5577_vm0, %v5575_v5  ;;  %v1454_v17 = vpop.permute.xlu1 %1453 }
0x10a2   :  { %5103 = vmatprep.subr.bf16.mxu0 %v5576_v7  ;;  %4776 = vmatmul.mubr.msk.f32.vlgmr.msra.gmra.mrb[10].mxu1 %vm146_vm2, %v1454_v17 }
0x10a3   :  { %5096 = vmatpush3.bf16.msra.mxu1 %v5659_v10  ;;  %4797 = vmatprep.mubr.msk.f32.mxu1 %vm5577_vm0, %v5575_v5 }
0x10a4   :  { %5097 = vmatprep.subr.bf16.mxu1 %v5576_v7 }
0x10a5   :  { %5105 = vmatpush3.bf16.msra.mxu0 %v5705_v21 }
0x10a6   :  { %5122 = vmatprep.subr.bf16.mxu0 %v5576_v7 }
0x10a7   :  { %5099 = vmatpush3.bf16.msra.mxu1 %v5674_v14 }
0x1173   :  { %v1629_v18 = vpop.f32.mrb[18].mxu0 }
0x1174   :  { %v1634_v20 = vrot.slane %v1629_v18, 6  ;;  %v4788_v25 = vpop.f32.mrb[19].mxu0 }
0x1175   :  { %v1523_v28 = vpop.f32.mrb[10].mxu1 }
0x1176   :  { %v1636_v26 = vadd.f32 %v1634_v20, %v5732_v30  ;;  %v1528_v29 = vrot.slane %v1523_v28, 4  ;;  %v4777_v31 = vpop.f32.mrb[11].mxu1 }
0x1178   :  { %5339 = vtanh.f32 %v1636_v26  ;;  %v1530_v10 = vadd.f32 %v1528_v29, %v5735_v33  ;;  %v4424_v34 = vmul.f32 -1.442695, %v1636_v26 }
0x117a   :  { %5341 = vtanh.f32 %v1530_v10  ;;  %v4422_v14 = vmul.f32 -1.442695, %v1530_v10 }
0x117b   :  { %5343 = vpow2.f32 %v4424_v34 }
0x117c   :  { %5345 = vpow2.f32 %v4422_v14 }
0x1182   :  { %v5340_v32 = vpop.eup %5339 }
0x1183   :  { %1649 = vrot.lane.b32.xlu0 %v5340_v32, %s5578_s3 }
0x1184   :  { %v5342_v21 = vpop.eup %5341 }
0x1185   :  { %1543 = vrot.lane.b32.xlu1 %v5342_v21, %s5578_s3  ;;  %v5344_v35 = vpop.eup %5343 }
0x1186   :  { %v5346_v36 = vpop.eup %5345  ;;  %v1640_v39 = vadd.f32 1.0, %v5344_v35 }
0x1187   :  { %v1534_v40 = vadd.f32 1.0, %v5346_v36 }
0x1188   :  { %5347 = vrcp.f32 %v1640_v39 }
0x1189   :  { %5349 = vrcp.f32 %v1534_v40 }
0x1192   :  { %v5348_v42 = vpop.eup %5347 }
0x1193   :  { %v5350_v45 = vpop.eup %5349  ;;  %v1647_v51 = vmul.f32 %v5348_v42, %v1645_v49  ;;  %v1902_v49 = vld [vmem:[%s6654_s4 + $0x48] sm:$0xff] }
0x1194   :  { %v1541_v55 = vmul.f32 %v5350_v45, %v1539_v52 }
0x11f5   :  { %v1650_v43 = vpop.permute.xlu0 %1649 }
0x11f6   :  { %v1652_v44 = vmul.f32 %v5348_v42, %v1650_v43 }
0x11f7   :  { %v1544_v46 = vpop.permute.xlu1 %1543 }
0x11f8   :  { %1654 = vrot.lane.b32.xlu0 %v1652_v44, %s5578_s3  ;;  %v1546_v48 = vmul.f32 %v5350_v45, %v1544_v46 }
0x11fa   :  { %1548 = vrot.lane.b32.xlu1 %v1546_v48, %s5578_s3 }
0x126a   :  { %v1655_v53 = vpop.permute.xlu0 %1654 }
0x126b   :  { %v1657_v54 = vadd.f32 %v1655_v53, %v1647_v51  ;;  %v1904_v51 = vld [vmem:[%s6654_s4 + $0x58] sm:$0xff]  ;;  %v1907_v53 = vld [vmem:[%s6654_s4 + $0x70] sm:$0xff] }
0x126c   :  { %v1549_v57 = vpop.permute.xlu1 %1548  ;;  %v5106_v52 = vpack.c.bf16 %v1904_v51, %v1902_v49 }
0x126d   :  { %5351 = vtanh.f32 %v1657_v54  ;;  %v1551_v58 = vadd.f32 %v1549_v57, %v1541_v55  ;;  %v1864_v35 = vrot.slane %v1657_v54, 2  ;;  %v2095_v54 = vld [vmem:[%s6655_s5] sm:$0xff]  ;;  %v2097_v57 = vld [vmem:[%s6655_s5 + $0x10] sm:$0xff] }
0x126e   :  { %5107 = vmatprep.subr.bf16.mxu1 %v5106_v52 }
0x126f   :  { %5353 = vtanh.f32 %v1551_v58 }
0x1277   :  { %v5352_v60 = vpop.eup %5351 }
0x1278   :  { %1660 = vrot.lane.b32.xlu0 %v5352_v60, %s5578_s3  ;;  %v1894_v60 = vld [vmem:[%s6654_s4 + $0x8] sm:$0xff] }
0x1279   :  { %v5354_v61 = vpop.eup %5353 }
0x127a   :  { %1554 = vrot.lane.b32.xlu1 %v5354_v61, %s5578_s3  ;;  %v1896_v61 = vld [vmem:[%s6654_s4 + $0x18] sm:$0xff] }
0x12ea   :  { %v1661_v62 = vpop.permute.xlu0 %1660 }
0x12eb   :  { %v1663_v63 = vmul.f32 %v5348_v42, %v1661_v62  ;;  %v1761_v42 = vrot.slane %v1551_v58, 6  ;;  %v6037_v58 = vpack.c.bf16 %v2097_v57, %v2095_v54  ;;  %v5114_v62 = vpack.c.bf16 %v1896_v61, %v1894_v60 }
0x12ec   :  { %v1555_v1 = vpop.permute.xlu1 %1554 }
0x12ed   :  { %v1780_v0 = vrot.slane %v1663_v63, 2  ;;  %v5970_v2 = vmul.f32 %v5350_v45, %v1555_v1 }
0x12ef   :  { %1781 = vrot.lane.b32.xlu0 %v1780_v0, %s5579_s20  ;;  %v1674_v4 = vrot.slane %v5970_v2, 4  ;;  %v2101_v0 = vld [vmem:[%s6655_s5 + $0x30] sm:$0xff] }
0x12f1   :  { %1675 = vrot.lane.b32.xlu1 %v1674_v4, %s5579_s20 }
0x1361   :  { %v1782_v38 = vpop.permute.xlu0 %1781 }
0x1362   :  { %4809 = vmatmul.mubr.msk.f32.vlgmr.msra.gmra.mrb[20].mxu0 %vm146_vm2, %v1782_v38 }
0x1363   :  { %4819 = vmatprep.mubr.msk.f32.mxu0 %vm5577_vm0, %v5575_v5  ;;  %v1676_v6 = vpop.permute.xlu1 %1675  ;;  %5124 = vmatpush3.bf16.msra.mxu0 %v6037_v58 }
0x1364   :  { %4798 = vmatmul.mubr.msk.f32.vlgmr.msra.gmra.mrb[12].mxu1 %vm146_vm2, %v1676_v6  ;;  %5125 = vmatprep.subr.bf16.mxu0 %v5576_v7  ;;  %v2096_v6 = vld [vmem:[%s6655_s5 + $0x8] sm:$0xff] }
0x1365   :  { %1983 = vmatprep.mubr.f32.mxu1 %v5575_v5 }
0x1435   :  { %v1851_v8 = vpop.f32.mrb[20].mxu0 }
0x1436   :  { %v1855_v9 = vadd.f32 %v1851_v8, %v5732_v30  ;;  %v4810_v41 = vpop.f32.mrb[21].mxu0  ;;  %v2098_v8 = vld [vmem:[%s6655_s5 + $0x18] sm:$0xff] }
0x1437   :  { %v1745_v12 = vpop.f32.mrb[12].mxu1 }
0x1438   :  { %5355 = vtanh.f32 %v1855_v9  ;;  %v1750_v15 = vrot.slane %v1745_v12, 2  ;;  %v4799_v16 = vpop.f32.mrb[13].mxu1  ;;  %v4428_v25 = vmul.f32 -1.442695, %v1855_v9  ;;  %v6064_v9 = vpack.c.bf16 %v2098_v8, %v2096_v6 }
0x1439   :  { %v2102_v16 = vld [vmem:[%s6655_s5 + $0x38] sm:$0xff] }
0x143a   :  { %v1752_v17 = vadd.f32 %v1750_v15, %v5735_v33  ;;  %v2100_v15 = vld [vmem:[%s6655_s5 + $0x28] sm:$0xff] }
0x143c   :  { %5357 = vtanh.f32 %v1752_v17  ;;  %v4426_v26 = vmul.f32 -1.442695, %v1752_v17 }
0x143d   :  { %5359 = vpow2.f32 %v4428_v25 }
0x143e   :  { %5361 = vpow2.f32 %v4426_v26 }
0x1442   :  { %v5356_v18 = vpop.eup %5355 }
0x1443   :  { %1868 = vrot.lane.b32.xlu0 %v5356_v18, %s5578_s3  ;;  %v6079_v18 = vpack.c.bf16 %v2102_v16, %v2100_v15 }
0x1446   :  { %v5358_v20 = vpop.eup %5357 }
0x1447   :  { %1765 = vrot.lane.b32.xlu1 %v5358_v20, %s5578_s3  ;;  %v5360_v28 = vpop.eup %5359 }
0x1448   :  { %v1859_v30 = vadd.f32 1.0, %v5360_v28  ;;  %v5362_v29 = vpop.eup %5361 }
0x1449   :  { %v1756_v31 = vadd.f32 1.0, %v5362_v29 }
0x144a   :  { %5363 = vrcp.f32 %v1859_v30 }
0x144b   :  { %5365 = vrcp.f32 %v1756_v31  ;;  %v1895_v31 = vld [vmem:[%s6654_s4 + $0x10] sm:$0xff] }
0x1454   :  { %v5364_v10 = vpop.eup %5363 }
0x1455   :  { %v5985_v21 = vpop.eup %5365  ;;  %v1866_v36 = vmul.f32 %v5364_v10, %v1864_v35  ;;  %v1897_v35 = vld [vmem:[%s6654_s4 + $0x20] sm:$0xff] }
0x1456   :  { %v1763_v43 = vmul.f32 %v5985_v21, %v1761_v42 }
0x14b5   :  { %v1869_v32 = vpop.permute.xlu0 %1868 }
0x14b6   :  { %v1871_v33 = vmul.f32 %v5364_v10, %v1869_v32  ;;  %v1898_v32 = vld [vmem:[%s6654_s4 + $0x28] sm:$0xff] }
0x14b8   :  { %1873 = vrot.lane.b32.xlu0 %v1871_v33, %s5578_s3  ;;  %v1900_v33 = vld [vmem:[%s6654_s4 + $0x38] sm:$0xff] }
0x14b9   :  { %v1766_v34 = vpop.permute.xlu1 %1765 }
0x14ba   :  { %v1768_v14 = vmul.f32 %v5985_v21, %v1766_v34 }
0x14bc   :  { %1770 = vrot.lane.b32.xlu1 %v1768_v14, %s5578_s3  ;;  %v5118_v14 = vpack.c.bf16 %v1900_v33, %v1898_v32 }
0x152a   :  { %v1874_v39 = vpop.permute.xlu0 %1873 }
0x152b   :  { %v1876_v40 = vadd.f32 %v1874_v39, %v1866_v36  ;;  %v1899_v36 = vld [vmem:[%s6654_s4 + $0x30] sm:$0xff] }
0x152c   :  { %v5120_v42 = vpack.c.bf16 %v1899_v36, %v1897_v35 }
0x152d   :  { %5367 = vtanh.f32 %v1876_v40 }
0x152e   :  { %v1771_v44 = vpop.permute.xlu1 %1770 }
0x152f   :  { %v1773_v45 = vadd.f32 %v1771_v44, %v1763_v43 }
0x1531   :  { %5369 = vtanh.f32 %v1773_v45 }
0x1537   :  { %v5368_v46 = vpop.eup %5367 }
0x1538   :  { %1879 = vrot.lane.b32.xlu0 %v5368_v46, %s5578_s3 }
0x153b   :  { %v5370_v48 = vpop.eup %5369 }
0x153c   :  { %1229 = vrot.lane.b32.xlu0 %v5903_v19, %s5579_s20  ;;  %1776 = vrot.lane.b32.xlu1 %v5370_v48, %s5578_s3  ;;  %v1901_v19 = vld [vmem:[%s6654_s4 + $0x40] sm:$0xff] }
0x1540   :  { %1670 = vrot.lane.b32.xlu0 %v1663_v63, %s5579_s20  ;;  %1448 = vrot.lane.b32.xlu1 %v5939_v11, %s5579_s20  ;;  %v2099_v63 = vld [vmem:[%s6655_s5 + $0x20] sm:$0xff] }
0x1541   :  { %v6053_v1 = vpack.c.bf16 %v2101_v0, %v2099_v63 }
0x1543   :  { %5127 = vmatpush3.bf16.msra.mxu0 %v6053_v1 }
0x1544   :  { %350 = vrot.lane.b32.xlu0 %v5755_v3, %s5579_s20  ;;  %571 = vrot.lane.b32.xlu1 %v5791_v56, %s5579_s20  ;;  %v1903_v3 = vld [vmem:[%s6654_s4 + $0x50] sm:$0xff]  ;;  %v1906_v56 = vld [vmem:[%s6654_s4 + $0x68] sm:$0xff] }
0x1545   :  { %v5108_v11 = vpack.c.bf16 %v1903_v3, %v1901_v19  ;;  %5128 = vmatprep.subr.bf16.mxu0 %v5576_v7  ;;  %v2079_v19 = vld [vmem:[%s6656_s6] sm:$0x3] }
0x1546   :  { %4820 = vmatmul.mubr.f32.vlgmr.msra.gmra.mrb[22].mxu0 %v5575_v5  ;;  %v2088_v3 = vrot.slane %v2079_v19, %v5723_v24 }
0x1547   :  { %5109 = vmatpush1.bf16.msra.mxu1 %v5108_v11  ;;  %5130 = vmatpush3.bf16.msra.mxu0 %v6064_v9 }
0x1548   :  { %794 = vrot.lane.b32.xlu0 %v5829_v47, %s5579_s20  ;;  %v1908_v47 = vld [vmem:[%s6654_s4 + $0x78] sm:$0xff]  ;;  %4830 = vmatprep.mubr.msk.f32.mxu0 %vm5577_vm0, %v5575_v5 }
0x1549   :  { %5131 = vmatprep.subr.bf16.mxu0 %v5576_v7 }
0x154b   :  { %5133 = vmatpush3.bf16.msra.mxu0 %v6079_v18 }
0x154c   :  { %789 = vrot.lane.b32.xlu0 %v5832_v50, %s5579_s20  ;;  %v5110_v50 = vpack.c.bf16 %v1908_v47, %v1906_v56  ;;  %5140 = vmatprep.subr.bf16.mxu0 %v5576_v7  ;;  %v2084_v47 = vrot.slane %v2079_v19, %v5730_v27 }
0x154e   :  { %5111 = vmatprep.subr.bf16.mxu1 %v5110_v50  ;;  %4831 = vmatmul.mubr.f32.vlgmr.msra.gmra.mrb[24].mxu0 %v5575_v5 }
0x154f   :  { %5142 = vmatpush3.bf16.msra.mxu0 %v6064_v9  ;;  %4852 = vmatprep.mubr.msk.f32.mxu0 %vm5577_vm0, %v5575_v5 }
0x1550   :  { %1443 = vrot.lane.b32.xlu0 %v5942_v13, %s5579_s20  ;;  %v1905_v13 = vld [vmem:[%s6654_s4 + $0x60] sm:$0xff]  ;;  %5143 = vmatprep.subr.bf16.mxu0 %v5576_v7 }
0x1551   :  { %v5112_v55 = vpack.c.bf16 %v1907_v53, %v1905_v13 }
0x1553   :  { %5113 = vmatpush1.bf16.msra.mxu1 %v5112_v55  ;;  %5145 = vmatpush3.bf16.msra.mxu0 %v6079_v18 }
0x1554   :  { %5115 = vmatprep.subr.bf16.mxu1 %v5114_v62  ;;  %5152 = vmatprep.subr.bf16.mxu0 %v5576_v7 }
0x15aa   :  { %v1880_v4 = vpop.permute.xlu0 %1879 }
0x15ab   :  { %v1882_v38 = vmul.f32 %v5364_v10, %v1880_v4 }
0x15ad   :  { %1889 = vrot.lane.b32.xlu1 %v1882_v38, %s5579_s20 }
0x15ae   :  { %v1230_v41 = vpop.permute.xlu0 %1229  ;;  %v1777_v12 = vpop.permute.xlu1 %1776 }
0x15af   :  { %1232 = vst.msk [vmem:[#allocation3] sm:$0xc0] %vm353_vm4, %v1230_v41  ;;  %v1779_v17 = vmul.f32 %v5985_v21, %v1777_v12 }
0x15b1   :  { %565 = vrot.lane.b32.xlu1 %v5794_v59, %s5579_s20  ;;  %1884 = vrot.lane.b32.xlu0 %v1779_v17, %s5579_s20 }
0x15b2   :  { %v1671_v20 = vpop.permute.xlu0 %1670  ;;  %v1449_v25 = vpop.permute.xlu1 %1448 }
0x15b3   :  { %1673 = vst.msk [vmem:[#allocation3] sm:$0xc] %vm568_vm5, %v1671_v20 }
0x15b4   :  { %1451 = vst.msk [vmem:[#allocation3] sm:$0x30] %vm574_vm6, %v1449_v25 }
0x15b5   :  { %1008 = vrot.lane.b32.xlu1 %v5868_v37, %s5579_s20 }
0x15b6   :  { %v351_v26 = vpop.permute.xlu0 %350  ;;  %v572_v59 = vpop.permute.xlu1 %571 }
0x15b7   :  { %354 = vst.msk [vmem:[#allocation3 + $0x8] sm:$0xc0] %vm353_vm4, %v351_v26 }
0x15b8   :  { %575 = vst.msk [vmem:[#allocation3 + $0x8] sm:$0x30] %vm574_vm6, %v572_v59 }
0x15b9   :  { %1665 = vrot.lane.b32.xlu1 %v5970_v2, %s5579_s20  ;;  %v1893_v2 = vld [vmem:[%s6654_s4] sm:$0xff] }
0x15ba   :  { %v795_v28 = vpop.permute.xlu0 %794  ;;  %v5116_v34 = vpack.c.bf16 %v1895_v31, %v1893_v2 }
0x15bb   :  { %797 = vst.msk [vmem:[#allocation3 + $0x8] sm:$0xc] %vm568_vm5, %v795_v28 }
0x15be   :  { %v790_v37 = vpop.permute.xlu0 %789 }
0x15bf   :  { %792 = vst.msk [vmem:[#allocation2] sm:$0x30] %vm574_vm6, %v790_v37 }
0x15c2   :  { %v1444_v30 = vpop.permute.xlu0 %1443  ;;  %v1912_v44 = vld [vmem:[#allocation3 + $0x8] sm:$0xff] }
0x15c3   :  { %1446 = vst.msk [vmem:[#allocation2 + $0x8] sm:$0xc] %vm568_vm5, %v1444_v30 }
0x1619   :  { %v2169_v48 = vpop.f32.mrb[22].mxu0 }
0x161a   :  { %v4821_v49 = vpop.f32.mrb[23].mxu0 }
0x161f   :  { %v1890_v29 = vpop.permute.xlu1 %1889 }
0x1620   :  { %1892 = vst.msk [vmem:[#allocation3] sm:$0x3] %vm347_vm3, %v1890_v29 }
0x1621   :  { %v2264_v51 = vpop.f32.mrb[24].mxu0 }
0x1622   :  { %v4832_v52 = vpop.f32.mrb[25].mxu0  ;;  %v2269_v53 = vrot.slane %v2264_v51, 2 }
0x1623   :  { %v566_v10 = vpop.permute.xlu1 %565  ;;  %v1885_v21 = vpop.permute.xlu0 %1884 }
0x1624   :  { %569 = vst.msk [vmem:[#allocation2] sm:$0xc] %vm568_vm5, %v566_v10 }
0x1625   :  { %1887 = vst.msk [vmem:[#allocation2 + $0x8] sm:$0xc0] %vm353_vm4, %v1885_v21 }
0x1627   :  { %v1009_v39 = vpop.permute.xlu1 %1008  ;;  %v1911_v40 = vld [vmem:[#allocation3] sm:$0xff] }
0x1628   :  { %1011 = vst.msk [vmem:[#allocation2] sm:$0xc0] %vm353_vm4, %v1009_v39  ;;  %4429 = vmatmul.mubr.msk.f32.vlgmr.msra.gmra.mrb[14].mxu1 %vm146_vm2, %v1911_v40 }
0x1629   :  { %5117 = vmatpush1.bf16.msra.mxu1 %v5116_v34  ;;  %1989 = vmatprep.mubr.f32.mxu1 %v5575_v5 }
0x162a   :  { %5119 = vmatprep.subr.bf16.mxu1 %v5118_v14 }
0x162b   :  { %v1666_v43 = vpop.permute.xlu1 %1665 }
0x162c   :  { %1668 = vst.msk [vmem:[#allocation2 + $0x8] sm:$0x30] %vm574_vm6, %v1666_v43  ;;  %4430 = vmatmul.mubr.msk.f32.gmra.mrb[16].mxu1 %vm146_vm2, %v1912_v44 }
0x162d   :  { %5121 = vmatpush1.bf16.msra.mxu1 %v5120_v42  ;;  %2066 = vmatprep.mubr.f32.mxu1 %v5575_v5 }
0x162e   :  { %5134 = vmatprep.subr.bf16.mxu1 %v5576_v7 }
0x162f   :  { %v1909_v45 = vld [vmem:[#allocation2] sm:$0xff] }
0x1630   :  { %4431 = vmatmul.mubr.msk.f32.vlgmr.msra.gmra.mrb[14].mxu1 %vm146_vm2, %v1909_v45 }
0x1631   :  { %2072 = vmatprep.mubr.f32.mxu1 %v5575_v5  ;;  %5136 = vmatpush3.bf16.msra.mxu1 %v6037_v58 }
0x1632   :  { %5137 = vmatprep.subr.bf16.mxu1 %v5576_v7 }
0x1633   :  { %v1910_v46 = vld [vmem:[#allocation2 + $0x8] sm:$0xff] }
0x1634   :  { %4432 = vmatmul.mubr.msk.f32.gmra.mrb[16].mxu1 %vm146_vm2, %v1910_v46 }
0x1635   :  { %5139 = vmatpush3.bf16.msra.mxu1 %v6053_v1  ;;  %4841 = vmatprep.mubr.msk.f32.mxu1 %vm5577_vm0, %v5575_v5 }
0x1636   :  { %5146 = vmatprep.subr.bf16.mxu1 %v5576_v7 }
0x1703   :  { %v2068_v11 = vpop.f32.mrb[14].mxu1 }
0x1704   :  { %v2070_v56 = vpop.f32.mrb[15].mxu1  ;;  %v6150_v57 = vadd.f32 %v2084_v47, %v2068_v11 }
0x1705   :  { %v6146_v50 = vadd.f32 %v2088_v3, %v2070_v56 }
0x1706   :  { %v2173_v62 = vadd.f32 %v2169_v48, %v6150_v57 }
0x1707   :  { %v2074_v13 = vpop.f32.mrb[16].mxu1 }
0x1708   :  { %v6148_v54 = vadd.f32 %v2084_v47, %v2074_v13  ;;  %v2076_v55 = vpop.f32.mrb[17].mxu1  ;;  %v4433_v38 = vmul.f32 -1.442695, %v2173_v62 }
0x1709   :  { %v6152_v60 = vadd.f32 %v2088_v3, %v2076_v55 }
0x170b   :  { %v2271_v61 = vadd.f32 %v2269_v53, %v6152_v60 }
0x170d   :  { %5371 = vtanh.f32 %v2271_v61  ;;  %v4434_v4 = vmul.f32 -1.442695, %v2271_v61 }
0x170e   :  { %5373 = vtanh.f32 %v2173_v62 }
0x170f   :  { %5375 = vpow2.f32 %v4434_v4 }
0x1710   :  { %5377 = vpow2.f32 %v4433_v38 }
0x1717   :  { %v5372_v63 = vpop.eup %5371 }
0x1718   :  { %2281 = vrot.lane.b32.xlu1 %v5372_v63, %s5578_s3  ;;  %v5374_v0 = vpop.eup %5373 }
0x1719   :  { %v5376_v6 = vpop.eup %5375 }
0x171a   :  { %v2275_v8 = vadd.f32 1.0, %v5376_v6  ;;  %v5378_v41 = vpop.eup %5377 }
0x171b   :  { %v2177_v12 = vadd.f32 1.0, %v5378_v41 }
0x171c   :  { %2183 = vrot.lane.b32.xlu1 %v5374_v0, %s5578_s3  ;;  %5379 = vrcp.f32 %v2275_v8 }
0x171d   :  { %5381 = vrcp.f32 %v2177_v12 }
0x1726   :  { %v5380_v15 = vpop.eup %5379 }
0x1727   :  { %v5382_v20 = vpop.eup %5381  ;;  %v2279_v59 = vmul.f32 0.0, %v5380_v15 }
0x1728   :  { %v2181_v30 = vmul.f32 0.0, %v5382_v20 }
0x178a   :  { %v2282_v16 = vpop.permute.xlu1 %2281 }
0x178b   :  { %v2284_v17 = vmul.f32 %v5380_v15, %v2282_v16 }
0x178d   :  { %2286 = vrot.lane.b32.xlu0 %v2284_v17, %s5578_s3 }
0x178e   :  { %v2184_v25 = vpop.permute.xlu1 %2183 }
0x178f   :  { %v2186_v26 = vmul.f32 %v5382_v20, %v2184_v25 }
0x1791   :  { %2188 = vrot.lane.b32.xlu0 %v2186_v26, %s5578_s3 }
0x17ff   :  { %v2287_v28 = vpop.permute.xlu0 %2286 }
0x1800   :  { %v6160_v37 = vadd.f32 %v2287_v28, %v2279_v59 }
0x1802   :  { %5383 = vtanh.f32 %v6160_v37  ;;  %v2497_v0 = vrot.slane %v6160_v37, 2 }
0x1803   :  { %v2189_v29 = vpop.permute.xlu0 %2188 }
0x1804   :  { %v6163_v2 = vadd.f32 %v2189_v29, %v2181_v30 }
0x1806   :  { %5385 = vtanh.f32 %v6163_v2  ;;  %v2391_v6 = vrot.slane %v6163_v2, 6 }
0x180c   :  { %v5384_v31 = vpop.eup %5383 }
0x180d   :  { %2292 = vrot.lane.b32.xlu1 %v5384_v31, %s5578_s3 }
0x1810   :  { %v5386_v10 = vpop.eup %5385 }
0x1811   :  { %2194 = vrot.lane.b32.xlu1 %v5386_v10, %s5578_s3 }
0x187f   :  { %v2293_v32 = vpop.permute.xlu1 %2292 }
0x1880   :  { %v6168_v33 = vmul.f32 %v5380_v15, %v2293_v32 }
0x1882   :  { %v2410_v21 = vrot.slane %v6168_v33, 6 }
0x1883   :  { %v2195_v34 = vpop.permute.xlu1 %2194 }
0x1884   :  { %2411 = vrot.lane.b32.xlu0 %v2410_v21, %s5579_s20  ;;  %v2197_v14 = vmul.f32 %v5382_v20, %v2195_v34 }
0x1888   :  { %2297 = vrot.lane.b32.xlu0 %v2197_v14, %s5579_s20 }
0x18f6   :  { %v2412_v35 = vpop.permute.xlu0 %2411 }
0x18f7   :  { %4853 = vmatmul.mubr.msk.f32.vlgmr.msra.gmra.mrb[26].mxu0 %vm146_vm2, %v2412_v35 }
0x18f8   :  { %5154 = vmatpush3.bf16.msra.mxu0 %v6064_v9  ;;  %4874 = vmatprep.mubr.msk.f32.mxu0 %vm5577_vm0, %v5575_v5 }
0x18f9   :  { %5155 = vmatprep.subr.bf16.mxu0 %v5576_v7 }
0x18fa   :  { %v2298_v36 = vpop.permute.xlu0 %2297 }
0x18fb   :  { %2300 = vst.msk [vmem:[#allocation4] sm:$0x3] %vm347_vm3, %v2298_v36  ;;  %4842 = vmatmul.mubr.msk.f32.vlgmr.msra.gmra.mrb[18].mxu1 %vm146_vm2, %v2298_v36 }
0x18fc   :  { %5148 = vmatpush3.bf16.msra.mxu1 %v6037_v58  ;;  %5157 = vmatpush3.bf16.msra.mxu0 %v6079_v18 }
0x18fd   :  { %5149 = vmatprep.subr.bf16.mxu1 %v5576_v7  ;;  %4863 = vmatprep.mubr.msk.f32.mxu1 %vm5577_vm0, %v5575_v5 }
0x18fe   :  { %5164 = vmatprep.subr.bf16.mxu0 %v5576_v7 }
0x1900   :  { %5151 = vmatpush3.bf16.msra.mxu1 %v6053_v1 }
0x1901   :  { %5158 = vmatprep.subr.bf16.mxu1 %v5576_v7 }
0x19ca   :  { %v2481_v39 = vpop.f32.mrb[26].mxu0 }
0x19cb   :  { %v2486_v40 = vrot.slane %v2481_v39, 4  ;;  %v4854_v42 = vpop.f32.mrb[27].mxu0 }
0x19cd   :  { %v2488_v43 = vadd.f32 %v2486_v40, %v6152_v60 }
0x19ce   :  { %v2375_v44 = vpop.f32.mrb[18].mxu1 }
0x19cf   :  { %5387 = vtanh.f32 %v2488_v43  ;;  %v2380_v45 = vrot.slane %v2375_v44, 6  ;;  %v4843_v46 = vpop.f32.mrb[19].mxu1  ;;  %v4438_v52 = vmul.f32 -1.442695, %v2488_v43 }
0x19d1   :  { %v2382_v48 = vadd.f32 %v2380_v45, %v6150_v57 }
0x19d3   :  { %5389 = vtanh.f32 %v2382_v48  ;;  %v4436_v19 = vmul.f32 -1.442695, %v2382_v48 }
0x19d4   :  { %5391 = vpow2.f32 %v4438_v52 }
0x19d5   :  { %5393 = vpow2.f32 %v4436_v19 }
0x19d9   :  { %v5388_v49 = vpop.eup %5387 }
0x19da   :  { %2501 = vrot.lane.b32.xlu1 %v5388_v49, %s5578_s3 }
0x19dd   :  { %v5390_v51 = vpop.eup %5389 }
0x19de   :  { %2395 = vrot.lane.b32.xlu1 %v5390_v51, %s5578_s3  ;;  %v5392_v3 = vpop.eup %5391 }
0x19df   :  { %v2492_v11 = vadd.f32 1.0, %v5392_v3  ;;  %v5394_v56 = vpop.eup %5393 }
0x19e0   :  { %v2386_v47 = vadd.f32 1.0, %v5394_v56 }
0x19e1   :  { %5395 = vrcp.f32 %v2492_v11 }
0x19e2   :  { %5397 = vrcp.f32 %v2386_v47 }
0x19eb   :  { %v5396_v13 = vpop.eup %5395 }
0x19ec   :  { %v5398_v61 = vpop.eup %5397  ;;  %v2499_v4 = vmul.f32 %v5396_v13, %v2497_v0 }
0x19ed   :  { %v2393_v41 = vmul.f32 %v5398_v61, %v2391_v6 }
0x1a4c   :  { %v2502_v53 = vpop.permute.xlu1 %2501 }
0x1a4d   :  { %v2504_v55 = vmul.f32 %v5396_v13, %v2502_v53 }
0x1a4f   :  { %2506 = vrot.lane.b32.xlu0 %v2504_v55, %s5578_s3 }
0x1a50   :  { %v2396_v62 = vpop.permute.xlu1 %2395 }
0x1a51   :  { %v2398_v63 = vmul.f32 %v5398_v61, %v2396_v62 }
0x1a53   :  { %2400 = vrot.lane.b32.xlu0 %v2398_v63, %s5578_s3 }
0x1ac1   :  { %v2507_v38 = vpop.permute.xlu0 %2506 }
0x1ac2   :  { %v6196_v8 = vadd.f32 %v2507_v38, %v2499_v4 }
0x1ac4   :  { %5399 = vtanh.f32 %v6196_v8  ;;  %v2721_v11 = vrot.slane %v6196_v8, 2 }
0x1ac5   :  { %v2401_v12 = vpop.permute.xlu0 %2400 }
0x1ac6   :  { %v6199_v15 = vadd.f32 %v2401_v12, %v2393_v41 }
0x1ac8   :  { %5401 = vtanh.f32 %v6199_v15 }
0x1ace   :  { %v5400_v16 = vpop.eup %5399 }
0x1acf   :  { %2512 = vrot.lane.b32.xlu1 %v5400_v16, %s5578_s3 }
0x1ad2   :  { %v5402_v17 = vpop.eup %5401 }
0x1ad3   :  { %2406 = vrot.lane.b32.xlu0 %v5402_v17, %s5578_s3 }
0x1b41   :  { %v2513_v20 = vpop.permute.xlu1 %2512 }
0x1b42   :  { %v6204_v25 = vmul.f32 %v5396_v13, %v2513_v20  ;;  %v2615_v13 = vrot.slane %v6199_v15, 6 }
0x1b44   :  { %v2634_v26 = vrot.slane %v6204_v25, 4 }
0x1b45   :  { %v2407_v59 = vpop.permute.xlu0 %2406 }
0x1b46   :  { %v6207_v28 = vmul.f32 %v5398_v61, %v2407_v59  ;;  %2635 = vrot.lane.b32.xlu1 %v2634_v26, %s5579_s20 }
0x1b48   :  { %v2528_v37 = vrot.slane %v6207_v28, 2 }
0x1b4a   :  { %2529 = vrot.lane.b32.xlu0 %v2528_v37, %s5579_s20 }
0x1bb8   :  { %v2636_v30 = vpop.permute.xlu1 %2635 }
0x1bb9   :  { %4875 = vmatmul.mubr.msk.f32.vlgmr.msra.gmra.mrb[28].mxu0 %vm146_vm2, %v2636_v30 }
0x1bba   :  { %5166 = vmatpush3.bf16.msra.mxu0 %v6064_v9  ;;  %4896 = vmatprep.mubr.msk.f32.mxu0 %vm5577_vm0, %v5575_v5 }
0x1bbb   :  { %5167 = vmatprep.subr.bf16.mxu0 %v5576_v7 }
0x1bbc   :  { %v2530_v29 = vpop.permute.xlu0 %2529 }
0x1bbd   :  { %4864 = vmatmul.mubr.msk.f32.vlgmr.msra.gmra.mrb[20].mxu1 %vm146_vm2, %v2530_v29 }
0x1bbe   :  { %5160 = vmatpush3.bf16.msra.mxu1 %v6037_v58  ;;  %5169 = vmatpush3.bf16.msra.mxu0 %v6079_v18 }
0x1bbf   :  { %5161 = vmatprep.subr.bf16.mxu1 %v5576_v7  ;;  %4885 = vmatprep.mubr.msk.f32.mxu1 %vm5577_vm0, %v5575_v5 }
0x1bc0   :  { %5176 = vmatprep.subr.bf16.mxu0 %v5576_v7 }
0x1bc2   :  { %5163 = vmatpush3.bf16.msra.mxu1 %v6053_v1 }
0x1bc3   :  { %5170 = vmatprep.subr.bf16.mxu1 %v5576_v7 }
0x1c8c   :  { %v2705_v2 = vpop.f32.mrb[28].mxu0 }
0x1c8d   :  { %v2710_v31 = vrot.slane %v2705_v2, 6  ;;  %v4876_v10 = vpop.f32.mrb[29].mxu0 }
0x1c8f   :  { %v2712_v32 = vadd.f32 %v2710_v31, %v6152_v60 }
0x1c90   :  { %v2599_v21 = vpop.f32.mrb[20].mxu1 }
0x1c91   :  { %5403 = vtanh.f32 %v2712_v32  ;;  %v2604_v34 = vrot.slane %v2599_v21, 4  ;;  %v4865_v14 = vpop.f32.mrb[21].mxu1  ;;  %v4442_v40 = vmul.f32 -1.442695, %v2712_v32 }
0x1c93   :  { %v2606_v35 = vadd.f32 %v2604_v34, %v6150_v57 }
0x1c95   :  { %5405 = vtanh.f32 %v2606_v35  ;;  %v4440_v42 = vmul.f32 -1.442695, %v2606_v35 }
0x1c96   :  { %5407 = vpow2.f32 %v4442_v40 }
0x1c97   :  { %5409 = vpow2.f32 %v4440_v42 }
0x1c9b   :  { %v5404_v36 = vpop.eup %5403 }
0x1c9c   :  { %2725 = vrot.lane.b32.xlu1 %v5404_v36, %s5578_s3 }
0x1c9f   :  { %v5406_v39 = vpop.eup %5405 }
0x1ca0   :  { %2619 = vrot.lane.b32.xlu1 %v5406_v39, %s5578_s3  ;;  %v5408_v43 = vpop.eup %5407 }
0x1ca1   :  { %v2716_v44 = vadd.f32 1.0, %v5408_v43  ;;  %v5410_v45 = vpop.eup %5409 }
0x1ca2   :  { %v2610_v46 = vadd.f32 1.0, %v5410_v45 }
0x1ca3   :  { %5411 = vrcp.f32 %v2716_v44 }
0x1ca4   :  { %5413 = vrcp.f32 %v2610_v46 }
0x1cad   :  { %v5412_v48 = vpop.eup %5411 }
0x1cae   :  { %v5414_v52 = vpop.eup %5413  ;;  %v2723_v56 = vmul.f32 %v5412_v48, %v2721_v11 }
0x1caf   :  { %v2617_v55 = vmul.f32 %v5414_v52, %v2615_v13 }
0x1d0e   :  { %v2726_v49 = vpop.permute.xlu1 %2725 }
0x1d0f   :  { %v2728_v51 = vmul.f32 %v5412_v48, %v2726_v49 }
0x1d11   :  { %2730 = vrot.lane.b32.xlu0 %v2728_v51, %s5578_s3 }
0x1d12   :  { %v2620_v19 = vpop.permute.xlu1 %2619 }
0x1d13   :  { %v2622_v3 = vmul.f32 %v5414_v52, %v2620_v19 }
0x1d15   :  { %2624 = vrot.lane.b32.xlu0 %v2622_v3, %s5578_s3 }
0x1d83   :  { %v2731_v47 = vpop.permute.xlu0 %2730 }
0x1d84   :  { %v6234_v53 = vadd.f32 %v2731_v47, %v2723_v56 }
0x1d86   :  { %5415 = vtanh.f32 %v6234_v53  ;;  %v2942_v43 = vrot.slane %v6234_v53, 2 }
0x1d87   :  { %v2625_v61 = vpop.permute.xlu0 %2624 }
0x1d88   :  { %v6237_v62 = vadd.f32 %v2625_v61, %v2617_v55 }
0x1d8a   :  { %5417 = vtanh.f32 %v6237_v62 }
0x1d90   :  { %v5416_v63 = vpop.eup %5415 }
0x1d91   :  { %2736 = vrot.lane.b32.xlu1 %v5416_v63, %s5578_s3 }
0x1d94   :  { %v5418_v0 = vpop.eup %5417 }
0x1d95   :  { %2630 = vrot.lane.b32.xlu0 %v5418_v0, %s5578_s3 }
0x1e03   :  { %v2737_v4 = vpop.permute.xlu1 %2736 }
0x1e04   :  { %v6242_v38 = vmul.f32 %v5412_v48, %v2737_v4  ;;  %v2839_v48 = vrot.slane %v6237_v62, 6 }
0x1e06   :  { %v2858_v6 = vrot.slane %v6242_v38, 2 }
0x1e07   :  { %v2631_v8 = vpop.permute.xlu0 %2630 }
0x1e08   :  { %v6245_v41 = vmul.f32 %v5414_v52, %v2631_v8  ;;  %2859 = vrot.lane.b32.xlu1 %v2858_v6, %s5579_s20 }
0x1e0a   :  { %v2752_v12 = vrot.slane %v6245_v41, 4 }
0x1e0c   :  { %2753 = vrot.lane.b32.xlu0 %v2752_v12, %s5579_s20 }
0x1e7a   :  { %v2860_v15 = vpop.permute.xlu1 %2859 }
0x1e7b   :  { %4897 = vmatmul.mubr.msk.f32.vlgmr.msra.gmra.mrb[30].mxu0 %vm146_vm2, %v2860_v15 }
0x1e7c   :  { %5178 = vmatpush3.bf16.msra.mxu0 %v6064_v9  ;;  %4918 = vmatprep.mubr.msk.f32.mxu0 %vm5577_vm0, %v5575_v5 }
0x1e7d   :  { %5179 = vmatprep.subr.bf16.mxu0 %v5576_v7 }
0x1e7e   :  { %v2754_v16 = vpop.permute.xlu0 %2753 }
0x1e7f   :  { %4886 = vmatmul.mubr.msk.f32.vlgmr.msra.gmra.mrb[22].mxu1 %vm146_vm2, %v2754_v16 }
0x1e80   :  { %5181 = vmatpush3.bf16.msra.mxu0 %v6079_v18  ;;  %5172 = vmatpush3.bf16.msra.mxu1 %v6037_v58 }
0x1e81   :  { %5173 = vmatprep.subr.bf16.mxu1 %v5576_v7  ;;  %4907 = vmatprep.mubr.msk.f32.mxu1 %vm5577_vm0, %v5575_v5 }
0x1e82   :  { %5188 = vmatprep.subr.bf16.mxu0 %v5576_v7 }
0x1e84   :  { %5175 = vmatpush3.bf16.msra.mxu1 %v6053_v1 }
0x1e85   :  { %5182 = vmatprep.subr.bf16.mxu1 %v5576_v7 }
0x1f4e   :  { %v2929_v17 = vpop.f32.mrb[30].mxu0 }
0x1f4f   :  { %v2933_v20 = vadd.f32 %v2929_v17, %v6152_v60  ;;  %v4898_v26 = vpop.f32.mrb[31].mxu0 }
0x1f51   :  { %5419 = vtanh.f32 %v2933_v20  ;;  %v4446_v10 = vmul.f32 -1.442695, %v2933_v20 }
0x1f52   :  { %v2823_v59 = vpop.f32.mrb[22].mxu1 }
0x1f53   :  { %v2828_v37 = vrot.slane %v2823_v59, 2  ;;  %v4887_v30 = vpop.f32.mrb[23].mxu1 }
0x1f55   :  { %v2830_v29 = vadd.f32 %v2828_v37, %v6150_v57 }
0x1f57   :  { %5421 = vtanh.f32 %v2830_v29  ;;  %v4444_v32 = vmul.f32 -1.442695, %v2830_v29 }
0x1f58   :  { %5423 = vpow2.f32 %v4446_v10 }
0x1f59   :  { %5425 = vpow2.f32 %v4444_v32 }
0x1f5b   :  { %v5420_v2 = vpop.eup %5419 }
0x1f5c   :  { %2946 = vrot.lane.b32.xlu1 %v5420_v2, %s5578_s3 }
0x1f61   :  { %v5422_v31 = vpop.eup %5421 }
0x1f62   :  { %2843 = vrot.lane.b32.xlu1 %v5422_v31, %s5578_s3  ;;  %v5424_v21 = vpop.eup %5423 }
0x1f63   :  { %v2937_v60 = vadd.f32 1.0, %v5424_v21  ;;  %v5426_v34 = vpop.eup %5425 }
0x1f64   :  { %v2834_v14 = vadd.f32 1.0, %v5426_v34 }
0x1f65   :  { %5427 = vrcp.f32 %v2937_v60 }
0x1f66   :  { %5429 = vrcp.f32 %v2834_v14 }
0x1f6f   :  { %v5428_v35 = vpop.eup %5427 }
0x1f70   :  { %v5430_v39 = vpop.eup %5429  ;;  %v2944_v44 = vmul.f32 %v5428_v35, %v2942_v43 }
0x1f71   :  { %v2841_v49 = vmul.f32 %v5430_v39, %v2839_v48 }
0x1fce   :  { %v2947_v36 = vpop.permute.xlu1 %2946 }
0x1fcf   :  { %v2949_v57 = vmul.f32 %v5428_v35, %v2947_v36 }
0x1fd1   :  { %2951 = vrot.lane.b32.xlu0 %v2949_v57, %s5578_s3 }
0x1fd4   :  { %v2844_v40 = vpop.permute.xlu1 %2843 }
0x1fd5   :  { %v2846_v42 = vmul.f32 %v5430_v39, %v2844_v40 }
0x1fd7   :  { %2848 = vrot.lane.b32.xlu0 %v2846_v42, %s5578_s3 }
0x2043   :  { %v2952_v45 = vpop.permute.xlu0 %2951 }
0x2044   :  { %v6271_v46 = vadd.f32 %v2952_v45, %v2944_v44 }
0x2046   :  { %5431 = vtanh.f32 %v6271_v46  ;;  %v3160_v60 = vrot.slane %v6271_v46, 2 }
0x2049   :  { %v2849_v51 = vpop.permute.xlu0 %2848 }
0x204a   :  { %v6275_v52 = vadd.f32 %v2849_v51, %v2841_v49 }
0x204c   :  { %5433 = vtanh.f32 %v6275_v52  ;;  %v3057_v36 = vrot.slane %v6275_v52, 6 }
0x2050   :  { %v5432_v19 = vpop.eup %5431 }
0x2051   :  { %2957 = vrot.lane.b32.xlu1 %v5432_v19, %s5578_s3 }
0x2056   :  { %v5434_v3 = vpop.eup %5433 }
0x2057   :  { %2854 = vrot.lane.b32.xlu1 %v5434_v3, %s5578_s3 }
0x20c3   :  { %v2958_v11 = vpop.permute.xlu1 %2957 }
0x20c4   :  { %v2960_v56 = vmul.f32 %v5428_v35, %v2958_v11 }
0x20c6   :  { %2968 = vrot.lane.b32.xlu0 %v2960_v56, %s5579_s20 }
0x20c9   :  { %v2855_v47 = vpop.permute.xlu1 %2854 }
0x20ca   :  { %v6281_v13 = vmul.f32 %v5430_v39, %v2855_v47 }
0x20cc   :  { %v2973_v53 = vrot.slane %v6281_v13, 6 }
0x20ce   :  { %2974 = vrot.lane.b32.xlu0 %v2973_v53, %s5579_s20 }
0x2138   :  { %v2969_v55 = vpop.permute.xlu0 %2968 }
0x2139   :  { %2972 = vst.msk [vmem:[#allocation5 + $0x8] sm:$0x3] %vm347_vm3, %v2969_v55  ;;  %4919 = vmatmul.mubr.msk.f32.vlgmr.msra.gmra.mrb[32].mxu0 %vm146_vm2, %v2969_v55 }
0x213a   :  { %5190 = vmatpush3.bf16.msra.mxu0 %v6064_v9  ;;  %4940 = vmatprep.mubr.msk.f32.mxu0 %vm5577_vm0, %v5575_v5 }
0x213b   :  { %5191 = vmatprep.subr.bf16.mxu0 %v5576_v7 }
0x213e   :  { %5193 = vmatpush3.bf16.msra.mxu0 %v6079_v18 }
0x213f   :  { %5200 = vmatprep.subr.bf16.mxu0 %v5576_v7 }
0x2140   :  { %v2975_v61 = vpop.permute.xlu0 %2974 }
0x2141   :  { %4908 = vmatmul.mubr.msk.f32.vlgmr.msra.gmra.mrb[24].mxu1 %vm146_vm2, %v2975_v61 }
0x2142   :  { %5184 = vmatpush3.bf16.msra.mxu1 %v6037_v58  ;;  %4929 = vmatprep.mubr.msk.f32.mxu1 %vm5577_vm0, %v5575_v5 }
0x2143   :  { %5185 = vmatprep.subr.bf16.mxu1 %v5576_v7 }
0x2146   :  { %5187 = vmatpush3.bf16.msra.mxu1 %v6053_v1 }
0x2147   :  { %5194 = vmatprep.subr.bf16.mxu1 %v5576_v7 }
0x220c   :  { %v3144_v62 = vpop.f32.mrb[32].mxu0 }
0x220d   :  { %v3149_v63 = vrot.slane %v3144_v62, 2  ;;  %v4920_v0 = vpop.f32.mrb[33].mxu0 }
0x220f   :  { %v3151_v4 = vadd.f32 %v3149_v63, %v6146_v50 }
0x2211   :  { %5435 = vtanh.f32 %v3151_v4  ;;  %v4450_v17 = vmul.f32 -1.442695, %v3151_v4 }
0x2214   :  { %v3044_v6 = vpop.f32.mrb[24].mxu1 }
0x2215   :  { %v3048_v8 = vadd.f32 %v3044_v6, %v6148_v54  ;;  %v4909_v12 = vpop.f32.mrb[25].mxu1 }
0x2217   :  { %5437 = vtanh.f32 %v3048_v8  ;;  %v4448_v20 = vmul.f32 -1.442695, %v3048_v8 }
0x2218   :  { %5439 = vpow2.f32 %v4450_v17 }
0x2219   :  { %5441 = vpow2.f32 %v4448_v20 }
0x221b   :  { %v5436_v15 = vpop.eup %5435 }
0x221c   :  { %3164 = vrot.lane.b32.xlu1 %v5436_v15, %s5578_s3 }
0x2221   :  { %v5438_v16 = vpop.eup %5437 }
0x2222   :  { %3061 = vrot.lane.b32.xlu1 %v5438_v16, %s5578_s3  ;;  %v5440_v26 = vpop.eup %5439 }
0x2223   :  { %v3155_v59 = vadd.f32 1.0, %v5440_v26  ;;  %v5442_v37 = vpop.eup %5441 }
0x2224   :  { %v3052_v30 = vadd.f32 1.0, %v5442_v37 }
0x2225   :  { %5443 = vrcp.f32 %v3155_v59 }
0x2226   :  { %5445 = vrcp.f32 %v3052_v30 }
0x222f   :  { %v5444_v29 = vpop.eup %5443 }
0x2230   :  { %v5446_v10 = vpop.eup %5445  ;;  %v3162_v34 = vmul.f32 %v5444_v29, %v3160_v60 }
0x2231   :  { %v3059_v57 = vmul.f32 %v5446_v10, %v3057_v36 }
0x228e   :  { %v3165_v2 = vpop.permute.xlu1 %3164 }
0x228f   :  { %v3167_v31 = vmul.f32 %v5444_v29, %v3165_v2 }
0x2291   :  { %3169 = vrot.lane.b32.xlu0 %v3167_v31, %s5578_s3 }
0x2294   :  { %v3062_v32 = vpop.permute.xlu1 %3061 }
0x2295   :  { %v3064_v21 = vmul.f32 %v5446_v10, %v3062_v32 }
0x2297   :  { %3066 = vrot.lane.b32.xlu0 %v3064_v21, %s5578_s3 }
0x2303   :  { %v3170_v14 = vpop.permute.xlu0 %3169 }
0x2304   :  { %v6307_v35 = vadd.f32 %v3170_v14, %v3162_v34 }
0x2306   :  { %5447 = vtanh.f32 %v6307_v35  ;;  %v3381_v30 = vrot.slane %v6307_v35, 2 }
0x2309   :  { %v3067_v39 = vpop.permute.xlu0 %3066 }
0x230a   :  { %v6311_v40 = vadd.f32 %v3067_v39, %v3059_v57 }
0x230c   :  { %5449 = vtanh.f32 %v6311_v40  ;;  %v3275_v31 = vrot.slane %v6311_v40, 6 }
0x2310   :  { %v5448_v42 = vpop.eup %5447 }
0x2311   :  { %3175 = vrot.lane.b32.xlu1 %v5448_v42, %s5578_s3 }
0x2316   :  { %v5450_v43 = vpop.eup %5449 }
0x2317   :  { %3072 = vrot.lane.b32.xlu1 %v5450_v43, %s5578_s3 }
0x2383   :  { %v3176_v44 = vpop.permute.xlu1 %3175 }
0x2384   :  { %v6316_v45 = vmul.f32 %v5444_v29, %v3176_v44 }
0x2386   :  { %v3294_v46 = vrot.slane %v6316_v45, 6 }
0x2388   :  { %3295 = vrot.lane.b32.xlu0 %v3294_v46, %s5579_s20 }
0x2389   :  { %v3073_v48 = vpop.permute.xlu1 %3072 }
0x238a   :  { %v3075_v49 = vmul.f32 %v5446_v10, %v3073_v48 }
0x238c   :  { %3180 = vrot.lane.b32.xlu0 %v3075_v49, %s5579_s20 }
0x23fa   :  { %v3296_v51 = vpop.permute.xlu0 %3295 }
0x23fb   :  { %4941 = vmatmul.mubr.msk.f32.vlgmr.msra.gmra.mrb[34].mxu0 %vm146_vm2, %v3296_v51 }
0x23fc   :  { %5202 = vmatpush3.bf16.msra.mxu0 %v6064_v9  ;;  %4962 = vmatprep.mubr.msk.f32.mxu0 %vm5577_vm0, %v5575_v5 }
0x23fd   :  { %5203 = vmatprep.subr.bf16.mxu0 %v5576_v7 }
0x23fe   :  { %v3181_v52 = vpop.permute.xlu0 %3180 }
0x23ff   :  { %3184 = vst.msk [vmem:[#allocation4 + $0x8] sm:$0x3] %vm347_vm3, %v3181_v52  ;;  %4930 = vmatmul.mubr.msk.f32.vlgmr.msra.gmra.mrb[26].mxu1 %vm146_vm2, %v3181_v52 }
0x2400   :  { %5196 = vmatpush3.bf16.msra.mxu1 %v6037_v58  ;;  %5205 = vmatpush3.bf16.msra.mxu0 %v6079_v18 }
0x2401   :  { %5197 = vmatprep.subr.bf16.mxu1 %v5576_v7  ;;  %4951 = vmatprep.mubr.msk.f32.mxu1 %vm5577_vm0, %v5575_v5 }
0x2402   :  { %5212 = vmatprep.subr.bf16.mxu0 %v5576_v7 }
0x2404   :  { %5199 = vmatpush3.bf16.msra.mxu1 %v6053_v1 }
0x2405   :  { %5206 = vmatprep.subr.bf16.mxu1 %v5576_v7 }
0x24ce   :  { %v3365_v19 = vpop.f32.mrb[34].mxu0 }
0x24cf   :  { %v3370_v3 = vrot.slane %v3365_v19, 4  ;;  %v4942_v11 = vpop.f32.mrb[35].mxu0 }
0x24d1   :  { %v3372_v56 = vadd.f32 %v3370_v3, %v6146_v50 }
0x24d2   :  { %v3259_v47 = vpop.f32.mrb[26].mxu1 }
0x24d3   :  { %5451 = vtanh.f32 %v3372_v56  ;;  %v3264_v53 = vrot.slane %v3259_v47, 6  ;;  %v4931_v55 = vpop.f32.mrb[27].mxu1  ;;  %v4454_v0 = vmul.f32 -1.442695, %v3372_v56 }
0x24d5   :  { %v3266_v61 = vadd.f32 %v3264_v53, %v6148_v54 }
0x24d7   :  { %5453 = vtanh.f32 %v3266_v61  ;;  %v4452_v4 = vmul.f32 -1.442695, %v3266_v61 }
0x24d8   :  { %5455 = vpow2.f32 %v4454_v0 }
0x24d9   :  { %5457 = vpow2.f32 %v4452_v4 }
0x24dd   :  { %v5452_v62 = vpop.eup %5451 }
0x24de   :  { %3385 = vrot.lane.b32.xlu1 %v5452_v62, %s5578_s3 }
0x24e1   :  { %v5454_v63 = vpop.eup %5453 }
0x24e2   :  { %3279 = vrot.lane.b32.xlu1 %v5454_v63, %s5578_s3  ;;  %v5456_v6 = vpop.eup %5455 }
0x24e3   :  { %v3376_v8 = vadd.f32 1.0, %v5456_v6  ;;  %v5458_v12 = vpop.eup %5457 }
0x24e4   :  { %v3270_v15 = vadd.f32 1.0, %v5458_v12 }
0x24e5   :  { %5459 = vrcp.f32 %v3376_v8 }
0x24e6   :  { %5461 = vrcp.f32 %v3270_v15 }
0x24ef   :  { %v5460_v16 = vpop.eup %5459 }
0x24f0   :  { %v5462_v26 = vpop.eup %5461  ;;  %v3383_v29 = vmul.f32 %v5460_v16, %v3381_v30 }
0x24f1   :  { %v3277_v32 = vmul.f32 %v5462_v26, %v3275_v31 }
0x2550   :  { %v3386_v17 = vpop.permute.xlu1 %3385 }
0x2551   :  { %v3388_v20 = vmul.f32 %v5460_v16, %v3386_v17 }
0x2553   :  { %3390 = vrot.lane.b32.xlu0 %v3388_v20, %s5578_s3 }
0x2554   :  { %v3280_v59 = vpop.permute.xlu1 %3279 }
0x2555   :  { %v3282_v37 = vmul.f32 %v5462_v26, %v3280_v59 }
0x2557   :  { %3284 = vrot.lane.b32.xlu0 %v3282_v37, %s5578_s3 }
0x25c5   :  { %v3391_v2 = vpop.permute.xlu0 %3390 }
0x25c6   :  { %v6344_v10 = vadd.f32 %v3391_v2, %v3383_v29 }
0x25c8   :  { %5463 = vtanh.f32 %v6344_v10  ;;  %v3605_v8 = vrot.slane %v6344_v10, 2 }
0x25c9   :  { %v3285_v21 = vpop.permute.xlu0 %3284 }
0x25ca   :  { %v6347_v60 = vadd.f32 %v3285_v21, %v3277_v32 }
0x25cc   :  { %5465 = vtanh.f32 %v6347_v60 }
0x25d2   :  { %v5464_v34 = vpop.eup %5463 }
0x25d3   :  { %3396 = vrot.lane.b32.xlu1 %v5464_v34, %s5578_s3 }
0x25d6   :  { %v5466_v14 = vpop.eup %5465 }
0x25d7   :  { %3290 = vrot.lane.b32.xlu0 %v5466_v14, %s5578_s3 }
0x2645   :  { %v3397_v35 = vpop.permute.xlu1 %3396 }
0x2646   :  { %v6352_v36 = vmul.f32 %v5460_v16, %v3397_v35  ;;  %v3499_v16 = vrot.slane %v6347_v60, 6 }
0x2648   :  { %v3518_v57 = vrot.slane %v6352_v36, 4 }
0x2649   :  { %v3291_v39 = vpop.permute.xlu0 %3290 }
0x264a   :  { %v6355_v40 = vmul.f32 %v5462_v26, %v3291_v39  ;;  %3519 = vrot.lane.b32.xlu1 %v3518_v57, %s5579_s20 }
0x264c   :  { %v3412_v42 = vrot.slane %v6355_v40, 2 }
0x264e   :  { %3413 = vrot.lane.b32.xlu0 %v3412_v42, %s5579_s20 }
0x26bc   :  { %v3520_v43 = vpop.permute.xlu1 %3519 }
0x26bd   :  { %4963 = vmatmul.mubr.msk.f32.vlgmr.msra.gmra.mrb[36].mxu0 %vm146_vm2, %v3520_v43 }
0x26be   :  { %5214 = vmatpush3.bf16.msra.mxu0 %v6064_v9  ;;  %4984 = vmatprep.mubr.msk.f32.mxu0 %vm5577_vm0, %v5575_v5 }
0x26bf   :  { %5215 = vmatprep.subr.bf16.mxu0 %v5576_v7 }
0x26c0   :  { %v3414_v44 = vpop.permute.xlu0 %3413 }
0x26c1   :  { %4952 = vmatmul.mubr.msk.f32.vlgmr.msra.gmra.mrb[28].mxu1 %vm146_vm2, %v3414_v44 }
0x26c2   :  { %5208 = vmatpush3.bf16.msra.mxu1 %v6037_v58  ;;  %5217 = vmatpush3.bf16.msra.mxu0 %v6079_v18 }
0x26c3   :  { %5209 = vmatprep.subr.bf16.mxu1 %v5576_v7  ;;  %4973 = vmatprep.mubr.msk.f32.mxu1 %vm5577_vm0, %v5575_v5 }
0x26c6   :  { %5211 = vmatpush3.bf16.msra.mxu1 %v6053_v1 }
0x26c7   :  { %5218 = vmatprep.subr.bf16.mxu1 %v5576_v7 }
0x2790   :  { %v3589_v9 = vpop.f32.mrb[36].mxu0 }
0x2791   :  { %v3594_v46 = vrot.slane %v3589_v9, 6  ;;  %v4964_v48 = vpop.f32.mrb[37].mxu0 }
0x2793   :  { %v3596_v49 = vadd.f32 %v3594_v46, %v6146_v50 }
0x2794   :  { %v3483_v51 = vpop.f32.mrb[28].mxu1 }
0x2795   :  { %5467 = vtanh.f32 %v3596_v49  ;;  %v3488_v52 = vrot.slane %v3483_v51, 4  ;;  %v4953_v58 = vpop.f32.mrb[29].mxu1  ;;  %v4458_v1 = vmul.f32 -1.442695, %v3596_v49 }
0x2797   :  { %v3490_v18 = vadd.f32 %v3488_v52, %v6148_v54 }
0x2799   :  { %5469 = vtanh.f32 %v3490_v18  ;;  %v4456_v11 = vmul.f32 -1.442695, %v3490_v18 }
0x279a   :  { %5471 = vpow2.f32 %v4458_v1 }
0x279b   :  { %5473 = vpow2.f32 %v4456_v11 }
0x279f   :  { %v5468_v19 = vpop.eup %5467 }
0x27a0   :  { %3609 = vrot.lane.b32.xlu1 %v5468_v19, %s5578_s3 }
0x27a3   :  { %v5470_v3 = vpop.eup %5469 }
0x27a4   :  { %3503 = vrot.lane.b32.xlu1 %v5470_v3, %s5578_s3  ;;  %v5472_v56 = vpop.eup %5471 }
0x27a5   :  { %v3600_v47 = vadd.f32 1.0, %v5472_v56  ;;  %v5474_v53 = vpop.eup %5473 }
0x27a6   :  { %v3494_v55 = vadd.f32 1.0, %v5474_v53 }
0x27a7   :  { %5475 = vrcp.f32 %v3600_v47 }
0x27a8   :  { %5477 = vrcp.f32 %v3494_v55 }
0x27b1   :  { %v5476_v61 = vpop.eup %5475 }
0x27b2   :  { %v5478_v0 = vpop.eup %5477  ;;  %v3607_v12 = vmul.f32 %v5476_v61, %v3605_v8 }
0x27b3   :  { %v3501_v20 = vmul.f32 %v5478_v0, %v3499_v16 }
0x2812   :  { %v3610_v62 = vpop.permute.xlu1 %3609 }
0x2813   :  { %v3612_v63 = vmul.f32 %v5476_v61, %v3610_v62 }
0x2815   :  { %3614 = vrot.lane.b32.xlu0 %v3612_v63, %s5578_s3 }
0x2816   :  { %v3504_v4 = vpop.permute.xlu1 %3503 }
0x2817   :  { %v3506_v6 = vmul.f32 %v5478_v0, %v3504_v4 }
0x2819   :  { %3508 = vrot.lane.b32.xlu0 %v3506_v6, %s5578_s3 }
0x2887   :  { %v3615_v15 = vpop.permute.xlu0 %3614 }
0x2888   :  { %v6381_v17 = vadd.f32 %v3615_v15, %v3607_v12 }
0x288a   :  { %5479 = vtanh.f32 %v6381_v17  ;;  %v3826_v11 = vrot.slane %v6381_v17, 2 }
0x288b   :  { %v3509_v26 = vpop.permute.xlu0 %3508 }
0x288c   :  { %v6384_v59 = vadd.f32 %v3509_v26, %v3501_v20 }
0x288e   :  { %5481 = vtanh.f32 %v6384_v59 }
0x2894   :  { %v5480_v37 = vpop.eup %5479 }
0x2895   :  { %3620 = vrot.lane.b32.xlu1 %v5480_v37, %s5578_s3 }
0x2898   :  { %v5482_v30 = vpop.eup %5481 }
0x2899   :  { %3514 = vrot.lane.b32.xlu0 %v5482_v30, %s5578_s3  ;;  %v3868_v30 = vld [vmem:[#allocation5 + $0x8] sm:$0x3] }
0x2907   :  { %v3621_v29 = vpop.permute.xlu1 %3620 }
0x2908   :  { %v3623_v2 = vmul.f32 %v5476_v61, %v3621_v29 }
0x290a   :  { %v3742_v31 = vrot.slane %v3623_v2, 2 }
0x290b   :  { %v3515_v10 = vpop.permute.xlu0 %3514 }
0x290c   :  { %v3517_v32 = vmul.f32 %v5478_v0, %v3515_v10  ;;  %3743 = vrot.lane.b32.xlu1 %v3742_v31, %s5579_s20 }
0x290e   :  { %v3636_v21 = vrot.slane %v3517_v32, 4 }
0x2910   :  { %3637 = vrot.lane.b32.xlu0 %v3636_v21, %s5579_s20 }
0x297e   :  { %v3744_v60 = vpop.permute.xlu1 %3743 }
0x297f   :  { %4985 = vmatmul.mubr.msk.f32.vlgmr.msra.gmra.mrb[38].mxu0 %vm146_vm2, %v3744_v60 }
0x2982   :  { %v3638_v34 = vpop.permute.xlu0 %3637 }
0x2983   :  { %4974 = vmatmul.mubr.msk.f32.vlgmr.msra.gmra.mrb[30].mxu1 %vm146_vm2, %v3638_v34 }
0x2984   :  { %5003 = vmatprep.mubr.msk.f32.mxu1 %vm5577_vm0, %v5575_v5  ;;  %vm4296_vm0 = vcmask 523264  }
0x2a52   :  { %v3813_v14 = vpop.f32.mrb[38].mxu0 }
0x2a53   :  { %v3817_v35 = vadd.f32 %v3813_v14, %v6146_v50  ;;  %v4986_v57 = vpop.f32.mrb[39].mxu0  ;;  %v4463_v14 = vld [vmem:[%s6657_s7] ss:$0 sm:$0xff] }
0x2a55   :  { %5483 = vtanh.f32 %v3817_v35  ;;  %v4462_v48 = vmul.f32 -1.442695, %v3817_v35 }
0x2a56   :  { %v3707_v39 = vpop.f32.mrb[30].mxu1 }
0x2a57   :  { %v3712_v42 = vrot.slane %v3707_v39, 2  ;;  %v4975_v43 = vpop.f32.mrb[31].mxu1 }
0x2a59   :  { %v3714_v44 = vadd.f32 %v3712_v42, %v6148_v54 }
0x2a5b   :  { %5485 = vtanh.f32 %v3714_v44  ;;  %v4460_v5 = vmul.f32 -1.442695, %v3714_v44 }
0x2a5c   :  { %5487 = vpow2.f32 %v4462_v48 }
0x2a5d   :  { %5489 = vpow2.f32 %v4460_v5  ;;  %v3860_v5 = vld [vmem:[#allocation4 + $0x8] sm:$0x3] }
0x2a5f   :  { %v5484_v9 = vpop.eup %5483 }
0x2a60   :  { %3830 = vrot.lane.b32.xlu1 %v5484_v9, %s5578_s3  ;;  %v3856_v9 = vld [vmem:[#allocation4] sm:$0x3] }
0x2a65   :  { %v5486_v46 = vpop.eup %5485 }
0x2a66   :  { %3727 = vrot.lane.b32.xlu1 %v5486_v46, %s5578_s3  ;;  %v5488_v49 = vpop.eup %5487 }
0x2a67   :  { %v3821_v50 = vadd.f32 1.0, %v5488_v49  ;;  %v5490_v51 = vpop.eup %5489 }
0x2a68   :  { %v3718_v52 = vadd.f32 1.0, %v5490_v51 }
0x2a69   :  { %5491 = vrcp.f32 %v3821_v50 }
0x2a6a   :  { %5493 = vrcp.f32 %v3718_v52 }
0x2a73   :  { %v5492_v58 = vpop.eup %5491 }
0x2a74   :  { %v5494_v19 = vpop.eup %5493  ;;  %v3828_v56 = vmul.f32 %v5492_v58, %v3826_v11 }
0x2ad2   :  { %v3831_v18 = vpop.permute.xlu1 %3830 }
0x2ad3   :  { %v3833_v54 = vmul.f32 %v5492_v58, %v3831_v18 }
0x2ad5   :  { %3835 = vrot.lane.b32.xlu0 %v3833_v54, %s5578_s3 }
0x2ad8   :  { %v3728_v3 = vpop.permute.xlu1 %3727 }
0x2ad9   :  { %v3730_v1 = vmul.f32 %v5494_v19, %v3728_v3 }
0x2adb   :  { %3732 = vrot.lane.b32.xlu0 %v3730_v1, %s5578_s3 }
0x2adf   :  { %3631 = vrot.lane.b32.xlu0 %v3623_v2, %s5579_s20 }
0x2ae3   :  { %3407 = vrot.lane.b32.xlu0 %v6352_v36, %s5579_s20  ;;  %v3723_v36 = vrot.slane %v6384_v59, 6 }
0x2ae7   :  { %2747 = vrot.lane.b32.xlu0 %v6242_v38, %s5579_s20  ;;  %v3725_v38 = vmul.f32 %v5494_v19, %v3723_v36 }
0x2aeb   :  { %2523 = vrot.lane.b32.xlu0 %v6204_v25, %s5579_s20 }
0x2aef   :  { %2517 = vrot.lane.b32.xlu0 %v6207_v28, %s5579_s20 }
0x2af3   :  { %2962 = vrot.lane.b32.xlu0 %v6281_v13, %s5579_s20 }
0x2af7   :  { %3625 = vrot.lane.b32.xlu0 %v3517_v32, %s5579_s20 }
0x2b47   :  { %v3836_v47 = vpop.permute.xlu0 %3835 }
0x2b48   :  { %v3838_v53 = vadd.f32 %v3836_v47, %v3828_v56 }
0x2b4a   :  { %5495 = vtanh.f32 %v3838_v53 }
0x2b4d   :  { %v3733_v55 = vpop.permute.xlu0 %3732 }
0x2b4e   :  { %v3735_v61 = vadd.f32 %v3733_v55, %v3725_v38 }
0x2b50   :  { %5497 = vtanh.f32 %v3735_v61 }
0x2b51   :  { %v3632_v25 = vpop.permute.xlu0 %3631 }
0x2b52   :  { %3635 = vst.msk [vmem:[#allocation5] sm:$0xc] %vm568_vm5, %v3632_v25 }
0x2b54   :  { %v5496_v28 = vpop.eup %5495 }
0x2b55   :  { %v3408_v62 = vpop.permute.xlu0 %3407  ;;  %3841 = vrot.lane.b32.xlu1 %v5496_v28, %s5578_s3 }
0x2b56   :  { %3411 = vst.msk [vmem:[#allocation5] sm:$0x30] %vm574_vm6, %v3408_v62 }
0x2b59   :  { %v2748_v13 = vpop.permute.xlu0 %2747  ;;  %3186 = vrot.lane.b32.xlu1 %v6316_v45, %s5579_s20 }
0x2b5a   :  { %2751 = vst.msk [vmem:[#allocation5 + $0x8] sm:$0xc] %vm568_vm5, %v2748_v13  ;;  %v5498_v16 = vpop.eup %5497 }
0x2b5d   :  { %v2524_v63 = vpop.permute.xlu0 %2523  ;;  %v3866_v0 = vld [vmem:[#allocation5 + $0x4] sm:$0x3] }
0x2b5e   :  { %2527 = vst.msk [vmem:[#allocation5 + $0x8] sm:$0x30] %vm574_vm6, %v2524_v63  ;;  %3884 = vrot.lane.b32.xlu0 %v3866_v0, %s5578_s3 }
0x2b61   :  { %v2518_v4 = vpop.permute.xlu0 %2517  ;;  %v3869_v31 = vld [vmem:[#allocation5 + $0xa] sm:$0x3] }
0x2b62   :  { %2521 = vst.msk [vmem:[#allocation4] sm:$0xc] %vm568_vm5, %v2518_v4 }
0x2b65   :  { %v2963_v6 = vpop.permute.xlu0 %2962  ;;  %v3870_v2 = vld [vmem:[#allocation5 + $0xc] sm:$0x3] }
0x2b66   :  { %2966 = vst.msk [vmem:[#allocation4] sm:$0xc0] %vm353_vm4, %v2963_v6 }
0x2b69   :  { %v3626_v8 = vpop.permute.xlu0 %3625  ;;  %v3857_v43 = vld [vmem:[#allocation4 + $0x2] sm:$0x3] }
0x2b6a   :  { %3629 = vst.msk [vmem:[#allocation4 + $0x8] sm:$0x30] %vm574_vm6, %v3626_v8 }
0x2b6d   :  { %v3859_v51 = vld [vmem:[#allocation4 + $0x6] sm:$0x3] }
0x2b71   :  { %v3862_v18 = vld [vmem:[#allocation4 + $0xc] sm:$0x3] }
0x2bc7   :  { %v3842_v12 = vpop.permute.xlu1 %3841 }
0x2bc8   :  { %v3844_v45 = vmul.f32 %v5492_v58, %v3842_v12 }
0x2bca   :  { %3852 = vrot.lane.b32.xlu1 %v3844_v45, %s5579_s20 }
0x2bcb   :  { %v3187_v15 = vpop.permute.xlu1 %3186 }
0x2bcc   :  { %3190 = vst.msk [vmem:[#allocation5] sm:$0xc0] %vm353_vm4, %v3187_v15 }
0x2bce   :  { %3738 = vrot.lane.b32.xlu1 %v5498_v16, %s5578_s3 }
0x2bd0   :  { %v3885_v21 = vpop.permute.xlu0 %3884 }
0x2bd2   :  { %2302 = vrot.lane.b32.xlu1 %v6168_v33, %s5579_s20  ;;  %v3865_v33 = vld [vmem:[#allocation5 + $0x2] sm:$0x3] }
0x2bd6   :  { %2741 = vrot.lane.b32.xlu1 %v6245_v41, %s5579_s20 }
0x2bda   :  { %3401 = vrot.lane.b32.xlu1 %v6355_v40, %s5579_s20  ;;  %v3867_v40 = vld [vmem:[#allocation5 + $0x6] sm:$0x3] }
0x2c3c   :  { %v3853_v17 = vpop.permute.xlu1 %3852 }
0x2c3d   :  { %3855 = vst.msk [vmem:[#allocation5] sm:$0x3] %vm347_vm3, %v3853_v17 }
0x2c40   :  { %v3739_v20 = vpop.permute.xlu1 %3738 }
0x2c41   :  { %v3741_v26 = vmul.f32 %v5494_v19, %v3739_v20 }
0x2c43   :  { %3846 = vrot.lane.b32.xlu1 %v3741_v26, %s5579_s20 }
0x2c44   :  { %v2303_v59 = vpop.permute.xlu1 %2302  ;;  %v3864_v37 = vld [vmem:[#allocation5] sm:$0x3] }
0x2c45   :  { %2306 = vst.msk [vmem:[#allocation5 + $0x8] sm:$0xc0] %vm353_vm4, %v2303_v59  ;;  %3880 = vrot.lane.b32.xlu0 %v3864_v37, %s5578_s3 }
0x2c47   :  { %3882 = vrot.lane.b32.xlu1 %v3865_v33, %s5578_s3 }
0x2c48   :  { %v2742_v41 = vpop.permute.xlu1 %2741 }
0x2c49   :  { %2745 = vst.msk [vmem:[#allocation4] sm:$0x30] %vm574_vm6, %v2742_v41  ;;  %3888 = vrot.lane.b32.xlu0 %v3868_v30, %s5578_s3  ;;  %v3969_v41 = vand.u32 127, %v44_v22 }
0x2c4b   :  { %3886 = vrot.lane.b32.xlu1 %v3867_v40, %s5578_s3  ;;  %v6493_v40 = vsub.s32 %v3969_v41, %v5720_v23 }
0x2c4c   :  { %v3402_v29 = vpop.permute.xlu1 %3401  ;;  %v3871_v10 = vld [vmem:[#allocation5 + $0xe] sm:$0x3] }
0x2c4d   :  { %3405 = vst.msk [vmem:[#allocation4 + $0x8] sm:$0xc] %vm568_vm5, %v3402_v29  ;;  %3892 = vrot.lane.b32.xlu0 %v3870_v2, %s5578_s3 }
0x2c4f   :  { %3890 = vrot.lane.b32.xlu1 %v3869_v31, %s5578_s3 }
0x2c50   :  { %v3858_v32 = vld [vmem:[#allocation4 + $0x4] sm:$0x3] }
0x2c51   :  { %v3906_v60 = vsel %vm146_vm2, %v3858_v32, %v3885_v21 }
0x2c52   :  { %5499 = vtanh.f32 %v3906_v60 }
0x2c53   :  { %3894 = vrot.lane.b32.xlu1 %v3871_v10, %s5578_s3 }
0x2c54   :  { %v3861_v3 = vld [vmem:[#allocation4 + $0xa] sm:$0x3] }
0x2c5c   :  { %v6448_v34 = vpop.eup %5499 }
0x2c5d   :  { %v3929_v35 = vmul.f32 %v6448_v34, %v4463_v14 }
0x2c5f   :  { %v3942_v57 = vsel %vm3935_vm7, %v3929_v35, 0.0 }
0x2c6c   :  { %3943 = vadd.xlane.f32.xlu0 %v3942_v57 }
0x2cb5   :  { %v3847_v39 = vpop.permute.xlu1 %3846 }
0x2cb6   :  { %3850 = vst.msk [vmem:[#allocation4 + $0x8] sm:$0xc0] %vm353_vm4, %v3847_v39 }
0x2cb7   :  { %v3881_v42 = vpop.permute.xlu0 %3880 }
0x2cb8   :  { %v3904_v48 = vsel %vm146_vm2, %v3856_v9, %v3881_v42 }
0x2cb9   :  { %v3883_v44 = vpop.permute.xlu1 %3882 }
0x2cba   :  { %v3905_v46 = vsel %vm146_vm2, %v3857_v43, %v3883_v44 }
0x2cbb   :  { %5501 = vtanh.f32 %v3905_v46  ;;  %v3889_v49 = vpop.permute.xlu0 %3888 }
0x2cbc   :  { %v3908_v50 = vsel %vm146_vm2, %v3860_v5, %v3889_v49 }
0x2cbd   :  { %5503 = vtanh.f32 %v3908_v50  ;;  %v3887_v52 = vpop.permute.xlu1 %3886  ;;  %v3863_v47 = vld [vmem:[#allocation4 + $0xe] sm:$0x3] }
0x2cbe   :  { %5505 = vtanh.f32 %v3904_v48  ;;  %v3907_v58 = vsel %vm146_vm2, %v3859_v51, %v3887_v52  ;;  %v5580_v51 = vmov 0   ;;  %v4032_v52 = vsub.s32 2, %v5720_v23 }
0x2cbf   :  { %5507 = vtanh.f32 %v3907_v58  ;;  %v3893_v54 = vpop.permute.xlu0 %3892  ;;  %5242 = vset.pattern.permute.xlu1 %v5580_v51  ;;  %5241 = vset.pattern.permute.xlu0 %v5580_v51  ;;  %v4036_v58 = vsub.s32 3, %v5720_v23 }
0x2cc0   :  { %v3910_v19 = vsel %vm146_vm2, %v3862_v18, %v3893_v54 }
0x2cc1   :  { %5509 = vtanh.f32 %v3910_v19  ;;  %v3891_v1 = vpop.permute.xlu1 %3890 }
0x2cc2   :  { %v3909_v11 = vsel %vm146_vm2, %v3861_v3, %v3891_v1 }
0x2cc3   :  { %5511 = vtanh.f32 %v3909_v11 }
0x2cc5   :  { %v6462_v56 = vpop.eup %5501  ;;  %v3895_v53 = vpop.permute.xlu1 %3894 }
0x2cc6   :  { %v3911_v36 = vsel %vm146_vm2, %v3863_v47, %v3895_v53  ;;  %v3928_v38 = vmul.f32 %v6462_v56, %v4463_v14  ;;  %v4040_v47 = vsub.s32 4, %v5720_v23 }
0x2cc7   :  { %v6466_v55 = vpop.eup %5503  ;;  %5513 = vtanh.f32 %v3911_v36 }
0x2cc8   :  { %v6468_v61 = vpop.eup %5505  ;;  %v3939_v25 = vsel %vm3935_vm7, %v3928_v38, 0.0  ;;  %v3931_v28 = vmul.f32 %v6466_v55, %v4463_v14 }
0x2cc9   :  { %v6472_v62 = vpop.eup %5507  ;;  %3940 = vadd.xlane.f32.xlu1 %v3939_v25  ;;  %v3927_v8 = vmul.f32 %v6468_v61, %v4463_v14 }
0x2cca   :  { %v3930_v13 = vmul.f32 %v6472_v62, %v4463_v14  ;;  %v3948_v0 = vsel %vm3935_vm7, %v3931_v28, 0.0  ;;  %v4044_v28 = vsub.s32 5, %v5720_v23 }
0x2ccb   :  { %v6475_v63 = vpop.eup %5509  ;;  %v3936_v15 = vsel %vm3935_vm7, %v3927_v8, 0.0 }
0x2ccc   :  { %v3945_v4 = vsel %vm3935_vm7, %v3930_v13, 0.0  ;;  %v3933_v6 = vmul.f32 %v6475_v63, %v4463_v14 }
0x2ccd   :  { %v6481_v12 = vpop.eup %5511  ;;  %3949 = vadd.xlane.f32.xlu1 %v3948_v0  ;;  %3946 = vadd.xlane.f32.xlu0 %v3945_v4 }
0x2cce   :  { %v3954_v45 = vsel %vm3935_vm7, %v3933_v6, 0.0  ;;  %v3932_v16 = vmul.f32 %v6481_v12, %v4463_v14  ;;  %v4048_v6 = vsub.s32 6, %v5720_v23 }
0x2cd0   :  { %v3951_v20 = vsel %vm3935_vm7, %v3932_v16, 0.0  ;;  %v4052_v16 = vsub.s32 7, %v5720_v23  ;;  %v4282_v23 = vld [vmem:[%s6658_s8 + $0x8] sm:$0xff] }
0x2cd1   :  { %v6486_v17 = vpop.eup %5513  ;;  %3955 = vadd.xlane.f32.xlu1 %v3954_v45  ;;  %3937 = vadd.xlane.f32.xlu0 %v3936_v15 }
0x2cd2   :  { %v3934_v26 = vmul.f32 %v6486_v17, %v4463_v14 }
0x2cd4   :  { %v3957_v59 = vsel %vm3935_vm7, %v3934_v26, 0.0 }
0x2cd5   :  { %3952 = vadd.xlane.f32.xlu0 %v3951_v20 }
0x2cd9   :  { %3958 = vadd.xlane.f32.xlu0 %v3957_v59 }
0x2cf9   :  { %v3944_v37 = vpop.xlane.xlu0 %3943 }
0x2cfa   :  { %v3981_v32 = vrot.slane %v3944_v37, %v6493_v40 }
0x2d56   :  { %v3941_v33 = vpop.xlane.xlu1 %3940 }
0x2d57   :  { %v3977_v31 = vrot.slane %v3941_v33, %v6493_v40 }
0x2d5a   :  { %v3947_v30 = vpop.xlane.xlu0 %3946  ;;  %v3950_v29 = vpop.xlane.xlu1 %3949 }
0x2d5b   :  { %v3985_v21 = vrot.slane %v3947_v30, %v6493_v40  ;;  %v3989_v22 = vrot.slane %v3950_v29, %v6493_v40 }
0x2d5e   :  { %v3938_v2 = vpop.xlane.xlu0 %3937  ;;  %v3956_v57 = vpop.xlane.xlu1 %3955 }
0x2d5f   :  { %v3973_v10 = vrot.slane %v3938_v2, %v6493_v40  ;;  %v3997_v9 = vrot.slane %v3956_v57, %v6493_v40 }
0x2d61   :  { %v4003_v60 = vsel %vm4002_vm8, %v3977_v31, %v3973_v10 }
0x2d62   :  { %v4005_v14 = vsel %vm4004_vm9, %v3981_v32, %v4003_v60  ;;  %v3953_v35 = vpop.xlane.xlu0 %3952 }
0x2d63   :  { %v3993_v39 = vrot.slane %v3953_v35, %v6493_v40  ;;  %v4007_v42 = vsel %vm4006_vm10, %v3985_v21, %v4005_v14 }
0x2d64   :  { %v4009_v43 = vsel %vm4008_vm11, %v3989_v22, %v4007_v42 }
0x2d65   :  { %v4011_v44 = vsel %vm4010_vm12, %v3993_v39, %v4009_v43 }
0x2d66   :  { %v3959_v46 = vpop.xlane.xlu0 %3958  ;;  %v4013_v5 = vsel %vm4012_vm13, %v3997_v9, %v4011_v44 }
0x2d67   :  { %v4001_v48 = vrot.slane %v3959_v46, %v6493_v40 }
0x2d69   :  { %v4015_v49 = vsel %vm4014_vm14, %v4001_v48, %v4013_v5 }
0x2d6a   :  { %v4018_v50 = vsel %vm4017_vm15, %v4015_v49, -inf }
0x2d6b   :  { %4019 = vmax.xlane.f32.xlu1 %v4018_v50 }
0x2df8   :  { %v4020_v18 = vpop.xlane.xlu1 %4019 }
0x2df9   :  { %v4025_v54 = vrot.slane %v4020_v18, %v5730_v27  ;;  %v4029_v19 = vrot.slane %v4020_v18, %v5723_v24  ;;  %v4033_v3 = vrot.slane %v4020_v18, %v4032_v52  ;;  %v4037_v53 = vrot.slane %v4020_v18, %v4036_v58 }
0x2dfa   :  { %v4041_v13 = vrot.slane %v4020_v18, %v4040_v47  ;;  %v4045_v8 = vrot.slane %v4020_v18, %v4044_v28  ;;  %v4049_v20 = vrot.slane %v4020_v18, %v4048_v6  ;;  %v4053_v41 = vrot.slane %v4020_v18, %v4052_v16 }
0x2dfb   :  { %v4062_v1 = vsub.f32 %v3938_v2, %v4025_v54  ;;  %v4063_v11 = vsub.f32 %v3941_v33, %v4029_v19  ;;  %v4064_v36 = vsub.f32 %v3944_v37, %v4033_v3  ;;  %v4065_v0 = vsub.f32 %v3947_v30, %v4037_v53 }
0x2dfc   :  { %v4066_v45 = vsub.f32 %v3950_v29, %v4041_v13  ;;  %v4067_v26 = vsub.f32 %v3953_v35, %v4045_v8  ;;  %v4068_v30 = vsub.f32 %v3956_v57, %v4049_v20  ;;  %v4069_v31 = vsub.f32 %v3959_v46, %v4053_v41 }
0x2dfd   :  { %v4070_v38 = vmul.f32 1.442695, %v4062_v1  ;;  %v4072_v25 = vmul.f32 1.442695, %v4063_v11  ;;  %v4074_v4 = vmul.f32 1.442695, %v4064_v36 }
0x2dfe   :  { %v4076_v15 = vmul.f32 1.442695, %v4065_v0  ;;  %v4078_v59 = vmul.f32 1.442695, %v4066_v45  ;;  %v4080_v29 = vmul.f32 1.442695, %v4067_v26 }
0x2dff   :  { %5515 = vpow2.f32 %v4070_v38  ;;  %v4082_v10 = vmul.f32 1.442695, %v4068_v30  ;;  %v4084_v21 = vmul.f32 1.442695, %v4069_v31 }
0x2e00   :  { %5517 = vpow2.f32 %v4072_v25 }
0x2e01   :  { %5519 = vpow2.f32 %v4074_v4 }
0x2e02   :  { %5521 = vpow2.f32 %v4076_v15 }
0x2e03   :  { %5523 = vpow2.f32 %v4078_v59 }
0x2e04   :  { %5525 = vpow2.f32 %v4080_v29 }
0x2e05   :  { %5527 = vpow2.f32 %v4082_v10 }
0x2e06   :  { %5529 = vpow2.f32 %v4084_v21 }
0x2e09   :  { %v5516_v37 = vpop.eup %5515 }
0x2e0a   :  { %v6529_v33 = vpop.eup %5517  ;;  %4095 = vperm.xlu0 %5241, %v5516_v37  }
0x2e0b   :  { %4098 = vperm.xlu1 %5242, %v6529_v33   ;;  %v6534_v2 = vpop.eup %5519 }
0x2e0c   :  { %v6537_v32 = vpop.eup %5521 }
0x2e0d   :  { %v6540_v60 = vpop.eup %5523 }
0x2e0e   :  { %v6543_v22 = vpop.eup %5525 }
0x2e0f   :  { %4101 = vperm.xlu1 %5242, %v6534_v2   ;;  %v6546_v14 = vpop.eup %5527 }
0x2e10   :  { %v6549_v35 = vpop.eup %5529 }
0x2e13   :  { %4104 = vperm.xlu1 %5242, %v6537_v32  }
0x2e17   :  { %4107 = vperm.xlu1 %5242, %v6540_v60  }
0x2e1b   :  { %4110 = vperm.xlu1 %5242, %v6543_v22  }
0x2e1f   :  { %4113 = vperm.xlu1 %5242, %v6546_v14  }
0x2e23   :  { %4116 = vperm.xlu1 %5242, %v6549_v35  }
0x2e89   :  { %v4096_v44 = vpop.permute.xlu0 %4095 }
0x2e8a   :  { %v4099_v57 = vpop.permute.xlu1 %4098  ;;  %v4121_v48 = vrot.slane %v4096_v44, %v6493_v40  ;;  %v4288_v44 = vld [vmem:[%s6658_s8 + $0x38] sm:$0xff] }
0x2e8b   :  { %v4125_v46 = vrot.slane %v4099_v57, %v6493_v40 }
0x2e8d   :  { %v4150_v18 = vsel %vm4002_vm8, %v4125_v46, %v4121_v48 }
0x2e8e   :  { %v4102_v39 = vpop.permute.xlu1 %4101 }
0x2e8f   :  { %v4129_v5 = vrot.slane %v4102_v39, %v6493_v40 }
0x2e91   :  { %v4151_v19 = vsel %vm4004_vm9, %v4129_v5, %v4150_v18 }
0x2e92   :  { %v4105_v42 = vpop.permute.xlu1 %4104 }
0x2e93   :  { %v4133_v49 = vrot.slane %v4105_v42, %v6493_v40  ;;  %v4286_v42 = vld [vmem:[%s6658_s8 + $0x28] sm:$0xff] }
0x2e95   :  { %v4152_v1 = vsel %vm4006_vm10, %v4133_v49, %v4151_v19 }
0x2e96   :  { %v4108_v43 = vpop.permute.xlu1 %4107 }
0x2e97   :  { %v4137_v50 = vrot.slane %v4108_v43, %v6493_v40 }
0x2e99   :  { %v4153_v11 = vsel %vm4008_vm11, %v4137_v50, %v4152_v1 }
0x2e9a   :  { %v4111_v9 = vpop.permute.xlu1 %4110 }
0x2e9b   :  { %v4141_v54 = vrot.slane %v4111_v9, %v6493_v40 }
0x2e9d   :  { %v4154_v36 = vsel %vm4010_vm12, %v4141_v54, %v4153_v11 }
0x2e9e   :  { %v4114_v51 = vpop.permute.xlu1 %4113 }
0x2e9f   :  { %v4145_v3 = vrot.slane %v4114_v51, %v6493_v40 }
0x2ea1   :  { %v4155_v25 = vsel %vm4012_vm13, %v4145_v3, %v4154_v36 }
0x2ea2   :  { %v4117_v53 = vpop.permute.xlu1 %4116 }
0x2ea3   :  { %v4149_v38 = vrot.slane %v4117_v53, %v6493_v40 }
0x2ea5   :  { %v4156_v13 = vsel %vm4014_vm14, %v4149_v38, %v4155_v25 }
0x2ea6   :  { %v4158_v0 = vsel %vm4017_vm15, %v4156_v13, 0.0 }
0x2ea7   :  { %4159 = vadd.xlane.f32.xlu1 %v4158_v0 }
0x2f34   :  { %v4160_v4 = vpop.xlane.xlu1 %4159 }
0x2f35   :  { %v4165_v8 = vrot.slane %v4160_v4, %v5730_v27  ;;  %v4169_v45 = vrot.slane %v4160_v4, %v5723_v24  ;;  %v4173_v15 = vrot.slane %v4160_v4, %v4032_v52  ;;  %v4177_v40 = vrot.slane %v4160_v4, %v4036_v58 }
0x2f36   :  { %v4181_v26 = vrot.slane %v4160_v4, %v4040_v47  ;;  %v4185_v24 = vrot.slane %v4160_v4, %v4044_v28  ;;  %v4189_v52 = vrot.slane %v4160_v4, %v4048_v6  ;;  %v4193_v47 = vrot.slane %v4160_v4, %v4052_v16 }
0x2f37   :  { %5531 = vrcp.f32 %v4165_v8 }
0x2f38   :  { %5533 = vrcp.f32 %v4169_v45 }
0x2f39   :  { %5535 = vrcp.f32 %v4173_v15 }
0x2f3a   :  { %5537 = vrcp.f32 %v4177_v40 }
0x2f3b   :  { %5539 = vrcp.f32 %v4181_v26  ;;  %v4464_v26 = vld [vmem:[%s6659_s9] ss:$0 sm:$0xff]  ;;  %s5551_s9 = scalar_lea.vmem %s4390_s18, 32 }
0x2f3c   :  { %5541 = vrcp.f32 %v4185_v24  ;;  %p5552_p0 = scmp.ne.s32.totalorder %s4390_s18, %s5551_s9  ;;  %p5557_p2 = scmp.lt.s32.totalorder %s5551_s9, %s5551_s9 }
0x2f3d   :  { %5543 = vrcp.f32 %v4189_v52 }
0x2f3e   :  { %5545 = vrcp.f32 %v4193_v47  ;;  %p5558_p3 = por %p5557_p2, %p5556_p1 }
0x2f40   :  { %p5559_p4 = pnand %p5558_p3, %p5552_p0 }
0x2f41   :  { %v5532_v20 = vpop.eup %5531 }
0x2f42   :  { %v4203_v59 = vmul.f32 %v5532_v20, %v5516_v37  ;;  %v5534_v41 = vpop.eup %5533 }
0x2f43   :  { %v4205_v27 = vmul.f32 %v5534_v41, %v6529_v33  ;;  %v5536_v30 = vpop.eup %5535 }
0x2f44   :  { %4220 = vperm.xlu0 %5241, %v4203_v59   ;;  %v4207_v58 = vmul.f32 %v5536_v30, %v6534_v2  ;;  %v5538_v29 = vpop.eup %5537  ;;  %v4281_v2 = vld [vmem:[%s6658_s8] sm:$0xff] }
0x2f45   :  { %v4209_v37 = vmul.f32 %v5538_v29, %v6537_v32  ;;  %v5540_v31 = vpop.eup %5539  ;;  %v5219_v16 = vpack.c.bf16 %v4282_v23, %v4281_v2 }
0x2f46   :  { %v4211_v28 = vmul.f32 %v5540_v31, %v6540_v60  ;;  %v5542_v33 = vpop.eup %5541  ;;  %v4283_v60 = vld [vmem:[%s6658_s8 + $0x10] sm:$0xff] }
0x2f47   :  { %v4213_v10 = vmul.f32 %v5542_v33, %v6543_v22  ;;  %v5544_v6 = vpop.eup %5543  ;;  %5220 = vmatpush3.bf16.msra.mxu1 %v5219_v16  ;;  %v4284_v22 = vld [vmem:[%s6658_s8 + $0x18] sm:$0xff] }
0x2f48   :  { %4225 = vperm.xlu0 %5241, %v4205_v27   ;;  %v4215_v32 = vmul.f32 %v5544_v6, %v6546_v14  ;;  %v5546_v21 = vpop.eup %5545  ;;  %5221 = vmatprep.subr.bf16.mxu1 %v5576_v7  ;;  %v5222_v57 = vpack.c.bf16 %v4284_v22, %v4283_v60  ;;  %v4285_v14 = vld [vmem:[%s6658_s8 + $0x20] sm:$0xff] }
0x2f49   :  { %v4217_v39 = vmul.f32 %v5546_v21, %v6549_v35  ;;  %v5225_v43 = vpack.c.bf16 %v4286_v42, %v4285_v14  ;;  %v4287_v35 = vld [vmem:[%s6658_s8 + $0x30] sm:$0xff] }
0x2f4a   :  { %v5228_v9 = vpack.c.bf16 %v4288_v44, %v4287_v35 }
0x2f4b   :  { %5223 = vmatpush3.bf16.msra.mxu1 %v5222_v57 }
0x2f4c   :  { %4230 = vperm.xlu0 %5241, %v4207_v58   ;;  %5224 = vmatprep.subr.bf16.mxu1 %v5576_v7 }
0x2f4f   :  { %5226 = vmatpush3.bf16.msra.mxu1 %v5225_v43 }
0x2f50   :  { %4235 = vperm.xlu0 %5241, %v4209_v37   ;;  %5227 = vmatprep.subr.bf16.mxu1 %v5576_v7 }
0x2f53   :  { %5229 = vmatpush3.bf16.msra.mxu1 %v5228_v9 }
0x2f54   :  { %4240 = vperm.xlu0 %5241, %v4211_v28  }
0x2f58   :  { %4245 = vperm.xlu0 %5241, %v4213_v10  }
0x2f5c   :  { %4250 = vperm.xlu0 %5241, %v4215_v32  }
0x2f60   :  { %4255 = vperm.xlu0 %5241, %v4217_v39  }
0x2fc3   :  { %v4221_v46 = vpop.permute.xlu0 %4220 }
0x2fc4   :  { %v4258_v51 = vmul.f32 %v6468_v61, %v4221_v46 }
0x2fc6   :  { %v4266_v3 = vsel %vm3935_vm7, %v4258_v51, 0.0 }
0x2fc7   :  { %v4226_v48 = vpop.permute.xlu0 %4225 }
0x2fc8   :  { %v4259_v50 = vmul.f32 %v6462_v56, %v4226_v48 }
0x2fca   :  { %v4267_v54 = vsel %vm3935_vm7, %v4259_v50, 0.0 }
0x2fcb   :  { %v4231_v5 = vpop.permute.xlu0 %4230  ;;  %v4268_v53 = vadd.f32 %v4267_v54, %v4266_v3 }
0x2fcc   :  { %v4260_v7 = vmul.f32 %v6448_v34, %v4231_v5 }
0x2fce   :  { %v4269_v1 = vsel %vm3935_vm7, %v4260_v7, 0.0 }
0x2fcf   :  { %v4236_v49 = vpop.permute.xlu0 %4235  ;;  %v4270_v61 = vadd.f32 %v4269_v1, %v4268_v53 }
0x2fd0   :  { %v4261_v19 = vmul.f32 %v6472_v62, %v4236_v49 }
0x2fd2   :  { %v4271_v38 = vsel %vm3935_vm7, %v4261_v19, 0.0 }
0x2fd3   :  { %v4241_v18 = vpop.permute.xlu0 %4240  ;;  %v4272_v25 = vadd.f32 %v4271_v38, %v4270_v61 }
0x2fd4   :  { %v4262_v11 = vmul.f32 %v6466_v55, %v4241_v18 }
0x2fd6   :  { %v4273_v34 = vsel %vm3935_vm7, %v4262_v11, 0.0 }
0x2fd7   :  { %v4246_v36 = vpop.permute.xlu0 %4245  ;;  %v4274_v4 = vadd.f32 %v4273_v34, %v4272_v25 }
0x2fd8   :  { %v4263_v56 = vmul.f32 %v6481_v12, %v4246_v36 }
0x2fda   :  { %v4275_v0 = vsel %vm3935_vm7, %v4263_v56, 0.0 }
0x2fdb   :  { %v4251_v13 = vpop.permute.xlu0 %4250  ;;  %v4276_v45 = vadd.f32 %v4275_v0, %v4274_v4 }
0x2fdc   :  { %v4264_v62 = vmul.f32 %v6475_v63, %v4251_v13 }
0x2fde   :  { %v4277_v8 = vsel %vm3935_vm7, %v4264_v62, 0.0 }
0x2fdf   :  { %v4256_v55 = vpop.permute.xlu0 %4255  ;;  %v4278_v40 = vadd.f32 %v4277_v8, %v4276_v45 }
0x2fe0   :  { %v4265_v15 = vmul.f32 %v6486_v17, %v4256_v55 }
0x2fe2   :  { %v4279_v20 = vsel %vm3935_vm7, %v4265_v15, 0.0 }
0x2fe3   :  { %v4280_v12 = vadd.f32 %v4279_v20, %v4278_v40 }
0x2fe5   :  { %5004 = vmatmul.mubr.msk.f32.vlgmr.msra.gmra.mrb[32].mxu1 %vm4296_vm0, %v4280_v12 }
0x30b8   :  { %v4366_v59 = vpop.f32.mrb[32].mxu1 }
0x30b9   :  { %v4367_v63 = vadd.f32 %v4464_v26, %v4366_v59  ;;  %v5005_v41 = vpop.f32.mrb[33].mxu1 }
0x30bb   :  { %v4371_v24 = vsel %vm4370_vm1, %v4367_v63, -inf }
0x30bc   :  { %4372 = vmax.xlane.f32.xlu0 %v4371_v24 }
0x3149   :  { %v4373_v27 = vpop.xlane.xlu0 %4372 }
0x314a   :  { %v4374_v30 = vsub.f32 %v4367_v63, %v4373_v27 }
0x314c   :  { %v4375_v17 = vmul.f32 1.442695, %v4374_v30 }
0x314e   :  { %5547 = vpow2.f32 %v4375_v17 }
0x3158   :  { %v5548_v52 = vpop.eup %5547 }
0x3159   :  { %v4377_v58 = vsel %vm4370_vm1, %v5548_v52, 0.0 }
0x315a   :  { %4378 = vadd.xlane.f32.xlu1 %v4377_v58 }
0x31e7   :  { %v4379_v29 = vpop.xlane.xlu1 %4378 }
0x31e8   :  { %5549 = vrcp.f32 %v4379_v29 }
0x31f2   :  { %v5550_v47 = vpop.eup %5549 }
0x31f3   :  { %v4381_v37 = vmul.f32 %v5550_v47, %v5548_v52 }
0x31f5   :  { %4382 = vst.msk [vmem:[#allocation6] sm:$0x3] %vm4370_vm1, %v4381_v37 }
0x31f6   :  { %5562 = shalt.err (!%p5559_p4)
}
0x31f7   :  { %s5563_s21 = scalar_lea.hbm %s6660_s10, 32 }
0x31f8   :  { %p5564_p5 = scmp.ne.s32.totalorder %s6660_s10, %s5563_s21  ;;  %p5567_p6 = scmp.lt.u32.totalorder %s5563_s21, %s6660_s10 }
0x31fa   :  { %p5569_p7 = pnand %p5567_p6, %p5564_p5 }
0x31fc   :  { %5572 = shalt.err (!%p5569_p7)
}
0x31fd   :  { %4392 = dma.vmem_to_hbm [thread:$0]  %s4390_s18, 32, %s6660_s10, [#allocation7]  }
0x31fe   :  { %5573 = dma.done.wait [#allocation7], 32  }
0x31ff   :  { %5574 = vsyncadd [#allocation7], 4294967264 }
0x3200   :  { %4396 = vsyncpa [#allocation7], 1 }

</bundles_post_ra>
